<compile_context>
chip_gen: v7x
topology: tpu7x:2x2x1
jax: 0.10.0
libtpu: 0.0.40
codegen_flags: <defaults>
</compile_context>

<pallas_src>
import math
import functools

import jax
import jax.numpy as jnp
from jax.experimental import pallas as pl
from jax.experimental.pallas import tpu as pltpu

NUM_HEADS = 4
LN_EPS = 1e-5

# Order in which prepared weights are passed to the kernel.
_WEIGHT_ORDER = (
    "ln1_w", "ln1_b",
    "w_qk", "b_qk",
    "w_vo", "b_vo", "b_out",
    "ln2_w", "ln2_b",
    "w1", "b1", "w2", "b2",
)


def _layernorm_cm(v, w_ref, b_ref):
    # v: (H, N) channel-major; w_ref/b_ref: (H, 1). Reduction over the sublane axis.
    mu = jnp.mean(v, axis=0, keepdims=True)
    var = jnp.mean((v - mu) ** 2, axis=0, keepdims=True)
    return (v - mu) * jax.lax.rsqrt(var + LN_EPS) * w_ref[...] + b_ref[...]


def sa_kernel(x_ref,                 # (nb, H, S) channel-major batch block
              ln1_w, ln1_b,          # (H, 1)
              w_qk, b_qk,            # (2H, H), (2H, 1)   Q rows pre-scaled by 1/sqrt(d)
              w_vo, b_vo,            # (nh*H, H), (nh*H, 1)  per-head V @ out_proj folded
              b_out,                 # (H, 1)
              ln2_w, ln2_b,          # (H, 1)
              w1, b1,                # (H, H) torch (out,in) layout, (H, 1)
              w2, b2,                # (H, H), (H, 1)
              o_ref,                 # (nb, H, S)
              *, nb):
    H = ln1_w.shape[0]
    S = x_ref.shape[-1]
    d = H // NUM_HEADS

    # Channel-major activation slab (H, nb*S); batch stacked along lanes so all
    # dense matmuls see a lane-dense N dim (128 when nb*S == 128).
    if nb == 1:
        x = x_ref[0].astype(jnp.float32)
    else:
        x = jnp.concatenate([x_ref[b].astype(jnp.float32) for b in range(nb)], axis=-1)

    # ---- LayerNorm 1 ----
    x_ln = _layernorm_cm(x, ln1_w, ln1_b)                                   # (H, N)

    # ---- fused Q/K projection (scale pre-folded) and folded V*out_proj, one matmul each ----
    qk = jnp.dot(w_qk[...], x_ln, preferred_element_type=jnp.float32) + b_qk[...]   # (2H, N)
    vo = jnp.dot(w_vo[...], x_ln, preferred_element_type=jnp.float32) + b_vo[...]   # (nh*H, N)
    qk_t = qk.T                                                             # (N, 2H) token-major, single small transpose

    # ---- attention: per (batch, head) softmax(q k^T) applied to the folded V/out projection ----
    cols = []
    for b in range(nb):                       # nb <= 2, static, fully unrolled
        acc = None
        for h in range(NUM_HEADS):            # static, fully unrolled
            q = qk_t[b * S:(b + 1) * S, h * d:(h + 1) * d]                  # (S, d)
            k = qk_t[b * S:(b + 1) * S, H + h * d:H + (h + 1) * d]          # (S, d)
            s = jax.lax.dot_general(q, k, (((1,), (1,)), ((), ())),
                                    preferred_element_type=jnp.float32)     # (S, S)
            s = s - jnp.max(s, axis=-1, keepdims=True)
            p = jnp.exp(s)
            p = p * pl.reciprocal(jnp.sum(p, axis=-1, keepdims=True), approx=True)
            voh = vo[h * H:(h + 1) * H, b * S:(b + 1) * S]                  # (H, S)
            # attn_h (channel-major) = voh @ p^T : contract last dims of both operands.
            contrib = jax.lax.dot_general(voh, p, (((1,), (1,)), ((), ())),
                                          preferred_element_type=jnp.float32)   # (H, S)
            acc = contrib if acc is None else acc + contrib
        cols.append(acc)
    attn = cols[0] if nb == 1 else jnp.concatenate(cols, axis=-1)           # (H, N)
    attn = attn + b_out[...]

    # ---- residual ----
    av = attn + x

    # ---- ff_self: LayerNorm -> Linear -> GELU(exact) -> Linear, + residual ----
    h_ln = _layernorm_cm(av, ln2_w, ln2_b)
    h1 = jnp.dot(w1[...], h_ln, preferred_element_type=jnp.float32) + b1[...]
    h1 = 0.5 * h1 * (1.0 + jax.lax.erf(h1 * (1.0 / math.sqrt(2.0))))
    h2 = jnp.dot(w2[...], h1, preferred_element_type=jnp.float32) + b2[...]
    out = h2 + av                                                           # (H, N)

    for b in range(nb):
        o_ref[b] = out[:, b * S:(b + 1) * S].astype(o_ref.dtype)


def make_params(key, h_size):
    """Deterministic parameter init mirroring the PyTorch module's shapes."""
    ks = jax.random.split(key, 8)
    H = h_size

    def uinit(k, shape, fan_in):
        bound = 1.0 / math.sqrt(fan_in)
        return jax.random.uniform(k, shape, jnp.float32, -bound, bound)

    return {
        "ln1_w": jnp.ones((1, H), jnp.float32),
        "ln1_b": jnp.zeros((1, H), jnp.float32),
        # nn.MultiheadAttention in_proj / out_proj (torch layouts: (3H,H), (H,H))
        "w_in": uinit(ks[0], (3 * H, H), H),
        "b_in": jnp.zeros((1, 3 * H), jnp.float32),
        "w_out": uinit(ks[1], (H, H), H),
        "b_out": jnp.zeros((1, H), jnp.float32),
        "ln2_w": jnp.ones((1, H), jnp.float32),
        "ln2_b": jnp.zeros((1, H), jnp.float32),
        "w1": uinit(ks[2], (H, H), H),
        "b1": uinit(ks[3], (1, H), H),
        "w2": uinit(ks[4], (H, H), H),
        "b2": uinit(ks[5], (1, H), H),
    }


def prepare_kernel_weights(params, h_size):
    """One-time host-side re-layout: channel-major (out,in) weights, fused QK (with the
    1/sqrt(d) scale folded into Q), and per-head V@out_proj folding stacked to (nh*H, H)."""
    H = h_size
    d = H // NUM_HEADS
    scale = 1.0 / math.sqrt(d)

    w_in = params["w_in"]                      # (3H, H) torch (out, in) layout
    b_in = params["b_in"].reshape(-1)          # (3H,)
    W_q, W_k, W_v = w_in[:H], w_in[H:2 * H], w_in[2 * H:]
    b_q, b_k, b_v = b_in[:H], b_in[H:2 * H], b_in[2 * H:]
    W_out = params["w_out"]                    # (H, H) torch (out, in) layout

    # Fused Q/K projection weight (channel-major, (out, in)); scale folded into Q rows.
    w_qk = jnp.concatenate([W_q * scale, W_k], axis=0)                       # (2H, H)
    b_qk = jnp.concatenate([b_q * scale, b_k]).reshape(2 * H, 1)             # (2H, 1)

    # Fold out_proj into the per-head V projection (exact), channel-major, stacked by head.
    w_vo = jnp.concatenate(
        [W_out[:, h * d:(h + 1) * d] @ W_v[h * d:(h + 1) * d, :] for h in range(NUM_HEADS)],
        axis=0)                                                              # (nh*H, H)
    b_vo = jnp.concatenate(
        [W_out[:, h * d:(h + 1) * d] @ b_v[h * d:(h + 1) * d] for h in range(NUM_HEADS)]
    ).reshape(NUM_HEADS * H, 1)                                              # (nh*H, 1)

    return {
        "ln1_w": params["ln1_w"].reshape(H, 1), "ln1_b": params["ln1_b"].reshape(H, 1),
        "w_qk": w_qk, "b_qk": b_qk,
        "w_vo": w_vo, "b_vo": b_vo,
        "b_out": params["b_out"].reshape(H, 1),
        "ln2_w": params["ln2_w"].reshape(H, 1), "ln2_b": params["ln2_b"].reshape(H, 1),
        "w1": params["w1"], "b1": params["b1"].reshape(H, 1),
        "w2": params["w2"], "b2": params["b2"].reshape(H, 1),
    }


def _batch_tile(batch):
    """Batch elements per grid step: whole batch in one step on single-TC chips
    (v5e/v6e), one element per step on v7x so its two TensorCores both get work."""
    kind = ""
    try:
        kind = jax.devices()[0].device_kind.lower()
    except Exception:
        pass
    if "v7" in kind or "tpu7" in kind or "7x" in kind:
        return 1
    return batch


@functools.partial(jax.jit, static_argnames=("h_size", "num_s", "nb"))
def _sa_forward(x_nchw, weights, *, h_size, num_s, nb):
    B = x_nchw.shape[0]
    S = num_s * num_s
    H = h_size

    # Free reshape only; the NCHW layout is already channel-major (H, S).
    x_hs = x_nchw.reshape(B, H, S)

    weight_list = [weights[k] for k in _WEIGHT_ORDER]
    kernel = functools.partial(sa_kernel, nb=nb)

    out_hs = pl.pallas_call(
        kernel,
        out_shape=jax.ShapeDtypeStruct((B, H, S), x_hs.dtype),
        grid_spec=pltpu.PrefetchScalarGridSpec(
            num_scalar_prefetch=0,
            grid=(B // nb,),
            in_specs=[pl.BlockSpec((nb, H, S), lambda i: (i, 0, 0))]
                     + [pl.BlockSpec(w.shape, lambda i: (0, 0)) for w in weight_list],
            out_specs=pl.BlockSpec((nb, H, S), lambda i: (i, 0, 0)),
        ),
        compiler_params=pltpu.CompilerParams(
            dimension_semantics=("parallel",)),
    )(x_hs, *weight_list)

    # Free reshape back to NCHW.
    return out_hs.reshape(B, H, num_s, num_s)


def sa_wrapper_forward(x_nchw, weights, *, h_size, num_s):
    nb = _batch_tile(x_nchw.shape[0])
    return _sa_forward(x_nchw, weights, h_size=h_size, num_s=num_s, nb=nb)


def sa_wrapper_reference(x_nchw, params, *, h_size, num_s):
    """Pure-JAX reference with identical math (torch layouts), for verification."""
    B = x_nchw.shape[0]
    S = num_s * num_s
    H = h_size
    x = jnp.transpose(x_nchw.reshape(B, H, S), (0, 2, 1)).astype(jnp.float32)

    def ln(v, w, b):
        mu = jnp.mean(v, axis=-1, keepdims=True)
        var = jnp.mean((v - mu) ** 2, axis=-1, keepdims=True)
        return (v - mu) / jnp.sqrt(var + LN_EPS) * w + b

    x_ln = ln(x, params["ln1_w"][0], params["ln1_b"][0])
    qkv = x_ln @ params["w_in"].T + params["b_in"][0]
    q, k, v = qkv[..., :H], qkv[..., H:2 * H], qkv[..., 2 * H:]
    d = H // NUM_HEADS

    def split_heads(t):  # (B, S, H) -> (B, nh, S, d)
        return jnp.transpose(t.reshape(B, S, NUM_HEADS, d), (0, 2, 1, 3))

    qh, kh, vh = split_heads(q), split_heads(k), split_heads(v)
    s = jnp.einsum("bhqd,bhkd->bhqk", qh, kh) / math.sqrt(d)
    p = jax.nn.softmax(s, axis=-1)
    o = jnp.einsum("bhqk,bhkd->bhqd", p, vh)
    o = jnp.transpose(o, (0, 2, 1, 3)).reshape(B, S, H)
    attn = o @ params["w_out"].T + params["b_out"][0]
    av = attn + x
    h_ln = ln(av, params["ln2_w"][0], params["ln2_b"][0])
    h1 = h_ln @ params["w1"].T + params["b1"][0]
    h1 = 0.5 * h1 * (1.0 + jax.lax.erf(h1 / math.sqrt(2.0)))
    h2 = h1 @ params["w2"].T + params["b2"][0]
    out = h2 + av
    return jnp.transpose(out, (0, 2, 1)).reshape(B, H, num_s, num_s)


if __name__ == "__main__":
    B, H_SIZE, NUM_S = 2, 32, 8           # input: (2, 32, 8, 8), seq = 64 tokens
    key = jax.random.PRNGKey(0)
    k_x, k_p = jax.random.split(key)
    x = jax.random.normal(k_x, (B, H_SIZE, NUM_S, NUM_S), jnp.float32)

    params = make_params(k_p, H_SIZE)
    weights = prepare_kernel_weights(params, H_SIZE)   # one-time host re-layout

    out = sa_wrapper_forward(x, weights, h_size=H_SIZE, num_s=NUM_S)
    out = jax.block_until_ready(out)

    ref = sa_wrapper_reference(x, params, h_size=H_SIZE, num_s=NUM_S)
    assert out.shape == (B, H_SIZE, NUM_S, NUM_S)
    assert jnp.allclose(out, ref, atol=2e-3, rtol=2e-3), float(jnp.max(jnp.abs(out - ref)))

    print("KERNEL_OK")
</pallas_src>

<mosaic_0001>
module attributes {stable_mosaic.version = 11 : i64} {
  func.func @sa_kernel(%arg0: i32, %arg1: memref<2x32x64xf32, #tpu.memory_space<vmem>>, %arg2: memref<32x1xf32, #tpu.memory_space<vmem>>, %arg3: memref<32x1xf32, #tpu.memory_space<vmem>>, %arg4: memref<64x32xf32, #tpu.memory_space<vmem>>, %arg5: memref<64x1xf32, #tpu.memory_space<vmem>>, %arg6: memref<128x32xf32, #tpu.memory_space<vmem>>, %arg7: memref<128x1xf32, #tpu.memory_space<vmem>>, %arg8: memref<32x1xf32, #tpu.memory_space<vmem>>, %arg9: memref<32x1xf32, #tpu.memory_space<vmem>>, %arg10: memref<32x1xf32, #tpu.memory_space<vmem>>, %arg11: memref<32x32xf32, #tpu.memory_space<vmem>>, %arg12: memref<32x1xf32, #tpu.memory_space<vmem>>, %arg13: memref<32x32xf32, #tpu.memory_space<vmem>>, %arg14: memref<32x1xf32, #tpu.memory_space<vmem>>, %arg15: memref<2x32x64xf32, #tpu.memory_space<vmem>>) attributes {dimension_semantics = [#tpu.dimension_semantics<parallel>], iteration_bounds = array<i64: 1>, scalar_prefetch = 0 : i64, scratch_operands = 0 : i64, tpu.core_type = #tpu.core_type<tc>, window_params = [{transform_indices = @transform_0, window_bounds = array<i64: 2, 32, 64>}, {pipeline_mode = #tpu.pipeline_mode<synchronous>, transform_indices = @transform_1, window_bounds = array<i64: 32, 1>}, {pipeline_mode = #tpu.pipeline_mode<synchronous>, transform_indices = @transform_2, window_bounds = array<i64: 32, 1>}, {pipeline_mode = #tpu.pipeline_mode<synchronous>, transform_indices = @transform_3, window_bounds = array<i64: 64, 32>}, {pipeline_mode = #tpu.pipeline_mode<synchronous>, transform_indices = @transform_4, window_bounds = array<i64: 64, 1>}, {pipeline_mode = #tpu.pipeline_mode<synchronous>, transform_indices = @transform_5, window_bounds = array<i64: 128, 32>}, {pipeline_mode = #tpu.pipeline_mode<synchronous>, transform_indices = @transform_6, window_bounds = array<i64: 128, 1>}, {pipeline_mode = #tpu.pipeline_mode<synchronous>, transform_indices = @transform_7, window_bounds = array<i64: 32, 1>}, {pipeline_mode = #tpu.pipeline_mode<synchronous>, transform_indices = @transform_8, window_bounds = array<i64: 32, 1>}, {pipeline_mode = #tpu.pipeline_mode<synchronous>, transform_indices = @transform_9, window_bounds = array<i64: 32, 1>}, {pipeline_mode = #tpu.pipeline_mode<synchronous>, transform_indices = @transform_10, window_bounds = array<i64: 32, 32>}, {pipeline_mode = #tpu.pipeline_mode<synchronous>, transform_indices = @transform_11, window_bounds = array<i64: 32, 1>}, {pipeline_mode = #tpu.pipeline_mode<synchronous>, transform_indices = @transform_12, window_bounds = array<i64: 32, 32>}, {pipeline_mode = #tpu.pipeline_mode<synchronous>, transform_indices = @transform_13, window_bounds = array<i64: 32, 1>}, {transform_indices = @transform_14, window_bounds = array<i64: 2, 32, 64>}]} {
    %c0 = arith.constant 0 : index
    %c0_0 = arith.constant 0 : index
    %c0_1 = arith.constant 0 : index
    %0 = vector.load %arg1[%c0, %c0_0, %c0_1] : memref<2x32x64xf32, #tpu.memory_space<vmem>>, vector<1x32x64xf32>
    %1 = vector.shape_cast %0 : vector<1x32x64xf32> to vector<32x64xf32>
    %c1 = arith.constant 1 : index
    %c0_2 = arith.constant 0 : index
    %c0_3 = arith.constant 0 : index
    %2 = vector.load %arg1[%c1, %c0_2, %c0_3] : memref<2x32x64xf32, #tpu.memory_space<vmem>>, vector<1x32x64xf32>
    %3 = vector.shape_cast %2 : vector<1x32x64xf32> to vector<32x64xf32>
    %4 = tpu.concatenate %1, %3 in 1 : vector<32x64xf32>, vector<32x64xf32> -> vector<32x128xf32>
    %cst = arith.constant dense<0.000000e+00> : vector<128xf32>
    %5 = vector.multi_reduction <add>, %4, %cst [0] : vector<32x128xf32> to vector<128xf32>
    %6 = vector.shape_cast %5 : vector<128xf32> to vector<1x128xf32>
    %cst_4 = arith.constant 3.200000e+01 : f32
    %7 = vector.broadcast %cst_4 : f32 to vector<1x128xf32>
    %8 = arith.divf %6, %7 : vector<1x128xf32>
    %9 = vector.broadcast %8 : vector<1x128xf32> to vector<32x128xf32>
    %10 = arith.subf %4, %9 : vector<32x128xf32>
    %11 = arith.mulf %10, %10 : vector<32x128xf32>
    %cst_5 = arith.constant dense<0.000000e+00> : vector<128xf32>
    %12 = vector.multi_reduction <add>, %11, %cst_5 [0] : vector<32x128xf32> to vector<128xf32>
    %13 = vector.shape_cast %12 : vector<128xf32> to vector<1x128xf32>
    %cst_6 = arith.constant 3.200000e+01 : f32
    %14 = vector.broadcast %cst_6 : f32 to vector<1x128xf32>
    %15 = arith.divf %13, %14 : vector<1x128xf32>
    %16 = vector.broadcast %8 : vector<1x128xf32> to vector<32x128xf32>
    %17 = arith.subf %4, %16 : vector<32x128xf32>
    %cst_7 = arith.constant 9.99999974E-6 : f32
    %18 = vector.broadcast %cst_7 : f32 to vector<1x128xf32>
    %19 = arith.addf %15, %18 : vector<1x128xf32>
    %20 = math.rsqrt %19 : vector<1x128xf32>
    %21 = vector.broadcast %20 : vector<1x128xf32> to vector<32x128xf32>
    %22 = arith.mulf %17, %21 : vector<32x128xf32>
    %c0_8 = arith.constant 0 : index
    %c0_9 = arith.constant 0 : index
    %23 = vector.load %arg2[%c0_8, %c0_9] : memref<32x1xf32, #tpu.memory_space<vmem>>, vector<32x1xf32>
    %24 = vector.broadcast %23 : vector<32x1xf32> to vector<32x128xf32>
    %25 = arith.mulf %22, %24 : vector<32x128xf32>
    %c0_10 = arith.constant 0 : index
    %c0_11 = arith.constant 0 : index
    %26 = vector.load %arg3[%c0_10, %c0_11] : memref<32x1xf32, #tpu.memory_space<vmem>>, vector<32x1xf32>
    %27 = vector.broadcast %26 : vector<32x1xf32> to vector<32x128xf32>
    %28 = arith.addf %25, %27 : vector<32x128xf32>
    %c0_12 = arith.constant 0 : index
    %c0_13 = arith.constant 0 : index
    %29 = vector.load %arg4[%c0_12, %c0_13] : memref<64x32xf32, #tpu.memory_space<vmem>>, vector<64x32xf32>
    %cst_14 = arith.constant dense<0.000000e+00> : vector<64x128xf32>
    %30 = tpu.matmul %29, %28, %cst_14 {dimension_numbers = #tpu.dot_dimension_numbers<[1], [0], [0], [1], [0, 0, 1, 1], [], []>} : vector<64x32xf32>, vector<32x128xf32>, vector<64x128xf32> -> vector<64x128xf32>
    %c0_15 = arith.constant 0 : index
    %c0_16 = arith.constant 0 : index
    %31 = vector.load %arg5[%c0_15, %c0_16] : memref<64x1xf32, #tpu.memory_space<vmem>>, vector<64x1xf32>
    %32 = vector.broadcast %31 : vector<64x1xf32> to vector<64x128xf32>
    %33 = arith.addf %30, %32 : vector<64x128xf32>
    %c0_17 = arith.constant 0 : index
    %c0_18 = arith.constant 0 : index
    %34 = vector.load %arg6[%c0_17, %c0_18] : memref<128x32xf32, #tpu.memory_space<vmem>>, vector<128x32xf32>
    %cst_19 = arith.constant dense<0.000000e+00> : vector<128x128xf32>
    %35 = tpu.matmul %34, %28, %cst_19 {dimension_numbers = #tpu.dot_dimension_numbers<[1], [0], [0], [1], [0, 0, 1, 1], [], []>} : vector<128x32xf32>, vector<32x128xf32>, vector<128x128xf32> -> vector<128x128xf32>
    %c0_20 = arith.constant 0 : index
    %c0_21 = arith.constant 0 : index
    %36 = vector.load %arg7[%c0_20, %c0_21] : memref<128x1xf32, #tpu.memory_space<vmem>>, vector<128x1xf32>
    %37 = vector.broadcast %36 : vector<128x1xf32> to vector<128x128xf32>
    %38 = arith.addf %35, %37 : vector<128x128xf32>
    %39 = tpu.transpose %33, [1, 0] : vector<64x128xf32> -> vector<128x64xf32>
    %40 = vector.extract_strided_slice %39 {offsets = [0, 0], sizes = [64, 8], strides = [1, 1]} : vector<128x64xf32> to vector<64x8xf32>
    %41 = vector.extract_strided_slice %39 {offsets = [0, 32], sizes = [64, 8], strides = [1, 1]} : vector<128x64xf32> to vector<64x8xf32>
    %cst_22 = arith.constant dense<0.000000e+00> : vector<64x64xf32>
    %42 = tpu.matmul %40, %41, %cst_22 {dimension_numbers = #tpu.dot_dimension_numbers<[1], [1], [0], [0], [0, 0, 1, 0], [], []>} : vector<64x8xf32>, vector<64x8xf32>, vector<64x64xf32> -> vector<64x64xf32>
    %cst_23 = arith.constant dense<0xFF800000> : vector<64xf32>
    %43 = vector.multi_reduction <maximumf>, %42, %cst_23 [1] : vector<64x64xf32> to vector<64xf32>
    %44 = vector.shape_cast %43 : vector<64xf32> to vector<64x1xf32>
    %45 = vector.broadcast %44 : vector<64x1xf32> to vector<64x64xf32>
    %46 = arith.subf %42, %45 : vector<64x64xf32>
    %47 = math.exp %46 : vector<64x64xf32>
    %cst_24 = arith.constant dense<0.000000e+00> : vector<64xf32>
    %48 = vector.multi_reduction <add>, %47, %cst_24 [1] : vector<64x64xf32> to vector<64xf32>
    %49 = vector.shape_cast %48 : vector<64xf32> to vector<64x1xf32>
    %50 = tpu.reciprocal %49 {approx = true} : vector<64x1xf32> -> vector<64x1xf32>
    %51 = vector.broadcast %50 : vector<64x1xf32> to vector<64x64xf32>
    %52 = arith.mulf %47, %51 : vector<64x64xf32>
    %53 = vector.extract_strided_slice %38 {offsets = [0, 0], sizes = [32, 64], strides = [1, 1]} : vector<128x128xf32> to vector<32x64xf32>
    %cst_25 = arith.constant dense<0.000000e+00> : vector<32x64xf32>
    %54 = tpu.matmul %53, %52, %cst_25 {dimension_numbers = #tpu.dot_dimension_numbers<[1], [1], [0], [0], [0, 0, 1, 0], [], []>} : vector<32x64xf32>, vector<64x64xf32>, vector<32x64xf32> -> vector<32x64xf32>
    %55 = vector.extract_strided_slice %39 {offsets = [0, 8], sizes = [64, 8], strides = [1, 1]} : vector<128x64xf32> to vector<64x8xf32>
    %56 = vector.extract_strided_slice %39 {offsets = [0, 40], sizes = [64, 8], strides = [1, 1]} : vector<128x64xf32> to vector<64x8xf32>
    %cst_26 = arith.constant dense<0.000000e+00> : vector<64x64xf32>
    %57 = tpu.matmul %55, %56, %cst_26 {dimension_numbers = #tpu.dot_dimension_numbers<[1], [1], [0], [0], [0, 0, 1, 0], [], []>} : vector<64x8xf32>, vector<64x8xf32>, vector<64x64xf32> -> vector<64x64xf32>
    %cst_27 = arith.constant dense<0xFF800000> : vector<64xf32>
    %58 = vector.multi_reduction <maximumf>, %57, %cst_27 [1] : vector<64x64xf32> to vector<64xf32>
    %59 = vector.shape_cast %58 : vector<64xf32> to vector<64x1xf32>
    %60 = vector.broadcast %59 : vector<64x1xf32> to vector<64x64xf32>
    %61 = arith.subf %57, %60 : vector<64x64xf32>
    %62 = math.exp %61 : vector<64x64xf32>
    %cst_28 = arith.constant dense<0.000000e+00> : vector<64xf32>
    %63 = vector.multi_reduction <add>, %62, %cst_28 [1] : vector<64x64xf32> to vector<64xf32>
    %64 = vector.shape_cast %63 : vector<64xf32> to vector<64x1xf32>
    %65 = tpu.reciprocal %64 {approx = true} : vector<64x1xf32> -> vector<64x1xf32>
    %66 = vector.broadcast %65 : vector<64x1xf32> to vector<64x64xf32>
    %67 = arith.mulf %62, %66 : vector<64x64xf32>
    %68 = vector.extract_strided_slice %38 {offsets = [32, 0], sizes = [32, 64], strides = [1, 1]} : vector<128x128xf32> to vector<32x64xf32>
    %cst_29 = arith.constant dense<0.000000e+00> : vector<32x64xf32>
    %69 = tpu.matmul %68, %67, %cst_29 {dimension_numbers = #tpu.dot_dimension_numbers<[1], [1], [0], [0], [0, 0, 1, 0], [], []>} : vector<32x64xf32>, vector<64x64xf32>, vector<32x64xf32> -> vector<32x64xf32>
    %70 = arith.addf %54, %69 : vector<32x64xf32>
    %71 = vector.extract_strided_slice %39 {offsets = [0, 16], sizes = [64, 8], strides = [1, 1]} : vector<128x64xf32> to vector<64x8xf32>
    %72 = vector.extract_strided_slice %39 {offsets = [0, 48], sizes = [64, 8], strides = [1, 1]} : vector<128x64xf32> to vector<64x8xf32>
    %cst_30 = arith.constant dense<0.000000e+00> : vector<64x64xf32>
    %73 = tpu.matmul %71, %72, %cst_30 {dimension_numbers = #tpu.dot_dimension_numbers<[1], [1], [0], [0], [0, 0, 1, 0], [], []>} : vector<64x8xf32>, vector<64x8xf32>, vector<64x64xf32> -> vector<64x64xf32>
    %cst_31 = arith.constant dense<0xFF800000> : vector<64xf32>
    %74 = vector.multi_reduction <maximumf>, %73, %cst_31 [1] : vector<64x64xf32> to vector<64xf32>
    %75 = vector.shape_cast %74 : vector<64xf32> to vector<64x1xf32>
    %76 = vector.broadcast %75 : vector<64x1xf32> to vector<64x64xf32>
    %77 = arith.subf %73, %76 : vector<64x64xf32>
    %78 = math.exp %77 : vector<64x64xf32>
    %cst_32 = arith.constant dense<0.000000e+00> : vector<64xf32>
    %79 = vector.multi_reduction <add>, %78, %cst_32 [1] : vector<64x64xf32> to vector<64xf32>
    %80 = vector.shape_cast %79 : vector<64xf32> to vector<64x1xf32>
    %81 = tpu.reciprocal %80 {approx = true} : vector<64x1xf32> -> vector<64x1xf32>
    %82 = vector.broadcast %81 : vector<64x1xf32> to vector<64x64xf32>
    %83 = arith.mulf %78, %82 : vector<64x64xf32>
    %84 = vector.extract_strided_slice %38 {offsets = [64, 0], sizes = [32, 64], strides = [1, 1]} : vector<128x128xf32> to vector<32x64xf32>
    %cst_33 = arith.constant dense<0.000000e+00> : vector<32x64xf32>
    %85 = tpu.matmul %84, %83, %cst_33 {dimension_numbers = #tpu.dot_dimension_numbers<[1], [1], [0], [0], [0, 0, 1, 0], [], []>} : vector<32x64xf32>, vector<64x64xf32>, vector<32x64xf32> -> vector<32x64xf32>
    %86 = arith.addf %70, %85 : vector<32x64xf32>
    %87 = vector.extract_strided_slice %39 {offsets = [0, 24], sizes = [64, 8], strides = [1, 1]} : vector<128x64xf32> to vector<64x8xf32>
    %88 = vector.extract_strided_slice %39 {offsets = [0, 56], sizes = [64, 8], strides = [1, 1]} : vector<128x64xf32> to vector<64x8xf32>
    %cst_34 = arith.constant dense<0.000000e+00> : vector<64x64xf32>
    %89 = tpu.matmul %87, %88, %cst_34 {dimension_numbers = #tpu.dot_dimension_numbers<[1], [1], [0], [0], [0, 0, 1, 0], [], []>} : vector<64x8xf32>, vector<64x8xf32>, vector<64x64xf32> -> vector<64x64xf32>
    %cst_35 = arith.constant dense<0xFF800000> : vector<64xf32>
    %90 = vector.multi_reduction <maximumf>, %89, %cst_35 [1] : vector<64x64xf32> to vector<64xf32>
    %91 = vector.shape_cast %90 : vector<64xf32> to vector<64x1xf32>
    %92 = vector.broadcast %91 : vector<64x1xf32> to vector<64x64xf32>
    %93 = arith.subf %89, %92 : vector<64x64xf32>
    %94 = math.exp %93 : vector<64x64xf32>
    %cst_36 = arith.constant dense<0.000000e+00> : vector<64xf32>
    %95 = vector.multi_reduction <add>, %94, %cst_36 [1] : vector<64x64xf32> to vector<64xf32>
    %96 = vector.shape_cast %95 : vector<64xf32> to vector<64x1xf32>
    %97 = tpu.reciprocal %96 {approx = true} : vector<64x1xf32> -> vector<64x1xf32>
    %98 = vector.broadcast %97 : vector<64x1xf32> to vector<64x64xf32>
    %99 = arith.mulf %94, %98 : vector<64x64xf32>
    %100 = vector.extract_strided_slice %38 {offsets = [96, 0], sizes = [32, 64], strides = [1, 1]} : vector<128x128xf32> to vector<32x64xf32>
    %cst_37 = arith.constant dense<0.000000e+00> : vector<32x64xf32>
    %101 = tpu.matmul %100, %99, %cst_37 {dimension_numbers = #tpu.dot_dimension_numbers<[1], [1], [0], [0], [0, 0, 1, 0], [], []>} : vector<32x64xf32>, vector<64x64xf32>, vector<32x64xf32> -> vector<32x64xf32>
    %102 = arith.addf %86, %101 : vector<32x64xf32>
    %103 = vector.extract_strided_slice %39 {offsets = [64, 0], sizes = [64, 8], strides = [1, 1]} : vector<128x64xf32> to vector<64x8xf32>
    %104 = vector.extract_strided_slice %39 {offsets = [64, 32], sizes = [64, 8], strides = [1, 1]} : vector<128x64xf32> to vector<64x8xf32>
    %cst_38 = arith.constant dense<0.000000e+00> : vector<64x64xf32>
    %105 = tpu.matmul %103, %104, %cst_38 {dimension_numbers = #tpu.dot_dimension_numbers<[1], [1], [0], [0], [0, 0, 1, 0], [], []>} : vector<64x8xf32>, vector<64x8xf32>, vector<64x64xf32> -> vector<64x64xf32>
    %cst_39 = arith.constant dense<0xFF800000> : vector<64xf32>
    %106 = vector.multi_reduction <maximumf>, %105, %cst_39 [1] : vector<64x64xf32> to vector<64xf32>
    %107 = vector.shape_cast %106 : vector<64xf32> to vector<64x1xf32>
    %108 = vector.broadcast %107 : vector<64x1xf32> to vector<64x64xf32>
    %109 = arith.subf %105, %108 : vector<64x64xf32>
    %110 = math.exp %109 : vector<64x64xf32>
    %cst_40 = arith.constant dense<0.000000e+00> : vector<64xf32>
    %111 = vector.multi_reduction <add>, %110, %cst_40 [1] : vector<64x64xf32> to vector<64xf32>
    %112 = vector.shape_cast %111 : vector<64xf32> to vector<64x1xf32>
    %113 = tpu.reciprocal %112 {approx = true} : vector<64x1xf32> -> vector<64x1xf32>
    %114 = vector.broadcast %113 : vector<64x1xf32> to vector<64x64xf32>
    %115 = arith.mulf %110, %114 : vector<64x64xf32>
    %116 = vector.extract_strided_slice %38 {offsets = [0, 64], sizes = [32, 64], strides = [1, 1]} : vector<128x128xf32> to vector<32x64xf32>
    %cst_41 = arith.constant dense<0.000000e+00> : vector<32x64xf32>
    %117 = tpu.matmul %116, %115, %cst_41 {dimension_numbers = #tpu.dot_dimension_numbers<[1], [1], [0], [0], [0, 0, 1, 0], [], []>} : vector<32x64xf32>, vector<64x64xf32>, vector<32x64xf32> -> vector<32x64xf32>
    %118 = vector.extract_strided_slice %39 {offsets = [64, 8], sizes = [64, 8], strides = [1, 1]} : vector<128x64xf32> to vector<64x8xf32>
    %119 = vector.extract_strided_slice %39 {offsets = [64, 40], sizes = [64, 8], strides = [1, 1]} : vector<128x64xf32> to vector<64x8xf32>
    %cst_42 = arith.constant dense<0.000000e+00> : vector<64x64xf32>
    %120 = tpu.matmul %118, %119, %cst_42 {dimension_numbers = #tpu.dot_dimension_numbers<[1], [1], [0], [0], [0, 0, 1, 0], [], []>} : vector<64x8xf32>, vector<64x8xf32>, vector<64x64xf32> -> vector<64x64xf32>
    %cst_43 = arith.constant dense<0xFF800000> : vector<64xf32>
    %121 = vector.multi_reduction <maximumf>, %120, %cst_43 [1] : vector<64x64xf32> to vector<64xf32>
    %122 = vector.shape_cast %121 : vector<64xf32> to vector<64x1xf32>
    %123 = vector.broadcast %122 : vector<64x1xf32> to vector<64x64xf32>
    %124 = arith.subf %120, %123 : vector<64x64xf32>
    %125 = math.exp %124 : vector<64x64xf32>
    %cst_44 = arith.constant dense<0.000000e+00> : vector<64xf32>
    %126 = vector.multi_reduction <add>, %125, %cst_44 [1] : vector<64x64xf32> to vector<64xf32>
    %127 = vector.shape_cast %126 : vector<64xf32> to vector<64x1xf32>
    %128 = tpu.reciprocal %127 {approx = true} : vector<64x1xf32> -> vector<64x1xf32>
    %129 = vector.broadcast %128 : vector<64x1xf32> to vector<64x64xf32>
    %130 = arith.mulf %125, %129 : vector<64x64xf32>
    %131 = vector.extract_strided_slice %38 {offsets = [32, 64], sizes = [32, 64], strides = [1, 1]} : vector<128x128xf32> to vector<32x64xf32>
    %cst_45 = arith.constant dense<0.000000e+00> : vector<32x64xf32>
    %132 = tpu.matmul %131, %130, %cst_45 {dimension_numbers = #tpu.dot_dimension_numbers<[1], [1], [0], [0], [0, 0, 1, 0], [], []>} : vector<32x64xf32>, vector<64x64xf32>, vector<32x64xf32> -> vector<32x64xf32>
    %133 = arith.addf %117, %132 : vector<32x64xf32>
    %134 = vector.extract_strided_slice %39 {offsets = [64, 16], sizes = [64, 8], strides = [1, 1]} : vector<128x64xf32> to vector<64x8xf32>
    %135 = vector.extract_strided_slice %39 {offsets = [64, 48], sizes = [64, 8], strides = [1, 1]} : vector<128x64xf32> to vector<64x8xf32>
    %cst_46 = arith.constant dense<0.000000e+00> : vector<64x64xf32>
    %136 = tpu.matmul %134, %135, %cst_46 {dimension_numbers = #tpu.dot_dimension_numbers<[1], [1], [0], [0], [0, 0, 1, 0], [], []>} : vector<64x8xf32>, vector<64x8xf32>, vector<64x64xf32> -> vector<64x64xf32>
    %cst_47 = arith.constant dense<0xFF800000> : vector<64xf32>
    %137 = vector.multi_reduction <maximumf>, %136, %cst_47 [1] : vector<64x64xf32> to vector<64xf32>
    %138 = vector.shape_cast %137 : vector<64xf32> to vector<64x1xf32>
    %139 = vector.broadcast %138 : vector<64x1xf32> to vector<64x64xf32>
    %140 = arith.subf %136, %139 : vector<64x64xf32>
    %141 = math.exp %140 : vector<64x64xf32>
    %cst_48 = arith.constant dense<0.000000e+00> : vector<64xf32>
    %142 = vector.multi_reduction <add>, %141, %cst_48 [1] : vector<64x64xf32> to vector<64xf32>
    %143 = vector.shape_cast %142 : vector<64xf32> to vector<64x1xf32>
    %144 = tpu.reciprocal %143 {approx = true} : vector<64x1xf32> -> vector<64x1xf32>
    %145 = vector.broadcast %144 : vector<64x1xf32> to vector<64x64xf32>
    %146 = arith.mulf %141, %145 : vector<64x64xf32>
    %147 = vector.extract_strided_slice %38 {offsets = [64, 64], sizes = [32, 64], strides = [1, 1]} : vector<128x128xf32> to vector<32x64xf32>
    %cst_49 = arith.constant dense<0.000000e+00> : vector<32x64xf32>
    %148 = tpu.matmul %147, %146, %cst_49 {dimension_numbers = #tpu.dot_dimension_numbers<[1], [1], [0], [0], [0, 0, 1, 0], [], []>} : vector<32x64xf32>, vector<64x64xf32>, vector<32x64xf32> -> vector<32x64xf32>
    %149 = arith.addf %133, %148 : vector<32x64xf32>
    %150 = vector.extract_strided_slice %39 {offsets = [64, 24], sizes = [64, 8], strides = [1, 1]} : vector<128x64xf32> to vector<64x8xf32>
    %151 = vector.extract_strided_slice %39 {offsets = [64, 56], sizes = [64, 8], strides = [1, 1]} : vector<128x64xf32> to vector<64x8xf32>
    %cst_50 = arith.constant dense<0.000000e+00> : vector<64x64xf32>
    %152 = tpu.matmul %150, %151, %cst_50 {dimension_numbers = #tpu.dot_dimension_numbers<[1], [1], [0], [0], [0, 0, 1, 0], [], []>} : vector<64x8xf32>, vector<64x8xf32>, vector<64x64xf32> -> vector<64x64xf32>
    %cst_51 = arith.constant dense<0xFF800000> : vector<64xf32>
    %153 = vector.multi_reduction <maximumf>, %152, %cst_51 [1] : vector<64x64xf32> to vector<64xf32>
    %154 = vector.shape_cast %153 : vector<64xf32> to vector<64x1xf32>
    %155 = vector.broadcast %154 : vector<64x1xf32> to vector<64x64xf32>
    %156 = arith.subf %152, %155 : vector<64x64xf32>
    %157 = math.exp %156 : vector<64x64xf32>
    %cst_52 = arith.constant dense<0.000000e+00> : vector<64xf32>
    %158 = vector.multi_reduction <add>, %157, %cst_52 [1] : vector<64x64xf32> to vector<64xf32>
    %159 = vector.shape_cast %158 : vector<64xf32> to vector<64x1xf32>
    %160 = tpu.reciprocal %159 {approx = true} : vector<64x1xf32> -> vector<64x1xf32>
    %161 = vector.broadcast %160 : vector<64x1xf32> to vector<64x64xf32>
    %162 = arith.mulf %157, %161 : vector<64x64xf32>
    %163 = vector.extract_strided_slice %38 {offsets = [96, 64], sizes = [32, 64], strides = [1, 1]} : vector<128x128xf32> to vector<32x64xf32>
    %cst_53 = arith.constant dense<0.000000e+00> : vector<32x64xf32>
    %164 = tpu.matmul %163, %162, %cst_53 {dimension_numbers = #tpu.dot_dimension_numbers<[1], [1], [0], [0], [0, 0, 1, 0], [], []>} : vector<32x64xf32>, vector<64x64xf32>, vector<32x64xf32> -> vector<32x64xf32>
    %165 = arith.addf %149, %164 : vector<32x64xf32>
    %166 = tpu.concatenate %102, %165 in 1 : vector<32x64xf32>, vector<32x64xf32> -> vector<32x128xf32>
    %c0_54 = arith.constant 0 : index
    %c0_55 = arith.constant 0 : index
    %167 = vector.load %arg8[%c0_54, %c0_55] : memref<32x1xf32, #tpu.memory_space<vmem>>, vector<32x1xf32>
    %168 = vector.broadcast %167 : vector<32x1xf32> to vector<32x128xf32>
    %169 = arith.addf %166, %168 : vector<32x128xf32>
    %170 = arith.addf %169, %4 : vector<32x128xf32>
    %cst_56 = arith.constant dense<0.000000e+00> : vector<128xf32>
    %171 = vector.multi_reduction <add>, %170, %cst_56 [0] : vector<32x128xf32> to vector<128xf32>
    %172 = vector.shape_cast %171 : vector<128xf32> to vector<1x128xf32>
    %cst_57 = arith.constant 3.200000e+01 : f32
    %173 = vector.broadcast %cst_57 : f32 to vector<1x128xf32>
    %174 = arith.divf %172, %173 : vector<1x128xf32>
    %175 = vector.broadcast %174 : vector<1x128xf32> to vector<32x128xf32>
    %176 = arith.subf %170, %175 : vector<32x128xf32>
    %177 = arith.mulf %176, %176 : vector<32x128xf32>
    %cst_58 = arith.constant dense<0.000000e+00> : vector<128xf32>
    %178 = vector.multi_reduction <add>, %177, %cst_58 [0] : vector<32x128xf32> to vector<128xf32>
    %179 = vector.shape_cast %178 : vector<128xf32> to vector<1x128xf32>
    %cst_59 = arith.constant 3.200000e+01 : f32
    %180 = vector.broadcast %cst_59 : f32 to vector<1x128xf32>
    %181 = arith.divf %179, %180 : vector<1x128xf32>
    %182 = vector.broadcast %174 : vector<1x128xf32> to vector<32x128xf32>
    %183 = arith.subf %170, %182 : vector<32x128xf32>
    %cst_60 = arith.constant 9.99999974E-6 : f32
    %184 = vector.broadcast %cst_60 : f32 to vector<1x128xf32>
    %185 = arith.addf %181, %184 : vector<1x128xf32>
    %186 = math.rsqrt %185 : vector<1x128xf32>
    %187 = vector.broadcast %186 : vector<1x128xf32> to vector<32x128xf32>
    %188 = arith.mulf %183, %187 : vector<32x128xf32>
    %c0_61 = arith.constant 0 : index
    %c0_62 = arith.constant 0 : index
    %189 = vector.load %arg9[%c0_61, %c0_62] : memref<32x1xf32, #tpu.memory_space<vmem>>, vector<32x1xf32>
    %190 = vector.broadcast %189 : vector<32x1xf32> to vector<32x128xf32>
    %191 = arith.mulf %188, %190 : vector<32x128xf32>
    %c0_63 = arith.constant 0 : index
    %c0_64 = arith.constant 0 : index
    %192 = vector.load %arg10[%c0_63, %c0_64] : memref<32x1xf32, #tpu.memory_space<vmem>>, vector<32x1xf32>
    %193 = vector.broadcast %192 : vector<32x1xf32> to vector<32x128xf32>
    %194 = arith.addf %191, %193 : vector<32x128xf32>
    %c0_65 = arith.constant 0 : index
    %c0_66 = arith.constant 0 : index
    %195 = vector.load %arg11[%c0_65, %c0_66] : memref<32x32xf32, #tpu.memory_space<vmem>>, vector<32x32xf32>
    %cst_67 = arith.constant dense<0.000000e+00> : vector<32x128xf32>
    %196 = tpu.matmul %195, %194, %cst_67 {dimension_numbers = #tpu.dot_dimension_numbers<[1], [0], [0], [1], [0, 0, 1, 1], [], []>} : vector<32x32xf32>, vector<32x128xf32>, vector<32x128xf32> -> vector<32x128xf32>
    %c0_68 = arith.constant 0 : index
    %c0_69 = arith.constant 0 : index
    %197 = vector.load %arg12[%c0_68, %c0_69] : memref<32x1xf32, #tpu.memory_space<vmem>>, vector<32x1xf32>
    %198 = vector.broadcast %197 : vector<32x1xf32> to vector<32x128xf32>
    %199 = arith.addf %196, %198 : vector<32x128xf32>
    %cst_70 = arith.constant 5.000000e-01 : f32
    %200 = vector.broadcast %cst_70 : f32 to vector<32x128xf32>
    %201 = arith.mulf %200, %199 : vector<32x128xf32>
    %cst_71 = arith.constant 0.707106769 : f32
    %202 = vector.broadcast %cst_71 : f32 to vector<32x128xf32>
    %203 = arith.mulf %199, %202 : vector<32x128xf32>
    %204 = math.erf %203 : vector<32x128xf32>
    %cst_72 = arith.constant 1.000000e+00 : f32
    %205 = vector.broadcast %cst_72 : f32 to vector<32x128xf32>
    %206 = arith.addf %205, %204 : vector<32x128xf32>
    %207 = arith.mulf %201, %206 : vector<32x128xf32>
    %c0_73 = arith.constant 0 : index
    %c0_74 = arith.constant 0 : index
    %208 = vector.load %arg13[%c0_73, %c0_74] : memref<32x32xf32, #tpu.memory_space<vmem>>, vector<32x32xf32>
    %cst_75 = arith.constant dense<0.000000e+00> : vector<32x128xf32>
    %209 = tpu.matmul %208, %207, %cst_75 {dimension_numbers = #tpu.dot_dimension_numbers<[1], [0], [0], [1], [0, 0, 1, 1], [], []>} : vector<32x32xf32>, vector<32x128xf32>, vector<32x128xf32> -> vector<32x128xf32>
    %c0_76 = arith.constant 0 : index
    %c0_77 = arith.constant 0 : index
    %210 = vector.load %arg14[%c0_76, %c0_77] : memref<32x1xf32, #tpu.memory_space<vmem>>, vector<32x1xf32>
    %211 = vector.broadcast %210 : vector<32x1xf32> to vector<32x128xf32>
    %212 = arith.addf %209, %211 : vector<32x128xf32>
    %213 = arith.addf %212, %170 : vector<32x128xf32>
    %214 = vector.extract_strided_slice %213 {offsets = [0, 0], sizes = [32, 64], strides = [1, 1]} : vector<32x128xf32> to vector<32x64xf32>
    %c0_78 = arith.constant 0 : index
    %c0_79 = arith.constant 0 : index
    %c0_80 = arith.constant 0 : index
    %215 = vector.load %arg15[%c0_78, %c0_79, %c0_80] : memref<2x32x64xf32, #tpu.memory_space<vmem>>, vector<1x32x64xf32>
    %216 = vector.shape_cast %215 : vector<1x32x64xf32> to vector<32x64xf32>
    %217 = vector.shape_cast %214 : vector<32x64xf32> to vector<1x32x64xf32>
    tpu.vector_store %arg15[%c0_78, %c0_79, %c0_80], %217 {strides = array<i32>} : memref<2x32x64xf32, #tpu.memory_space<vmem>>, vector<1x32x64xf32>,
    %218 = vector.extract_strided_slice %213 {offsets = [0, 64], sizes = [32, 64], strides = [1, 1]} : vector<32x128xf32> to vector<32x64xf32>
    %c1_81 = arith.constant 1 : index
    %c0_82 = arith.constant 0 : index
    %c0_83 = arith.constant 0 : index
    %219 = vector.load %arg15[%c1_81, %c0_82, %c0_83] : memref<2x32x64xf32, #tpu.memory_space<vmem>>, vector<1x32x64xf32>
    %220 = vector.shape_cast %219 : vector<1x32x64xf32> to vector<32x64xf32>
    %221 = vector.shape_cast %218 : vector<32x64xf32> to vector<1x32x64xf32>
    tpu.vector_store %arg15[%c1_81, %c0_82, %c0_83], %221 {strides = array<i32>} : memref<2x32x64xf32, #tpu.memory_space<vmem>>, vector<1x32x64xf32>,
    return
  }
  func.func @transform_0(%arg0: i32) -> (i32, i32, i32) {
    %c0_i32 = arith.constant 0 : i32
    %c0_i32_0 = arith.constant 0 : i32
    %c0_i32_1 = arith.constant 0 : i32
    return %arg0, %c0_i32, %c0_i32_0 : i32, i32, i32
  }
  func.func @transform_1(%arg0: i32) -> (i32, i32) {
    %c0_i32 = arith.constant 0 : i32
    %c0_i32_0 = arith.constant 0 : i32
    %c0_i32_1 = arith.constant 0 : i32
    return %c0_i32, %c0_i32_0 : i32, i32
  }
  func.func @transform_2(%arg0: i32) -> (i32, i32) {
    %c0_i32 = arith.constant 0 : i32
    %c0_i32_0 = arith.constant 0 : i32
    %c0_i32_1 = arith.constant 0 : i32
    return %c0_i32, %c0_i32_0 : i32, i32
  }
  func.func @transform_3(%arg0: i32) -> (i32, i32) {
    %c0_i32 = arith.constant 0 : i32
    %c0_i32_0 = arith.constant 0 : i32
    %c0_i32_1 = arith.constant 0 : i32
    return %c0_i32, %c0_i32_0 : i32, i32
  }
  func.func @transform_4(%arg0: i32) -> (i32, i32) {
    %c0_i32 = arith.constant 0 : i32
    %c0_i32_0 = arith.constant 0 : i32
    %c0_i32_1 = arith.constant 0 : i32
    return %c0_i32, %c0_i32_0 : i32, i32
  }
  func.func @transform_5(%arg0: i32) -> (i32, i32) {
    %c0_i32 = arith.constant 0 : i32
    %c0_i32_0 = arith.constant 0 : i32
    %c0_i32_1 = arith.constant 0 : i32
    return %c0_i32, %c0_i32_0 : i32, i32
  }
  func.func @transform_6(%arg0: i32) -> (i32, i32) {
    %c0_i32 = arith.constant 0 : i32
    %c0_i32_0 = arith.constant 0 : i32
    %c0_i32_1 = arith.constant 0 : i32
    return %c0_i32, %c0_i32_0 : i32, i32
  }
  func.func @transform_7(%arg0: i32) -> (i32, i32) {
    %c0_i32 = arith.constant 0 : i32
    %c0_i32_0 = arith.constant 0 : i32
    %c0_i32_1 = arith.constant 0 : i32
    return %c0_i32, %c0_i32_0 : i32, i32
  }
  func.func @transform_8(%arg0: i32) -> (i32, i32) {
    %c0_i32 = arith.constant 0 : i32
    %c0_i32_0 = arith.constant 0 : i32
    %c0_i32_1 = arith.constant 0 : i32
    return %c0_i32, %c0_i32_0 : i32, i32
  }
  func.func @transform_9(%arg0: i32) -> (i32, i32) {
    %c0_i32 = arith.constant 0 : i32
    %c0_i32_0 = arith.constant 0 : i32
    %c0_i32_1 = arith.constant 0 : i32
    return %c0_i32, %c0_i32_0 : i32, i32
  }
  func.func @transform_10(%arg0: i32) -> (i32, i32) {
    %c0_i32 = arith.constant 0 : i32
    %c0_i32_0 = arith.constant 0 : i32
    %c0_i32_1 = arith.constant 0 : i32
    return %c0_i32, %c0_i32_0 : i32, i32
  }
  func.func @transform_11(%arg0: i32) -> (i32, i32) {
    %c0_i32 = arith.constant 0 : i32
    %c0_i32_0 = arith.constant 0 : i32
    %c0_i32_1 = arith.constant 0 : i32
    return %c0_i32, %c0_i32_0 : i32, i32
  }
  func.func @transform_12(%arg0: i32) -> (i32, i32) {
    %c0_i32 = arith.constant 0 : i32
    %c0_i32_0 = arith.constant 0 : i32
    %c0_i32_1 = arith.constant 0 : i32
    return %c0_i32, %c0_i32_0 : i32, i32
  }
  func.func @transform_13(%arg0: i32) -> (i32, i32) {
    %c0_i32 = arith.constant 0 : i32
    %c0_i32_0 = arith.constant 0 : i32
    %c0_i32_1 = arith.constant 0 : i32
    return %c0_i32, %c0_i32_0 : i32, i32
  }
  func.func @transform_14(%arg0: i32) -> (i32, i32, i32) {
    %c0_i32 = arith.constant 0 : i32
    %c0_i32_0 = arith.constant 0 : i32
    %c0_i32_1 = arith.constant 0 : i32
    return %arg0, %c0_i32, %c0_i32_0 : i32, i32, i32
  }
}

</mosaic_0001>

<bundles_post_ra>
// kernel: _sa_forward.1
= control target key start
LH: loop header
LB: loop body
LE: loop exit
PB: predicated region body
PF: predicated region fallthrough
CT: control target
= control target key end

     0   :  { %v6073_v2 = vmov 0   ;;  %s6074_s17 = smov 64   ;;  %vm224_vm0 = vcmask 261120   ;;  %vm72_vm1 = vcmask 523264   ;;  %vm715_vm2 = vcmask 64512   ;;  %s6075_s19 = smov 120   ;;  %s8164_s0 = inlined_call_operand.vmem [shape: f32[2,32,64], index: 0, kind: input, shape index: {}]   ;;  %s8165_s1 = inlined_call_operand.vmem [shape: f32[32,1], index: 1, kind: input, shape index: {}]   ;;  %s8166_s2 = inlined_call_operand.vmem [shape: f32[32,1], index: 2, kind: input, shape index: {}]   ;;  %s8167_s4 = inlined_call_operand.vmem [shape: f32[64,1], index: 4, kind: input, shape index: {}]   ;;  %s8168_s3 = inlined_call_operand.vmem [shape: f32[64,32], index: 3, kind: input, shape index: {}]   ;;  %s8169_s5 = inlined_call_operand.vmem [shape: f32[128,32], index: 5, kind: input, shape index: {}]   ;;  %s8170_s6 = inlined_call_operand.vmem [shape: f32[128,1], index: 6, kind: input, shape index: {}]   ;;  %s8171_s7 = inlined_call_operand.vmem [shape: f32[32,1], index: 7, kind: input, shape index: {}]   ;;  %s8172_s8 = inlined_call_operand.vmem [shape: f32[32,1], index: 8, kind: input, shape index: {}]   ;;  %s8173_s9 = inlined_call_operand.vmem [shape: f32[32,1], index: 9, kind: input, shape index: {}]   ;;  %s8174_s11 = inlined_call_operand.vmem [shape: f32[32,1], index: 11, kind: input, shape index: {}]   ;;  %s8175_s13 = inlined_call_operand.vmem [shape: f32[32,1], index: 13, kind: input, shape index: {}]   ;;  %s8176_s10 = inlined_call_operand.vmem [shape: f32[32,32], index: 10, kind: input, shape index: {}]   ;;  %s8177_s12 = inlined_call_operand.vmem [shape: f32[32,32], index: 12, kind: input, shape index: {}]   ;;  %s8178_s14 = inlined_call_operand.vmem [shape: f32[2,32,64], index: 14, kind: output, shape index: {}]  }
   0x1   :  { %v4177_v0 = vld [vmem:[%s8164_s0 + $0x20] sm:$0xff]  ;;  %v4179_v1 = vld [vmem:[%s8164_s0 + $0x30] sm:$0xff]  ;;  %5644 = vset.pattern.permute.xlu1 %v6073_v2  ;;  %5643 = vset.pattern.permute.xlu0 %v6073_v2  ;;  %v4178_v3 = vld [vmem:[%s8164_s0 + $0x28] sm:$0xff]  ;;  %s6076_s20 = smov 88   ;;  %s6078_s21 = smov 80  }
   0x2   :  { %60 = vrot.lane.b32.xlu0 %v4177_v0, %s6074_s17  ;;  %64 = vrot.lane.b32.xlu1 %v4179_v1, %s6074_s17  ;;  %v4180_v4 = vld [vmem:[%s8164_s0 + $0x38] sm:$0xff]  ;;  %v113_v5 = vld [vmem:[%s8165_s1 + $0x8] sm:$0xff]  ;;  %s6079_s22 = smov 104   ;;  %s6080_s23 = smov 72   ;;  %vm6477_vm3 = vmpackc.low %vm715_vm2, %vm715_vm2 }
   0x3   :  { %v112_v6 = vld [vmem:[%s8165_s1] sm:$0xff]  ;;  %v141_v8 = vld [vmem:[%s8166_s2 + $0x8] sm:$0xff]  ;;  %v114_v9 = vld [vmem:[%s8165_s1 + $0x10] sm:$0xff]  ;;  %s6081_s24 = smov 112  }
   0x4   :  { %v140_v7 = vld [vmem:[%s8166_s2] sm:$0xff]  ;;  %v115_v10 = vld [vmem:[%s8165_s1 + $0x18] sm:$0xff]  ;;  %v142_v11 = vld [vmem:[%s8166_s2 + $0x10] sm:$0xff] }
   0x5   :  { %v143_v12 = vld [vmem:[%s8166_s2 + $0x18] sm:$0xff]  ;;  %v176_v13 = vld [vmem:[%s8167_s4] sm:$0xff]  ;;  %v177_v14 = vld [vmem:[%s8167_s4 + $0x8] sm:$0xff] }
   0x6   :  { %62 = vrot.lane.b32.xlu0 %v4178_v3, %s6074_s17  ;;  %66 = vrot.lane.b32.xlu1 %v4180_v4, %s6074_s17  ;;  %v178_v15 = vld [vmem:[%s8167_s4 + $0x10] sm:$0xff]  ;;  %v179_v16 = vld [vmem:[%s8167_s4 + $0x18] sm:$0xff]  ;;  %vm7464_vm4 = vmpackc.low %vm72_vm1, %vm72_vm1 }
   0x7   :  { %v180_v17 = vld [vmem:[%s8167_s4 + $0x20] sm:$0xff]  ;;  %v181_v18 = vld [vmem:[%s8167_s4 + $0x28] sm:$0xff]  ;;  %v182_v19 = vld [vmem:[%s8167_s4 + $0x30] sm:$0xff] }
   0x8   :  { %v183_v20 = vld [vmem:[%s8167_s4 + $0x38] sm:$0xff]  ;;  %v168_v21 = vld [vmem:[%s8168_s3] sm:$0xff]  ;;  %v48_v25 = vld [vmem:[%s8164_s0 + $0x8] sm:$0xff] }
   0x9   :  { %4721 = vmatprep.mubr.msk.f32.mxu0 %vm224_vm0, %v168_v21  ;;  %v47_v24 = vld [vmem:[%s8164_s0] sm:$0xff]  ;;  %v49_v26 = vld [vmem:[%s8164_s0 + $0x10] sm:$0xff]  ;;  %v50_v29 = vld [vmem:[%s8164_s0 + $0x18] sm:$0xff] }
   0xa   :  { %123 = vperm.xlu1 %5644, %v113_v5   ;;  %118 = vperm.xlu0 %5643, %v112_v6  }
   0xe   :  { %146 = vperm.xlu1 %5644, %v140_v7   ;;  %151 = vperm.xlu0 %5643, %v141_v8  }
  0x12   :  { %128 = vperm.xlu1 %5644, %v114_v9   ;;  %133 = vperm.xlu0 %5643, %v115_v10  }
  0x16   :  { %156 = vperm.xlu1 %5644, %v142_v11   ;;  %161 = vperm.xlu0 %5643, %v143_v12  }
  0x1a   :  { %186 = vperm.xlu1 %5644, %v176_v13   ;;  %191 = vperm.xlu0 %5643, %v177_v14  }
  0x1e   :  { %196 = vperm.xlu1 %5644, %v178_v15   ;;  %201 = vperm.xlu0 %5643, %v179_v16  }
  0x22   :  { %206 = vperm.xlu1 %5644, %v180_v17   ;;  %211 = vperm.xlu0 %5643, %v181_v18  }
  0x26   :  { %216 = vperm.xlu1 %5644, %v182_v19   ;;  %221 = vperm.xlu0 %5643, %v183_v20  }
  0x74   :  { %v61_v22 = vpop.permute.xlu0 %60  ;;  %v65_v23 = vpop.permute.xlu1 %64 }
  0x75   :  { %v6238_v30 = vsel %vm72_vm1, %v47_v24, %v61_v22  ;;  %v6246_v33 = vsel %vm72_vm1, %v49_v26, %v65_v23  ;;  %v169_v22 = vld [vmem:[%s8168_s3 + $0x8] sm:$0xff]  ;;  %v170_v23 = vld [vmem:[%s8168_s3 + $0x10] sm:$0xff]  ;;  %v171_v24 = vld [vmem:[%s8168_s3 + $0x18] sm:$0xff] }
  0x76   :  { %8220 = vst [vmem:[#allocation2_spill] sm:$0xff] %v6238_v30  ;;  %8222 = vst [vmem:[#allocation4_spill] sm:$0xff] %v6246_v33  ;;  %v173_v26 = vld [vmem:[%s8168_s3 + $0x28] sm:$0xff] }
  0x78   :  { %v63_v27 = vpop.permute.xlu0 %62  ;;  %v67_v28 = vpop.permute.xlu1 %66 }
  0x79   :  { %v6241_v31 = vsel %vm72_vm1, %v48_v25, %v63_v27  ;;  %v6249_v34 = vsel %vm72_vm1, %v50_v29, %v67_v28  ;;  %v172_v25 = vld [vmem:[%s8168_s3 + $0x20] sm:$0xff]  ;;  %v174_v27 = vld [vmem:[%s8168_s3 + $0x30] sm:$0xff]  ;;  %v175_v28 = vld [vmem:[%s8168_s3 + $0x38] sm:$0xff] }
  0x7a   :  { %8221 = vst [vmem:[#allocation3_spill] sm:$0xff] %v6241_v31  ;;  %v77_v32 = vadd.f32 %v6241_v31, %v6238_v30  ;;  %8223 = vst [vmem:[#allocation5_spill] sm:$0xff] %v6249_v34 }
  0x7c   :  { %v78_v35 = vadd.f32 %v77_v32, %v6246_v33 }
  0x7e   :  { %v79_v36 = vadd.f32 %v78_v35, %v6249_v34 }
  0x80   :  { %v80_v37 = vrot.slane %v79_v36, 4 }
  0x82   :  { %v81_v38 = vadd.f32 %v80_v37, %v79_v36 }
  0x84   :  { %v82_v39 = vrot.slane %v81_v38, 2 }
  0x86   :  { %v83_v40 = vadd.f32 %v82_v39, %v81_v38 }
  0x88   :  { %v84_v41 = vrot.slane %v83_v40, 1 }
  0x89   :  { %v124_v61 = vpop.permute.xlu1 %123  ;;  %v119_v63 = vpop.permute.xlu0 %118 }
  0x8a   :  { %v85_v42 = vadd.f32 %v84_v41, %v83_v40 }
  0x8c   :  { %v87_v43 = vmul.f32 0.03125, %v85_v42 }
  0x8d   :  { %v147_v1 = vpop.permute.xlu1 %146  ;;  %v152_v2 = vpop.permute.xlu0 %151 }
  0x8e   :  { %v88_v44 = vsub.f32 %v6238_v30, %v87_v43  ;;  %v90_v45 = vsub.f32 %v6246_v33, %v87_v43  ;;  %v89_v46 = vsub.f32 %v6241_v31, %v87_v43  ;;  %v91_v47 = vsub.f32 %v6249_v34, %v87_v43 }
  0x90   :  { %v92_v48 = vmul.f32 %v88_v44, %v88_v44  ;;  %v93_v49 = vmul.f32 %v89_v46, %v89_v46  ;;  %v94_v50 = vmul.f32 %v90_v45, %v90_v45  ;;  %v95_v52 = vmul.f32 %v91_v47, %v91_v47 }
  0x91   :  { %v129_v3 = vpop.permute.xlu1 %128  ;;  %v134_v4 = vpop.permute.xlu0 %133 }
  0x92   :  { %v96_v51 = vadd.f32 %v93_v49, %v92_v48 }
  0x94   :  { %v97_v53 = vadd.f32 %v96_v51, %v94_v50 }
  0x95   :  { %v157_v14 = vpop.permute.xlu1 %156  ;;  %v162_v15 = vpop.permute.xlu0 %161 }
  0x96   :  { %v98_v54 = vadd.f32 %v97_v53, %v95_v52 }
  0x98   :  { %v99_v55 = vrot.slane %v98_v54, 4 }
  0x99   :  { %v187_v32 = vpop.permute.xlu1 %186  ;;  %v192_v38 = vpop.permute.xlu0 %191 }
  0x9a   :  { %v100_v56 = vadd.f32 %v99_v55, %v98_v54 }
  0x9c   :  { %v101_v57 = vrot.slane %v100_v56, 2 }
  0x9d   :  { %v197_v42 = vpop.permute.xlu1 %196 }
  0x9e   :  { %v102_v58 = vadd.f32 %v101_v57, %v100_v56  ;;  %v354_v57 = vld [vmem:[%s8169_s5] sm:$0xff] }
  0x9f   :  { %4741 = vmatprep.mubr.msk.f32.mxu1 %vm224_vm0, %v354_v57 }
  0xa0   :  { %v103_v59 = vrot.slane %v102_v58, 1 }
  0xa1   :  { %v207_v49 = vpop.permute.xlu1 %206 }
  0xa2   :  { %v104_v60 = vadd.f32 %v103_v59, %v102_v58  ;;  %v355_v58 = vld [vmem:[%s8169_s5 + $0x8] sm:$0xff]  ;;  %v356_v59 = vld [vmem:[%s8169_s5 + $0x10] sm:$0xff] }
  0xa4   :  { %v105_v62 = vmul.f32 0.03125, %v104_v60  ;;  %v357_v60 = vld [vmem:[%s8169_s5 + $0x18] sm:$0xff] }
  0xa5   :  { %v217_v53 = vpop.permute.xlu1 %216 }
  0xa6   :  { %v106_v0 = vadd.f32 1e-05, %v105_v62  ;;  %v359_v62 = vld [vmem:[%s8169_s5 + $0x28] sm:$0xff] }
  0xa8   :  { %5805 = vrsqrt.f32 %v106_v0  ;;  %v361_v0 = vld [vmem:[%s8169_s5 + $0x38] sm:$0xff] }
  0xb2   :  { %v5806_v5 = vpop.eup %5805 }
  0xb3   :  { %v109_v6 = vmul.f32 %v5806_v5, %v89_v46  ;;  %v108_v7 = vmul.f32 %v5806_v5, %v88_v44  ;;  %v110_v8 = vmul.f32 %v5806_v5, %v90_v45  ;;  %v111_v9 = vmul.f32 %v5806_v5, %v91_v47  ;;  %v202_v46 = vpop.permute.xlu0 %201  ;;  %v366_v5 = vld [vmem:[%s8169_s5 + $0x60] sm:$0xff] }
  0xb5   :  { %v137_v10 = vmul.f32 %v124_v61, %v109_v6  ;;  %v136_v11 = vmul.f32 %v119_v63, %v108_v7  ;;  %v138_v12 = vmul.f32 %v129_v3, %v110_v8  ;;  %v139_v13 = vmul.f32 %v134_v4, %v111_v9  ;;  %v358_v61 = vld [vmem:[%s8169_s5 + $0x20] sm:$0xff]  ;;  %v360_v63 = vld [vmem:[%s8169_s5 + $0x30] sm:$0xff]  ;;  %v365_v4 = vld [vmem:[%s8169_s5 + $0x58] sm:$0xff] }
  0xb6   :  { %v364_v3 = vld [vmem:[%s8169_s5 + $0x50] sm:$0xff]  ;;  %v367_v6 = vld [vmem:[%s8169_s5 + $0x68] sm:$0xff]  ;;  %v369_v8 = vld [vmem:[%s8169_s5 + $0x78] sm:$0xff] }
  0xb7   :  { %v164_v16 = vadd.f32 %v147_v1, %v136_v11  ;;  %v165_v17 = vadd.f32 %v152_v2, %v137_v10  ;;  %v166_v18 = vadd.f32 %v157_v14, %v138_v12  ;;  %v167_v19 = vadd.f32 %v162_v15, %v139_v13  ;;  %v212_v51 = vpop.permute.xlu0 %211  ;;  %v362_v1 = vld [vmem:[%s8169_s5 + $0x40] sm:$0xff]  ;;  %v363_v2 = vld [vmem:[%s8169_s5 + $0x48] sm:$0xff]  ;;  %v368_v7 = vld [vmem:[%s8169_s5 + $0x70] sm:$0xff]  ;;  %s6077_s5 = smov 96  }
  0xb9   :  { %v5193_v20 = vpack.c.bf16 %v165_v17, %v164_v16  ;;  %v5197_v21 = vpack.c.bf16 %v167_v19, %v166_v18 }
  0xbb   :  { %5194 = vmatprep.subr.bf16.mxu0 %v5193_v20  ;;  %5202 = vmatprep.subr.bf16.mxu1 %v5193_v20  ;;  %v222_v55 = vpop.permute.xlu0 %221 }
  0xbc   :  { %5196 = vmatpush3.bf16.msra.mxu0 %v5193_v20  ;;  %5204 = vmatpush3.bf16.msra.mxu1 %v5193_v20 }
  0xbd   :  { %5198 = vmatprep.subr.bf16.mxu0 %v5197_v21  ;;  %5206 = vmatprep.subr.bf16.mxu1 %v5197_v21 }
  0xc0   :  { %5200 = vmatpush3.bf16.msra.mxu0 %v5197_v21  ;;  %5208 = vmatpush3.bf16.msra.mxu1 %v5197_v21 }
  0xc3   :  { %4722 = vmatmul.mubr.msk.f32.vlgmr.msra.gmra.mrb[0].mxu0 %vm224_vm0, %v169_v22  ;;  %4742 = vmatmul.mubr.msk.f32.vlgmr.msra.gmra.mrb[0].mxu1 %vm224_vm0, %v355_v58 }
  0xc4   :  { %4724 = vmatprep.mubr.msk.f32.mxu0 %vm224_vm0, %v170_v23  ;;  %4744 = vmatprep.mubr.msk.f32.mxu1 %vm224_vm0, %v356_v59 }
  0xc7   :  { %4725 = vmatmul.mubr.msk.f32.gmra.mrb[2].mxu0 %vm224_vm0, %v171_v24  ;;  %4745 = vmatmul.mubr.msk.f32.gmra.mrb[2].mxu1 %vm224_vm0, %v357_v60  ;;  %v378_v60 = vld [vmem:[%s8170_s6 + $0x40] sm:$0xff] }
  0xc8   :  { %4727 = vmatprep.mubr.msk.f32.mxu0 %vm224_vm0, %v172_v25  ;;  %4747 = vmatprep.mubr.msk.f32.mxu1 %vm224_vm0, %v358_v61 }
  0xcb   :  { %4728 = vmatmul.mubr.msk.f32.gmra.mrb[4].mxu0 %vm224_vm0, %v173_v26  ;;  %4748 = vmatmul.mubr.msk.f32.gmra.mrb[4].mxu1 %vm224_vm0, %v359_v62 }
  0xcc   :  { %4730 = vmatprep.mubr.msk.f32.mxu0 %vm224_vm0, %v174_v27  ;;  %4750 = vmatprep.mubr.msk.f32.mxu1 %vm224_vm0, %v360_v63 }
  0xcf   :  { %4731 = vmatmul.mubr.msk.f32.gmra.mrb[6].mxu0 %vm224_vm0, %v175_v28  ;;  %4751 = vmatmul.mubr.msk.f32.gmra.mrb[6].mxu1 %vm224_vm0, %v361_v0  ;;  %v381_v0 = vld [vmem:[%s8170_s6 + $0x58] sm:$0xff] }
  0xd0   :  { %4753 = vmatprep.mubr.msk.f32.mxu1 %vm224_vm0, %v362_v1 }
  0xd3   :  { %4754 = vmatmul.mubr.msk.f32.gmra.mrb[8].mxu1 %vm224_vm0, %v363_v2 }
  0xd4   :  { %4756 = vmatprep.mubr.msk.f32.mxu1 %vm224_vm0, %v364_v3 }
  0xd7   :  { %4757 = vmatmul.mubr.msk.f32.gmra.mrb[10].mxu1 %vm224_vm0, %v365_v4 }
  0xd8   :  { %4759 = vmatprep.mubr.msk.f32.mxu1 %vm224_vm0, %v366_v5 }
  0xdb   :  { %4760 = vmatmul.mubr.msk.f32.gmra.mrb[12].mxu1 %vm224_vm0, %v367_v6  ;;  %v383_v6 = vld [vmem:[%s8170_s6 + $0x68] sm:$0xff] }
  0xdc   :  { %4762 = vmatprep.mubr.msk.f32.mxu1 %vm224_vm0, %v368_v7 }
  0xdf   :  { %4763 = vmatmul.mubr.msk.f32.gmra.mrb[14].mxu1 %vm224_vm0, %v369_v8 }
 0x196   :  { %v4723_v29 = vpop.f32.mrb[0].mxu0 }
 0x197   :  { %v315_v35 = vpop.f32.mrb[1].mxu0  ;;  %v321_v40 = vadd.f32 %v4723_v29, %v192_v38 }
 0x198   :  { %v316_v36 = vadd.f32 %v315_v35, %v187_v32 }
 0x19a   :  { %v4726_v37 = vpop.f32.mrb[2].mxu0  ;;  %659 = vxpose.xlu1.b32.start [1/8] (short) %v316_v36, 128 }
 0x19b   :  { %v325_v39 = vpop.f32.mrb[3].mxu0  ;;  %v331_v48 = vadd.f32 %v4726_v37, %v202_v46 }
 0x19c   :  { %v326_v44 = vadd.f32 %v325_v39, %v197_v42 }
 0x19e   :  { %v4729_v41 = vpop.f32.mrb[4].mxu0  ;;  %660 = vxpose.xlu1.b32.cont [2/8] (short) %v321_v40, 128 }
 0x19f   :  { %v335_v43 = vpop.f32.mrb[5].mxu0  ;;  %v341_v52 = vadd.f32 %v4729_v41, %v212_v51 }
 0x1a0   :  { %v336_v50 = vadd.f32 %v335_v43, %v207_v49  ;;  %v6485_v43 = vpop.f32.mrb[0].mxu1 }
 0x1a1   :  { %v6489_v46 = vpop.f32.mrb[1].mxu1 }
 0x1a2   :  { %v4732_v45 = vpop.f32.mrb[6].mxu0  ;;  %661 = vxpose.xlu1.b32.cont [3/8] (short) %v326_v44, 128 }
 0x1a3   :  { %v345_v47 = vpop.f32.mrb[7].mxu0  ;;  %v351_v56 = vadd.f32 %v4732_v45, %v222_v55 }
 0x1a4   :  { %v346_v54 = vadd.f32 %v345_v47, %v217_v53 }
 0x1a6   :  { %662 = vxpose.xlu1.b32.cont [4/8] (short) %v331_v48, 128  ;;  %v6497_v48 = vpop.f32.mrb[2].mxu1 }
 0x1a7   :  { %8226 = vst [vmem:[#allocation6_spill] sm:$0xff] %v6497_v48  ;;  %v6504_v51 = vpop.f32.mrb[3].mxu1 }
 0x1a8   :  { %8227 = vst [vmem:[#allocation7_spill] sm:$0xff] %v6504_v51 }
 0x1aa   :  { %663 = vxpose.xlu1.b32.cont [5/8] (short) %v336_v50, 128  ;;  %v375_v50 = vld [vmem:[%s8170_s6 + $0x28] sm:$0xff] }
 0x1ae   :  { %664 = vxpose.xlu1.b32.cont [6/8] (short) %v341_v52, 128  ;;  %v6508_v52 = vpop.f32.mrb[4].mxu1 }
 0x1af   :  { %v6514_v53 = vpop.f32.mrb[5].mxu1 }
 0x1b0   :  { %v6525_v57 = vpop.f32.mrb[6].mxu1 }
 0x1b1   :  { %v6529_v58 = vpop.f32.mrb[7].mxu1 }
 0x1b2   :  { %665 = vxpose.xlu1.b32.cont [7/8] (short) %v346_v54, 128  ;;  %v6536_v61 = vpop.f32.mrb[8].mxu1 }
 0x1b3   :  { %8228 = vst [vmem:[#allocation8_spill] sm:$0xff] %v6536_v61  ;;  %v6540_v62 = vpop.f32.mrb[9].mxu1 }
 0x1b4   :  { %8229 = vst [vmem:[#allocation9_spill] sm:$0xff] %v6540_v62  ;;  %v6547_v3 = vpop.f32.mrb[10].mxu1 }
 0x1b5   :  { %8230 = vst [vmem:[#allocation10_spill] sm:$0xff] %v6547_v3 }
 0x1b6   :  { %666 = vxpose.xlu1.b32.end [8/8] (short) %v351_v56, 128  ;;  %v377_v56 = vld [vmem:[%s8170_s6 + $0x38] sm:$0xff] }
 0x21a   :  { %v675_v9 = vpop.trf.xlu1 }
 0x21b   :  { %4781 = vmatprep.mubr.msk.f32.mxu0 %vm715_vm2, %v675_v9  ;;  %941 = vrot.lane.b32.xlu0 %v675_v9, %s6075_s19 }
 0x21e   :  { %v6351_v10 = vpop.trf.xlu1 }
 0x21f   :  { %v5645_v11 = vpack.i.bf16 %v6351_v10, %v675_v9 }
 0x221   :  { %5646 = vrot.lane.b32.xlu0 %v5645_v11, %s6076_s20 }
 0x222   :  { %v6355_v12 = vpop.trf.xlu1 }
 0x225   :  { %5651 = vrot.lane.b32.xlu0 %v5645_v11, %s6077_s5 }
 0x226   :  { %v6358_v13 = vpop.trf.xlu1 }
 0x227   :  { %v5660_v17 = vpack.i.bf16 %v6358_v13, %v6355_v12 }
 0x229   :  { %5656 = vrot.lane.b32.xlu0 %v5645_v11, %s6078_s21 }
 0x22a   :  { %v6361_v14 = vpop.trf.xlu1 }
 0x22d   :  { %943 = vrot.lane.b32.xlu0 %v6351_v10, %s6075_s19 }
 0x22e   :  { %v6365_v15 = vpop.trf.xlu1 }
 0x22f   :  { %v5675_v23 = vpack.i.bf16 %v6365_v15, %v6361_v14 }
 0x231   :  { %945 = vrot.lane.b32.xlu0 %v6355_v12, %s6075_s19 }
 0x232   :  { %v6369_v16 = vpop.trf.xlu1 }
 0x235   :  { %5661 = vrot.lane.b32.xlu0 %v5660_v17, %s6076_s20 }
 0x236   :  { %v6374_v18 = vpop.trf.xlu1 }
 0x237   :  { %v5700_v19 = vpack.i.bf16 %v6374_v18, %v6369_v16 }
 0x239   :  { %5666 = vrot.lane.b32.xlu0 %v5660_v17, %s6077_s5  ;;  %5701 = vrot.lane.b32.xlu1 %v5700_v19, %s6078_s21 }
 0x23a   :  { %v6380_v20 = vpop.trf.xlu1 }
 0x23d   :  { %5671 = vrot.lane.b32.xlu0 %v5660_v17, %s6078_s21  ;;  %1822 = vrot.lane.b32.xlu1 %v675_v9, %s6079_s22 }
 0x23e   :  { %v6384_v21 = vpop.trf.xlu1 }
 0x23f   :  { %v6483_v42 = vpack.i.bf16 %v6384_v21, %v6380_v20 }
 0x241   :  { %947 = vrot.lane.b32.xlu0 %v6358_v13, %s6075_s19 }
 0x242   :  { %v6388_v22 = vpop.trf.xlu1 }
 0x245   :  { %5676 = vrot.lane.b32.xlu0 %v5675_v23, %s6076_s20 }
 0x246   :  { %v6393_v24 = vpop.trf.xlu1 }
 0x247   :  { %v5730_v25 = vpack.i.bf16 %v6393_v24, %v6388_v22 }
 0x249   :  { %5681 = vrot.lane.b32.xlu0 %v5675_v23, %s6077_s5  ;;  %5731 = vrot.lane.b32.xlu1 %v5730_v25, %s6077_s5 }
 0x24a   :  { %v6399_v26 = vpop.trf.xlu1 }
 0x24d   :  { %5686 = vrot.lane.b32.xlu0 %v5675_v23, %s6078_s21  ;;  %1826 = vrot.lane.b32.xlu1 %v6355_v12, %s6079_s22 }
 0x24e   :  { %v6404_v27 = vpop.trf.xlu1 }
 0x24f   :  { %v6520_v55 = vpack.i.bf16 %v6404_v27, %v6399_v26 }
 0x251   :  { %5691 = vrot.lane.b32.xlu0 %v5700_v19, %s6076_s20  ;;  %1832 = vrot.lane.b32.xlu1 %v6365_v15, %s6079_s22 }
 0x252   :  { %v6409_v28 = vpop.trf.xlu1 }
 0x255   :  { %949 = vrot.lane.b32.xlu0 %v6361_v14, %s6075_s19 }
 0x256   :  { %v6413_v29 = vpop.trf.xlu1 }
 0x257   :  { %v6417_v32 = vpack.i.bf16 %v6413_v29, %v6409_v28 }
 0x259   :  { %951 = vrot.lane.b32.xlu0 %v6365_v15, %s6075_s19  ;;  %5741 = vrot.lane.b32.xlu1 %v6417_v32, %s6077_s5 }
 0x25d   :  { %5696 = vrot.lane.b32.xlu0 %v5700_v19, %s6077_s5  ;;  %1836 = vrot.lane.b32.xlu1 %v6374_v18, %s6079_s22 }
 0x261   :  { %953 = vrot.lane.b32.xlu0 %v6369_v16, %s6075_s19  ;;  %5751 = vrot.lane.b32.xlu1 %v5730_v25, %s6076_s20 }
 0x265   :  { %5706 = vrot.lane.b32.xlu0 %v5645_v11, %s6080_s23  ;;  %2453 = vrot.lane.b32.xlu1 %v6380_v20, %s6075_s19 }
 0x269   :  { %1440 = vrot.lane.b32.xlu0 %v675_v9, %s6081_s24  ;;  %5766 = vrot.lane.b32.xlu1 %v5730_v25, %s6078_s21  ;;  %v6554_v9 = vpop.f32.mrb[11].mxu1 }
 0x26a   :  { %8231 = vst [vmem:[#allocation11_spill] sm:$0xff] %v6554_v9  ;;  %v6560_v11 = vpop.f32.mrb[12].mxu1 }
 0x26b   :  { %8232 = vst [vmem:[#allocation12_spill] sm:$0xff] %v6560_v11 }
 0x26d   :  { %1442 = vrot.lane.b32.xlu0 %v6351_v10, %s6081_s24  ;;  %2459 = vrot.lane.b32.xlu1 %v6393_v24, %s6075_s19 }
 0x271   :  { %955 = vrot.lane.b32.xlu0 %v6374_v18, %s6075_s19  ;;  %2461 = vrot.lane.b32.xlu1 %v6399_v26, %s6075_s19 }
 0x275   :  { %5711 = vrot.lane.b32.xlu0 %v5660_v17, %s6080_s23  ;;  %2960 = vrot.lane.b32.xlu1 %v6380_v20, %s6081_s24 }
 0x279   :  { %5716 = vrot.lane.b32.xlu0 %v5675_v23, %s6080_s23  ;;  %5781 = vrot.lane.b32.xlu1 %v6417_v32, %s6076_s20 }
 0x27d   :  { %1444 = vrot.lane.b32.xlu0 %v6355_v12, %s6081_s24  ;;  %5786 = vrot.lane.b32.xlu1 %v5730_v25, %s6080_s23  ;;  %v385_v25 = vld [vmem:[%s8170_s6 + $0x78] sm:$0xff] }
 0x281   :  { %1446 = vrot.lane.b32.xlu0 %v6358_v13, %s6081_s24  ;;  %2964 = vrot.lane.b32.xlu1 %v6388_v22, %s6081_s24 }
 0x285   :  { %1448 = vrot.lane.b32.xlu0 %v6361_v14, %s6081_s24  ;;  %2970 = vrot.lane.b32.xlu1 %v6404_v27, %s6081_s24 }
 0x289   :  { %1450 = vrot.lane.b32.xlu0 %v6365_v15, %s6081_s24  ;;  %3348 = vrot.lane.b32.xlu1 %v6384_v21, %s6079_s22 }
 0x28d   :  { %v942_v35 = vpop.permute.xlu0 %941  ;;  %1452 = vrot.lane.b32.xlu0 %v6369_v16, %s6081_s24  ;;  %3352 = vrot.lane.b32.xlu1 %v6393_v24, %s6079_s22 }
 0x28e   :  { %4809 = vmatprep.mubr.msk.f32.mxu1 %vm715_vm2, %v942_v35 }
 0x291   :  { %5721 = vrot.lane.b32.xlu0 %v5700_v19, %s6080_s23  ;;  %3356 = vrot.lane.b32.xlu1 %v6404_v27, %s6079_s22  ;;  %v6562_v19 = vpop.f32.mrb[13].mxu1 }
 0x292   :  { %8233 = vst [vmem:[#allocation13_spill] sm:$0xff] %v6562_v19  ;;  %v6569_v35 = vpop.f32.mrb[14].mxu1 }
 0x293   :  { %v5647_v36 = vpop.permute.xlu0 %5646  ;;  %8234 = vst [vmem:[#allocation14_spill] sm:$0xff] %v6569_v35 }
 0x294   :  { %v5649_v37 = vunpack.i.h.bf16 %v5647_v36  ;;  %v5648_v38 = vunpack.i.l.bf16 %v5647_v36 }
 0x295   :  { %1454 = vrot.lane.b32.xlu0 %v6374_v18, %s6081_s24  ;;  %5796 = vrot.lane.b32.xlu1 %v6417_v32, %s6078_s21 }
 0x296   :  { %v5233_v40 = vpack.c.bf16 %v5649_v37, %v5648_v38 }
 0x297   :  { %v5652_v41 = vpop.permute.xlu0 %5651 }
 0x298   :  { %v5654_v44 = vunpack.i.h.bf16 %v5652_v41  ;;  %v5653_v45 = vunpack.i.l.bf16 %v5652_v41  ;;  %5235 = vmatprep.subr.msk.bf16.mxu1 %vm6477_vm3, %v5233_v40 }
 0x299   :  { %5238 = vmatpush3.bf16.xpose.msk.msra.mxu1 %vm6477_vm3, %v5233_v40  ;;  %5726 = vrot.lane.b32.xlu0 %v6483_v42, %s6077_s5 }
 0x29a   :  { %v5209_v47 = vpack.c.bf16 %v5654_v44, %v5653_v45  ;;  %2467 = vrot.lane.b32.xlu1 %v6413_v29, %s6075_s19 }
 0x29b   :  { %v6499_v49 = vpop.permute.xlu0 %5656 }
 0x29c   :  { %5211 = vmatprep.subr.msk.bf16.mxu0 %vm6477_vm3, %v5209_v47 }
 0x29d   :  { %5214 = vmatpush3.bf16.xpose.msk.msra.mxu0 %vm6477_vm3, %v5209_v47  ;;  %1824 = vrot.lane.b32.xlu0 %v6351_v10, %s6079_s22 }
 0x29e   :  { %413 = vperm.xlu1 %5644, %v375_v50  }
 0x29f   :  { %v6516_v54 = vpop.permute.xlu0 %943 }
 0x2a1   :  { %5736 = vrot.lane.b32.xlu0 %v6520_v55, %s6077_s5 }
 0x2a2   :  { %423 = vperm.xlu1 %5644, %v377_v56  }
 0x2a3   :  { %v6531_v59 = vpop.permute.xlu0 %945 }
 0x2a5   :  { %1828 = vrot.lane.b32.xlu0 %v6358_v13, %s6079_s22 }
 0x2a6   :  { %428 = vperm.xlu1 %5644, %v378_v60  }
 0x2a7   :  { %v5662_v63 = vpop.permute.xlu0 %5661 }
 0x2a8   :  { %v5664_v1 = vunpack.i.h.bf16 %v5662_v63  ;;  %v5663_v2 = vunpack.i.l.bf16 %v5662_v63 }
 0x2a9   :  { %1830 = vrot.lane.b32.xlu0 %v6361_v14, %s6079_s22 }
 0x2aa   :  { %v5239_v4 = vpack.c.bf16 %v5664_v1, %v5663_v2  ;;  %443 = vperm.xlu1 %5644, %v381_v0  }
 0x2ab   :  { %v5667_v5 = vpop.permute.xlu0 %5666  ;;  %v6571_v36 = vpop.permute.xlu1 %5701 }
 0x2ac   :  { %v5669_v7 = vunpack.i.h.bf16 %v5667_v5  ;;  %v5668_v8 = vunpack.i.l.bf16 %v5667_v5  ;;  %5241 = vmatprep.subr.msk.bf16.mxu1 %vm6477_vm3, %v5239_v4  ;;  %v5658_v5 = vunpack.i.l.bf16 %v6499_v49 }
 0x2ad   :  { %5244 = vmatpush3.bf16.xpose.msk.msra.mxu1 %vm6477_vm3, %v5239_v4  ;;  %1834 = vrot.lane.b32.xlu0 %v6369_v16, %s6079_s22  ;;  %v5659_v4 = vunpack.i.h.bf16 %v6499_v49 }
 0x2ae   :  { %v5215_v17 = vpack.c.bf16 %v5669_v7, %v5668_v8  ;;  %453 = vperm.xlu1 %5644, %v383_v6  }
 0x2af   :  { %v5672_v23 = vpop.permute.xlu0 %5671  ;;  %v6579_v38 = vpop.permute.xlu1 %1822 }
 0x2b0   :  { %5217 = vmatprep.subr.msk.bf16.mxu0 %vm6477_vm3, %v5215_v17 }
 0x2b1   :  { %5220 = vmatpush3.bf16.xpose.msk.msra.mxu0 %vm6477_vm3, %v5215_v17  ;;  %5746 = vrot.lane.b32.xlu0 %v6483_v42, %s6076_s20 }
 0x2b2   :  { %463 = vperm.xlu1 %5644, %v385_v25  }
 0x2b3   :  { %v948_v37 = vpop.permute.xlu0 %947 }
 0x2b5   :  { %5756 = vrot.lane.b32.xlu0 %v6520_v55, %s6076_s20 }
 0x2b7   :  { %v5677_v40 = vpop.permute.xlu0 %5676 }
 0x2b8   :  { %v5679_v41 = vunpack.i.h.bf16 %v5677_v40  ;;  %v5678_v44 = vunpack.i.l.bf16 %v5677_v40  ;;  %v5305_v40 = vpack.c.bf16 %v5659_v4, %v5658_v5 }
 0x2b9   :  { %5761 = vrot.lane.b32.xlu0 %v6483_v42, %s6078_s21 }
 0x2ba   :  { %v5245_v45 = vpack.c.bf16 %v5679_v41, %v5678_v44  ;;  %v5674_v44 = vunpack.i.h.bf16 %v5672_v23 }
 0x2bb   :  { %v5682_v47 = vpop.permute.xlu0 %5681  ;;  %v6583_v50 = vpop.permute.xlu1 %5731 }
 0x2bc   :  { %v5684_v56 = vunpack.i.h.bf16 %v5682_v47  ;;  %v5683_v60 = vunpack.i.l.bf16 %v5682_v47  ;;  %5247 = vmatprep.subr.msk.bf16.mxu1 %vm6477_vm3, %v5245_v45 }
 0x2bd   :  { %5250 = vmatpush3.bf16.xpose.msk.msra.mxu1 %vm6477_vm3, %v5245_v45  ;;  %2455 = vrot.lane.b32.xlu0 %v6384_v21, %s6075_s19  ;;  %v5673_v45 = vunpack.i.l.bf16 %v5672_v23 }
 0x2be   :  { %v5221_v63 = vpack.c.bf16 %v5684_v56, %v5683_v60 }
 0x2bf   :  { %v5687_v0 = vpop.permute.xlu0 %5686  ;;  %v6593_v1 = vpop.permute.xlu1 %1826  ;;  %v5311_v60 = vpack.c.bf16 %v5674_v44, %v5673_v45 }
 0x2c0   :  { %5223 = vmatprep.subr.msk.bf16.mxu0 %vm6477_vm3, %v5221_v63 }
 0x2c1   :  { %5226 = vmatpush3.bf16.xpose.msk.msra.mxu0 %vm6477_vm3, %v5221_v63  ;;  %2457 = vrot.lane.b32.xlu0 %v6388_v22, %s6075_s19 }
 0x2c3   :  { %v5692_v2 = vpop.permute.xlu0 %5691  ;;  %v6603_v17 = vpop.permute.xlu1 %1832 }
 0x2c4   :  { %v5694_v6 = vunpack.i.h.bf16 %v5692_v2  ;;  %v5693_v7 = vunpack.i.l.bf16 %v5692_v2 }
 0x2c5   :  { %5771 = vrot.lane.b32.xlu0 %v6520_v55, %s6078_s21 }
 0x2c6   :  { %v5251_v8 = vpack.c.bf16 %v5694_v6, %v5693_v7  ;;  %v5689_v6 = vunpack.i.h.bf16 %v5687_v0  ;;  %v5688_v7 = vunpack.i.l.bf16 %v5687_v0 }
 0x2c7   :  { %v950_v25 = vpop.permute.xlu0 %949 }
 0x2c8   :  { %5253 = vmatprep.subr.msk.bf16.mxu1 %vm6477_vm3, %v5251_v8 }
 0x2c9   :  { %5256 = vmatpush3.bf16.xpose.msk.msra.mxu1 %vm6477_vm3, %v5251_v8  ;;  %2463 = vrot.lane.b32.xlu0 %v6404_v27, %s6075_s19  ;;  %v5704_v8 = vunpack.i.h.bf16 %v6571_v36 }
 0x2ca   :  { %5307 = vmatprep.subr.msk.bf16.mxu1 %vm6477_vm3, %v5305_v40 }
 0x2cb   :  { %v952_v49 = vpop.permute.xlu0 %951  ;;  %v6613_v41 = vpop.permute.xlu1 %5741 }
 0x2cd   :  { %2465 = vrot.lane.b32.xlu0 %v6409_v28, %s6075_s19 }
 0x2cf   :  { %v5697_v47 = vpop.permute.xlu0 %5696  ;;  %v6617_v56 = vpop.permute.xlu1 %1836 }
 0x2d0   :  { %v5699_v63 = vunpack.i.h.bf16 %v5697_v47  ;;  %v5698_v2 = vunpack.i.l.bf16 %v5697_v47  ;;  %4810 = vmatmul.mubr.msk.f32.vlgmr.msra.gmra.mrb[16].mxu1 %vm715_vm2, %v6516_v54 }
 0x2d1   :  { %4812 = vmatprep.mubr.msk.f32.mxu1 %vm715_vm2, %v6531_v59  ;;  %5310 = vmatpush3.bf16.xpose.msk.msra.mxu1 %vm6477_vm3, %v5305_v40  ;;  %v5317_v59 = vpack.c.bf16 %v5689_v6, %v5688_v7 }
 0x2d2   :  { %v5227_v4 = vpack.c.bf16 %v5699_v63, %v5698_v2  ;;  %5776 = vrot.lane.b32.xlu0 %v6483_v42, %s6080_s23  ;;  %5313 = vmatprep.subr.msk.bf16.mxu1 %vm6477_vm3, %v5311_v60 }
 0x2d3   :  { %v954_v23 = vpop.permute.xlu0 %953  ;;  %v6629_v5 = vpop.permute.xlu1 %5751 }
 0x2d4   :  { %5229 = vmatprep.subr.msk.bf16.mxu0 %vm6477_vm3, %v5227_v4  ;;  %4813 = vmatmul.mubr.msk.f32.gmra.mrb[18].mxu1 %vm715_vm2, %v948_v37 }
 0x2d5   :  { %5232 = vmatpush3.bf16.xpose.msk.msra.mxu0 %vm6477_vm3, %v5227_v4  ;;  %4815 = vmatprep.mubr.msk.f32.mxu1 %vm715_vm2, %v950_v25  ;;  %v5703_v25 = vunpack.i.l.bf16 %v6571_v36 }
 0x2d6   :  { %2962 = vrot.lane.b32.xlu0 %v6384_v21, %s6081_s24 }
 0x2d7   :  { %v5707_v42 = vpop.permute.xlu0 %5706  ;;  %v6639_v54 = vpop.permute.xlu1 %2453 }
 0x2d8   :  { %4816 = vmatmul.mubr.msk.f32.gmra.mrb[20].mxu1 %vm715_vm2, %v952_v49  ;;  %v5323_v49 = vpack.c.bf16 %v5704_v8, %v5703_v25  ;;  %v5709_v36 = vunpack.i.h.bf16 %v5707_v42  ;;  %v5708_v44 = vunpack.i.l.bf16 %v5707_v42 }
 0x2d9   :  { %4818 = vmatprep.mubr.msk.f32.mxu1 %vm715_vm2, %v954_v23  ;;  %5316 = vmatpush3.bf16.xpose.msk.msra.mxu1 %vm6477_vm3, %v5311_v60 }
 0x2da   :  { %5791 = vrot.lane.b32.xlu0 %v6520_v55, %s6080_s23  ;;  %5319 = vmatprep.subr.msk.bf16.mxu1 %vm6477_vm3, %v5317_v59  ;;  %v5353_v45 = vpack.c.bf16 %v5709_v36, %v5708_v44 }
 0x2db   :  { %v1441_v37 = vpop.permute.xlu0 %1440  ;;  %v6649_v0 = vpop.permute.xlu1 %5766 }
 0x2dc   :  { %4782 = vmatmul.mubr.msk.f32.vlgmr.msra.gmra.mrb[8].mxu0 %vm715_vm2, %v6351_v10 }
 0x2dd   :  { %4784 = vmatprep.mubr.msk.f32.mxu0 %vm715_vm2, %v6355_v12 }
 0x2de   :  { %2966 = vrot.lane.b32.xlu0 %v6393_v24, %s6081_s24 }
 0x2df   :  { %v1443_v55 = vpop.permute.xlu0 %1442  ;;  %v6659_v40 = vpop.permute.xlu1 %2459 }
 0x2e0   :  { %4785 = vmatmul.mubr.msk.f32.gmra.mrb[10].mxu0 %vm715_vm2, %v6358_v13 }
 0x2e1   :  { %4787 = vmatprep.mubr.msk.f32.mxu0 %vm715_vm2, %v6361_v14  ;;  %5322 = vmatpush3.bf16.xpose.msk.msra.mxu1 %vm6477_vm3, %v5317_v59  ;;  %v374_v59 = vld [vmem:[%s8170_s6 + $0x20] sm:$0xff] }
 0x2e2   :  { %2968 = vrot.lane.b32.xlu0 %v6399_v26, %s6081_s24  ;;  %5325 = vmatprep.subr.msk.bf16.mxu1 %vm6477_vm3, %v5323_v49 }
 0x2e3   :  { %v956_v10 = vpop.permute.xlu0 %955  ;;  %v6671_v12 = vpop.permute.xlu1 %2461 }
 0x2e4   :  { %4788 = vmatmul.mubr.msk.f32.gmra.mrb[12].mxu0 %vm715_vm2, %v6365_v15  ;;  %4819 = vmatmul.mubr.msk.f32.gmra.mrb[22].mxu1 %vm715_vm2, %v956_v10  ;;  %v370_v10 = vld [vmem:[%s8170_s6] sm:$0xff] }
 0x2e5   :  { %4790 = vmatprep.mubr.msk.f32.mxu0 %vm715_vm2, %v6369_v16  ;;  %4881 = vmatprep.mubr.msk.f32.mxu1 %vm715_vm2, %v1441_v37 }
 0x2e6   :  { %2972 = vrot.lane.b32.xlu0 %v6409_v28, %s6081_s24 }
 0x2e7   :  { %v5712_v13 = vpop.permute.xlu0 %5711  ;;  %v6681_v14 = vpop.permute.xlu1 %2960 }
 0x2e8   :  { %4791 = vmatmul.mubr.msk.f32.gmra.mrb[14].mxu0 %vm715_vm2, %v6374_v18  ;;  %v5714_v47 = vunpack.i.h.bf16 %v5712_v13  ;;  %v5713_v60 = vunpack.i.l.bf16 %v5712_v13  ;;  %v371_v13 = vld [vmem:[%s8170_s6 + $0x8] sm:$0xff] }
 0x2e9   :  { %5328 = vmatpush3.bf16.xpose.msk.msra.mxu1 %vm6477_vm3, %v5323_v49 }
 0x2ea   :  { %3346 = vrot.lane.b32.xlu0 %v6380_v20, %s6079_s22  ;;  %5355 = vmatprep.subr.msk.bf16.mxu1 %vm6477_vm3, %v5353_v45  ;;  %v5359_v18 = vpack.c.bf16 %v5714_v47, %v5713_v60 }
 0x2eb   :  { %v5717_v15 = vpop.permute.xlu0 %5716  ;;  %v6691_v16 = vpop.permute.xlu1 %5781 }
 0x2ec   :  { %v5719_v23 = vunpack.i.h.bf16 %v5717_v15  ;;  %v5718_v6 = vunpack.i.l.bf16 %v5717_v15 }
 0x2ee   :  { %3350 = vrot.lane.b32.xlu0 %v6388_v22, %s6079_s22  ;;  %v5365_v37 = vpack.c.bf16 %v5719_v23, %v5718_v6  ;;  %v373_v23 = vld [vmem:[%s8170_s6 + $0x18] sm:$0xff]  ;;  %v5734_v6 = vunpack.i.h.bf16 %v6583_v50 }
 0x2ef   :  { %v1445_v63 = vpop.permute.xlu0 %1444  ;;  %v6695_v2 = vpop.permute.xlu1 %5786 }
 0x2f0   :  { %4882 = vmatmul.mubr.msk.f32.vlgmr.msra.gmra.mrb[24].mxu1 %vm715_vm2, %v1443_v55  ;;  %v376_v55 = vld [vmem:[%s8170_s6 + $0x30] sm:$0xff] }
 0x2f1   :  { %4884 = vmatprep.mubr.msk.f32.mxu1 %vm715_vm2, %v1445_v63  ;;  %5358 = vmatpush3.bf16.xpose.msk.msra.mxu1 %vm6477_vm3, %v5353_v45 }
 0x2f2   :  { %3354 = vrot.lane.b32.xlu0 %v6399_v26, %s6079_s22  ;;  %5361 = vmatprep.subr.msk.bf16.mxu1 %vm6477_vm3, %v5359_v18 }
 0x2f3   :  { %v1447_v4 = vpop.permute.xlu0 %1446  ;;  %v6706_v7 = vpop.permute.xlu1 %2964 }
 0x2f4   :  { %4885 = vmatmul.mubr.msk.f32.gmra.mrb[26].mxu1 %vm715_vm2, %v1447_v4 }
 0x2f6   :  { %3358 = vrot.lane.b32.xlu0 %v6409_v28, %s6079_s22 }
 0x2f7   :  { %v1449_v42 = vpop.permute.xlu0 %1448  ;;  %v6718_v8 = vpop.permute.xlu1 %2970 }
 0x2f8   :  { %4887 = vmatprep.mubr.msk.f32.mxu1 %vm715_vm2, %v1449_v42  ;;  %v5733_v42 = vunpack.i.l.bf16 %v6583_v50 }
 0x2f9   :  { %5364 = vmatpush3.bf16.xpose.msk.msra.mxu1 %vm6477_vm3, %v5359_v18  ;;  %v372_v18 = vld [vmem:[%s8170_s6 + $0x10] sm:$0xff] }
 0x2fa   :  { %408 = vperm.xlu0 %5643, %v374_v59   ;;  %5367 = vmatprep.subr.msk.bf16.mxu1 %vm6477_vm3, %v5365_v37 }
 0x2fb   :  { %v1451_v25 = vpop.permute.xlu0 %1450  ;;  %v6728_v36 = vpop.permute.xlu1 %3348 }
 0x2fc   :  { %4888 = vmatmul.mubr.msk.f32.gmra.mrb[28].mxu1 %vm715_vm2, %v1451_v25 }
 0x2fe   :  { %418 = vperm.xlu0 %5643, %v376_v55  }
 0x2ff   :  { %v1453_v49 = vpop.permute.xlu0 %1452  ;;  %v6735_v60 = vpop.permute.xlu1 %3352 }
 0x300   :  { %4890 = vmatprep.mubr.msk.f32.mxu1 %vm715_vm2, %v1453_v49 }
 0x301   :  { %5370 = vmatpush3.bf16.xpose.msk.msra.mxu1 %vm6477_vm3, %v5365_v37 }
 0x302   :  { %388 = vperm.xlu0 %5643, %v370_v10   ;;  %v5407_v10 = vpack.c.bf16 %v5734_v6, %v5733_v42  ;;  %v6785_v6 = vpop.f32.mrb[15].mxu1  ;;  %v5744_v42 = vunpack.i.h.bf16 %v6613_v41 }
 0x303   :  { %v5722_v44 = vpop.permute.xlu0 %5721  ;;  %v6752_v25 = vpop.permute.xlu1 %3356  ;;  %8235 = vst [vmem:[#allocation15_spill] sm:$0xff] %v6785_v6 }
 0x304   :  { %v5724_v45 = vunpack.i.h.bf16 %v5722_v44  ;;  %v5723_v15 = vunpack.i.l.bf16 %v5722_v44 }
 0x306   :  { %v5371_v47 = vpack.c.bf16 %v5724_v45, %v5723_v15  ;;  %393 = vperm.xlu0 %5643, %v371_v13   ;;  %v380_v13 = vld [vmem:[%s8170_s6 + $0x50] sm:$0xff] }
 0x307   :  { %v1455_v63 = vpop.permute.xlu0 %1454  ;;  %v6766_v50 = vpop.permute.xlu1 %5796 }
 0x308   :  { %4891 = vmatmul.mubr.msk.f32.gmra.mrb[30].mxu1 %vm715_vm2, %v1455_v63  ;;  %5373 = vmatprep.subr.msk.bf16.mxu1 %vm6477_vm3, %v5371_v47 }
 0x309   :  { %5376 = vmatpush3.bf16.xpose.msk.msra.mxu1 %vm6477_vm3, %v5371_v47  ;;  %4931 = vmatprep.mubr.msk.f32.mxu1 %vm715_vm2, %v6579_v38  ;;  %v379_v38 = vld [vmem:[%s8170_s6 + $0x48] sm:$0xff] }
 0x30a   :  { %398 = vperm.xlu0 %5643, %v372_v18  }
 0x30b   :  { %v5727_v4 = vpop.permute.xlu0 %5726 }
 0x30c   :  { %v5729_v59 = vunpack.i.h.bf16 %v5727_v4  ;;  %v5728_v37 = vunpack.i.l.bf16 %v5727_v4  ;;  %v6775_v18 = vpop.permute.xlu1 %2467 }
 0x30e   :  { %v5401_v55 = vpack.c.bf16 %v5729_v59, %v5728_v37  ;;  %403 = vperm.xlu0 %5643, %v373_v23   ;;  %v384_v23 = vld [vmem:[%s8170_s6 + $0x70] sm:$0xff]  ;;  %v5743_v59 = vunpack.i.l.bf16 %v6613_v41 }
 0x30f   :  { %v1825_v49 = vpop.permute.xlu0 %1824 }
 0x310   :  { %4932 = vmatmul.mubr.msk.f32.vlgmr.msra.gmra.mrb[32].mxu1 %vm715_vm2, %v1825_v49  ;;  %5403 = vmatprep.subr.msk.bf16.mxu1 %vm6477_vm3, %v5401_v55 }
 0x311   :  { %4934 = vmatprep.mubr.msk.f32.mxu1 %vm715_vm2, %v6593_v1  ;;  %5406 = vmatpush3.bf16.xpose.msk.msra.mxu1 %vm6477_vm3, %v5401_v55  ;;  %v382_v1 = vld [vmem:[%s8170_s6 + $0x60] sm:$0xff] }
 0x312   :  { %433 = vperm.xlu0 %5643, %v379_v38   ;;  %5409 = vmatprep.subr.msk.bf16.mxu1 %vm6477_vm3, %v5407_v10  ;;  %v5419_v38 = vpack.c.bf16 %v5744_v42, %v5743_v59 }
 0x313   :  { %v5737_v44 = vpop.permute.xlu0 %5736 }
 0x314   :  { %v5739_v45 = vunpack.i.h.bf16 %v5737_v44  ;;  %v5738_v15 = vunpack.i.l.bf16 %v5737_v44  ;;  %v5754_v44 = vunpack.i.h.bf16 %v6629_v5 }
 0x316   :  { %438 = vperm.xlu0 %5643, %v380_v13   ;;  %v5413_v63 = vpack.c.bf16 %v5739_v45, %v5738_v15 }
 0x317   :  { %v1829_v47 = vpop.permute.xlu0 %1828 }
 0x318   :  { %4935 = vmatmul.mubr.msk.f32.gmra.mrb[34].mxu1 %vm715_vm2, %v1829_v47 }
 0x319   :  { %5412 = vmatpush3.bf16.xpose.msk.msra.mxu1 %vm6477_vm3, %v5407_v10 }
 0x31a   :  { %448 = vperm.xlu0 %5643, %v382_v1   ;;  %5415 = vmatprep.subr.msk.bf16.mxu1 %vm6477_vm3, %v5413_v63 }
 0x31b   :  { %v1831_v4 = vpop.permute.xlu0 %1830 }
 0x31c   :  { %4937 = vmatprep.mubr.msk.f32.mxu1 %vm715_vm2, %v1831_v4 }
 0x31d   :  { %v414_v37 = vpop.permute.xlu1 %413  ;;  %4938 = vmatmul.mubr.msk.f32.gmra.mrb[36].mxu1 %vm715_vm2, %v6603_v17 }
 0x31e   :  { %v6792_v55 = vadd.f32 %v6508_v52, %v414_v37  ;;  %458 = vperm.xlu0 %5643, %v384_v23  }
 0x31f   :  { %v1835_v49 = vpop.permute.xlu0 %1834 }
 0x320   :  { %8236 = vst [vmem:[#allocation16_spill] sm:$0xff] %v6792_v55  ;;  %2712 = vrot.lane.b32.xlu1 %v6792_v55, %s6074_s17  ;;  %4940 = vmatprep.mubr.msk.f32.mxu1 %vm715_vm2, %v1835_v49 }
 0x321   :  { %4941 = vmatmul.mubr.msk.f32.gmra.mrb[38].mxu1 %vm715_vm2, %v6617_v56 }
 0x322   :  { %5418 = vmatpush3.bf16.xpose.msk.msra.mxu1 %vm6477_vm3, %v5413_v63  ;;  %4981 = vmatprep.mubr.msk.f32.mxu1 %vm715_vm2, %v6380_v20  ;;  %v5783_v63 = vunpack.i.l.bf16 %v6691_v16 }
 0x323   :  { %5421 = vmatprep.subr.msk.bf16.mxu1 %vm6477_vm3, %v5419_v38  ;;  %v5747_v52 = vpop.permute.xlu0 %5746 }
 0x324   :  { %5801 = vrot.lane.b32.xlu1 %v6417_v32, %s6080_s23  ;;  %v5749_v17 = vunpack.i.h.bf16 %v5747_v52  ;;  %v5748_v41 = vunpack.i.l.bf16 %v5747_v52  ;;  %v5753_v32 = vunpack.i.l.bf16 %v6629_v5 }
 0x326   :  { %v5425_v56 = vpack.c.bf16 %v5749_v17, %v5748_v41  ;;  %v5431_v45 = vpack.c.bf16 %v5754_v44, %v5753_v32  ;;  %v5799_v41 = vunpack.i.h.bf16 %v6766_v50 }
 0x327   :  { %v5757_v10 = vpop.permute.xlu0 %5756 }
 0x328   :  { %2974 = vrot.lane.b32.xlu1 %v6413_v29, %s6081_s24  ;;  %v5759_v47 = vunpack.i.h.bf16 %v5757_v10  ;;  %v5758_v1 = vunpack.i.l.bf16 %v5757_v10  ;;  %v5798_v10 = vunpack.i.l.bf16 %v6766_v50  ;;  %v5788_v50 = vunpack.i.l.bf16 %v6695_v2 }
 0x32a   :  { %5424 = vmatpush3.bf16.xpose.msk.msra.mxu1 %vm6477_vm3, %v5419_v38 }
 0x32b   :  { %5427 = vmatprep.subr.msk.bf16.mxu1 %vm6477_vm3, %v5425_v56  ;;  %v5762_v20 = vpop.permute.xlu0 %5761 }
 0x32c   :  { %3360 = vrot.lane.b32.xlu1 %v6413_v29, %s6079_s22  ;;  %v5764_v4 = vunpack.i.h.bf16 %v5762_v20  ;;  %v5763_v23 = vunpack.i.l.bf16 %v5762_v20 }
 0x32e   :  { %v5497_v59 = vpack.c.bf16 %v5764_v4, %v5763_v23 }
 0x32f   :  { %v2456_v13 = vpop.permute.xlu0 %2455 }
 0x331   :  { %4982 = vmatmul.mubr.msk.f32.vlgmr.msra.gmra.mrb[40].mxu1 %vm715_vm2, %v6384_v21  ;;  %v5437_v21 = vpack.c.bf16 %v5759_v47, %v5758_v1 }
 0x332   :  { %4984 = vmatprep.mubr.msk.f32.mxu1 %vm715_vm2, %v6388_v22  ;;  %5430 = vmatpush3.bf16.xpose.msk.msra.mxu1 %vm6477_vm3, %v5425_v56 }
 0x333   :  { %5433 = vmatprep.subr.msk.bf16.mxu1 %vm6477_vm3, %v5431_v45  ;;  %v2458_v15 = vpop.permute.xlu0 %2457 }
 0x335   :  { %4985 = vmatmul.mubr.msk.f32.gmra.mrb[42].mxu1 %vm715_vm2, %v6393_v24  ;;  %v5784_v24 = vunpack.i.h.bf16 %v6691_v16  ;;  %v5768_v16 = vunpack.i.l.bf16 %v6649_v0 }
 0x336   :  { %4987 = vmatprep.mubr.msk.f32.mxu1 %vm715_vm2, %v6399_v26 }
 0x337   :  { %v5772_v5 = vpop.permute.xlu0 %5771 }
 0x338   :  { %v5774_v38 = vunpack.i.h.bf16 %v5772_v5  ;;  %v5773_v52 = vunpack.i.l.bf16 %v5772_v5  ;;  %v6893_v5 = vpop.permute.xlu1 %423 }
 0x339   :  { %4988 = vmatmul.mubr.msk.f32.gmra.mrb[44].mxu1 %vm715_vm2, %v6404_v27  ;;  %v5443_v27 = vpack.c.bf16 %v5784_v24, %v5783_v63 }
 0x33a   :  { %4990 = vmatprep.mubr.msk.f32.mxu1 %vm715_vm2, %v6409_v28  ;;  %5436 = vmatpush3.bf16.xpose.msk.msra.mxu1 %vm6477_vm3, %v5431_v45  ;;  %v5509_v17 = vpack.c.bf16 %v5774_v38, %v5773_v52 }
 0x33b   :  { %5439 = vmatprep.subr.msk.bf16.mxu1 %vm6477_vm3, %v5437_v21  ;;  %v2464_v22 = vpop.permute.xlu0 %2463 }
 0x33d   :  { %4991 = vmatmul.mubr.msk.f32.gmra.mrb[46].mxu1 %vm715_vm2, %v6413_v29 }
 0x33e   :  { %5009 = vmatprep.mubr.msk.f32.mxu1 %vm715_vm2, %v6639_v54  ;;  %v5769_v54 = vunpack.i.h.bf16 %v6649_v0 }
 0x33f   :  { %v2466_v26 = vpop.permute.xlu0 %2465 }
 0x340   :  { %v5503_v37 = vpack.c.bf16 %v5769_v54, %v5768_v16 }
 0x342   :  { %5442 = vmatpush3.bf16.xpose.msk.msra.mxu1 %vm6477_vm3, %v5437_v21 }
 0x343   :  { %5445 = vmatprep.subr.msk.bf16.mxu1 %vm6477_vm3, %v5443_v27 }
 0x344   :  { %v5777_v28 = vpop.permute.xlu0 %5776 }
 0x345   :  { %v5779_v20 = vunpack.i.h.bf16 %v5777_v28  ;;  %v5778_v44 = vunpack.i.l.bf16 %v5777_v28 }
 0x347   :  { %v5545_v32 = vpack.c.bf16 %v5779_v20, %v5778_v44 }
 0x348   :  { %v2963_v42 = vpop.permute.xlu0 %2962 }
 0x34a   :  { %5448 = vmatpush3.bf16.xpose.msk.msra.mxu1 %vm6477_vm3, %v5443_v27 }
 0x34b   :  { %5499 = vmatprep.subr.msk.bf16.mxu1 %vm6477_vm3, %v5497_v59 }
 0x34c   :  { %v5792_v29 = vpop.permute.xlu0 %5791 }
 0x34d   :  { %v5793_v47 = vunpack.i.l.bf16 %v5792_v29 }
 0x350   :  { %v2967_v49 = vpop.permute.xlu0 %2966 }
 0x351   :  { %5010 = vmatmul.mubr.msk.f32.vlgmr.msra.gmra.mrb[48].mxu1 %vm715_vm2, %v2456_v13 }
 0x352   :  { %5012 = vmatprep.mubr.msk.f32.mxu1 %vm715_vm2, %v2458_v15  ;;  %5502 = vmatpush3.bf16.xpose.msk.msra.mxu1 %vm6477_vm3, %v5497_v59  ;;  %v5794_v15 = vunpack.i.h.bf16 %v5792_v29 }
 0x353   :  { %5505 = vmatprep.subr.msk.bf16.mxu1 %vm6477_vm3, %v5503_v37 }
 0x354   :  { %v2969_v0 = vpop.permute.xlu0 %2968 }
 0x355   :  { %5013 = vmatmul.mubr.msk.f32.gmra.mrb[50].mxu1 %vm715_vm2, %v6659_v40 }
 0x356   :  { %5015 = vmatprep.mubr.msk.f32.mxu1 %vm715_vm2, %v6671_v12  ;;  %v5515_v12 = vpack.c.bf16 %v5799_v41, %v5798_v10 }
 0x358   :  { %v2973_v40 = vpop.permute.xlu0 %2972 }
 0x359   :  { %5016 = vmatmul.mubr.msk.f32.gmra.mrb[52].mxu1 %vm715_vm2, %v2464_v22  ;;  %v6904_v22 = vpop.permute.xlu1 %428 }
 0x35a   :  { %5018 = vmatprep.mubr.msk.f32.mxu1 %vm715_vm2, %v2466_v26  ;;  %5508 = vmatpush3.bf16.xpose.msk.msra.mxu1 %vm6477_vm3, %v5503_v37  ;;  %8237 = vst [vmem:[#allocation17_spill] sm:$0xff] %v6904_v22 }
 0x35b   :  { %5511 = vmatprep.subr.msk.bf16.mxu1 %vm6477_vm3, %v5509_v17 }
 0x35c   :  { %v3347_v56 = vpop.permute.xlu0 %3346 }
 0x35d   :  { %5019 = vmatmul.mubr.msk.f32.gmra.mrb[54].mxu1 %vm715_vm2, %v6775_v18  ;;  %v6908_v24 = vpop.permute.xlu1 %443 }
 0x35e   :  { %5081 = vmatprep.mubr.msk.f32.mxu1 %vm715_vm2, %v6681_v14  ;;  %v5789_v14 = vunpack.i.h.bf16 %v6695_v2  ;;  %v5557_v2 = vpack.c.bf16 %v5794_v15, %v5793_v47  ;;  %8238 = vst [vmem:[#allocation18_spill] sm:$0xff] %v6908_v24 }
 0x360   :  { %v3351_v13 = vpop.permute.xlu0 %3350  ;;  %v5551_v45 = vpack.c.bf16 %v5789_v14, %v5788_v50 }
 0x362   :  { %5514 = vmatpush3.bf16.xpose.msk.msra.mxu1 %vm6477_vm3, %v5509_v17 }
 0x363   :  { %5517 = vmatprep.subr.msk.bf16.mxu1 %vm6477_vm3, %v5515_v12 }
 0x364   :  { %v3355_v18 = vpop.permute.xlu0 %3354 }
 0x368   :  { %v3359_v1 = vpop.permute.xlu0 %3358 }
 0x36a   :  { %5520 = vmatpush3.bf16.xpose.msk.msra.mxu1 %vm6477_vm3, %v5515_v12 }
 0x36b   :  { %5547 = vmatprep.subr.msk.bf16.mxu1 %vm6477_vm3, %v5545_v32 }
 0x371   :  { %5082 = vmatmul.mubr.msk.f32.vlgmr.msra.gmra.mrb[56].mxu1 %vm715_vm2, %v2963_v42 }
 0x372   :  { %5084 = vmatprep.mubr.msk.f32.mxu1 %vm715_vm2, %v6706_v7  ;;  %5550 = vmatpush3.bf16.xpose.msk.msra.mxu1 %vm6477_vm3, %v5545_v32 }
 0x373   :  { %5553 = vmatprep.subr.msk.bf16.mxu1 %vm6477_vm3, %v5551_v45 }
 0x375   :  { %5085 = vmatmul.mubr.msk.f32.gmra.mrb[58].mxu1 %vm715_vm2, %v2967_v49 }
 0x376   :  { %5087 = vmatprep.mubr.msk.f32.mxu1 %vm715_vm2, %v2969_v0 }
 0x379   :  { %v409_v21 = vpop.permute.xlu0 %408  ;;  %5088 = vmatmul.mubr.msk.f32.gmra.mrb[60].mxu1 %vm715_vm2, %v6718_v8 }
 0x37a   :  { %v601_v7 = vadd.f32 %v6514_v53, %v409_v21  ;;  %5090 = vmatprep.mubr.msk.f32.mxu1 %vm715_vm2, %v2973_v40  ;;  %5556 = vmatpush3.bf16.xpose.msk.msra.mxu1 %vm6477_vm3, %v5551_v45  ;;  %v6912_v53 = vpop.permute.xlu1 %453 }
 0x37b   :  { %5559 = vmatprep.subr.msk.bf16.mxu1 %vm6477_vm3, %v5557_v2  ;;  %8239 = vst [vmem:[#allocation19_spill] sm:$0xff] %v6912_v53 }
 0x37c   :  { %2710 = vrot.lane.b32.xlu0 %v601_v7, %s6074_s17  ;;  %4837 = vmatprep.mubr.msk.f32.mxu0 %vm72_vm1, %v601_v7 }
 0x37e   :  { %v6914_v8 = vpop.permute.xlu1 %463 }
 0x37f   :  { %8240 = vst [vmem:[#allocation20_spill] sm:$0xff] %v6914_v8 }
 0x382   :  { %5562 = vmatpush3.bf16.xpose.msk.msra.mxu1 %vm6477_vm3, %v5557_v2 }
 0x392   :  { %v6916_v63 = vpop.permute.xlu1 %2712 }
 0x393   :  { %8241 = vst [vmem:[#allocation21_spill] sm:$0xff] %v6916_v63 }
 0x396   :  { %v5802_v26 = vpop.permute.xlu1 %5801 }
 0x397   :  { %v5804_v27 = vunpack.i.h.bf16 %v5802_v26  ;;  %v5803_v28 = vunpack.i.l.bf16 %v5802_v26 }
 0x399   :  { %v5563_v4 = vpack.c.bf16 %v5804_v27, %v5803_v28 }
 0x39a   :  { %v2975_v23 = vpop.permute.xlu1 %2974 }
 0x39b   :  { %5091 = vmatmul.mubr.msk.f32.gmra.mrb[62].mxu1 %vm715_vm2, %v2975_v23  ;;  %5565 = vmatprep.subr.msk.bf16.mxu1 %vm6477_vm3, %v5563_v4 }
 0x39c   :  { %5568 = vmatpush3.bf16.xpose.msk.msra.mxu1 %vm6477_vm3, %v5563_v4  ;;  %5131 = vmatprep.mubr.msk.f32.mxu1 %vm715_vm2, %v3347_v56 }
 0x39e   :  { %v3361_v49 = vpop.permute.xlu1 %3360 }
 0x3a3   :  { %5132 = vmatmul.mubr.msk.f32.vlgmr.msra.gmra.mrb[64].mxu1 %vm715_vm2, %v6728_v36  ;;  %v6926_v42 = vpop.f32.mrb[16].mxu1 }
 0x3a4   :  { %5134 = vmatprep.mubr.msk.f32.mxu1 %vm715_vm2, %v3351_v13  ;;  %v6929_v59 = vpop.f32.mrb[17].mxu1  ;;  %v1113_v29 = vsel %vm72_vm1, %v6926_v42, -inf }
 0x3a5   :  { %1114 = vmax.xlane.f32.xlu1 %v1113_v29  ;;  %v1110_v54 = vsel %vm72_vm1, %v6929_v59, -inf }
 0x3a6   :  { %1111 = vmax.xlane.f32.xlu0 %v1110_v54 }
 0x3a7   :  { %5135 = vmatmul.mubr.msk.f32.gmra.mrb[66].mxu1 %vm715_vm2, %v6735_v60  ;;  %v6937_v39 = vpop.f32.mrb[18].mxu1 }
 0x3a8   :  { %5137 = vmatprep.mubr.msk.f32.mxu1 %vm715_vm2, %v3355_v18  ;;  %v6940_v36 = vpop.f32.mrb[19].mxu1  ;;  %v1119_v10 = vsel %vm72_vm1, %v6937_v39, -inf }
 0x3a9   :  { %v1116_v32 = vsel %vm72_vm1, %v6940_v36, -inf }
 0x3ab   :  { %5138 = vmatmul.mubr.msk.f32.gmra.mrb[68].mxu1 %vm715_vm2, %v6752_v25  ;;  %v6944_v16 = vpop.f32.mrb[20].mxu1 }
 0x3ac   :  { %5140 = vmatprep.mubr.msk.f32.mxu1 %vm715_vm2, %v3359_v1  ;;  %v6947_v37 = vpop.f32.mrb[21].mxu1  ;;  %v1125_v44 = vsel %vm72_vm1, %v6944_v16, -inf }
 0x3ad   :  { %v1122_v15 = vsel %vm72_vm1, %v6947_v37, -inf }
 0x3af   :  { %5141 = vmatmul.mubr.msk.f32.gmra.mrb[70].mxu1 %vm715_vm2, %v3361_v49  ;;  %v6950_v38 = vpop.f32.mrb[8].mxu0 }
 0x3b0   :  { %v6952_v60 = vpop.f32.mrb[9].mxu0  ;;  %v856_v52 = vsel %vm72_vm1, %v6950_v38, -inf }
 0x3b1   :  { %857 = vmax.xlane.f32.xlu1 %v856_v52  ;;  %v853_v25 = vsel %vm72_vm1, %v6952_v60, -inf }
 0x3b2   :  { %854 = vmax.xlane.f32.xlu0 %v853_v25 }
 0x3b3   :  { %v6958_v0 = vpop.f32.mrb[10].mxu0 }
 0x3b4   :  { %v6960_v17 = vpop.f32.mrb[11].mxu0  ;;  %v862_v41 = vsel %vm72_vm1, %v6958_v0, -inf }
 0x3b5   :  { %863 = vmax.xlane.f32.xlu1 %v862_v41  ;;  %v859_v18 = vsel %vm72_vm1, %v6960_v17, -inf }
 0x3b6   :  { %1120 = vmax.xlane.f32.xlu0 %v1119_v10 }
 0x3b7   :  { %v6966_v40 = vpop.f32.mrb[12].mxu0  ;;  %v6968_v12 = vpop.f32.mrb[22].mxu1 }
 0x3b8   :  { %v6970_v56 = vpop.f32.mrb[13].mxu0  ;;  %v6972_v20 = vpop.f32.mrb[23].mxu1  ;;  %v868_v50 = vsel %vm72_vm1, %v6966_v40, -inf  ;;  %v1131_v45 = vsel %vm72_vm1, %v6968_v12, -inf }
 0x3b9   :  { %1126 = vmax.xlane.f32.xlu1 %v1125_v44  ;;  %v865_v21 = vsel %vm72_vm1, %v6970_v56, -inf  ;;  %v1128_v28 = vsel %vm72_vm1, %v6972_v20, -inf }
 0x3ba   :  { %1117 = vmax.xlane.f32.xlu0 %v1116_v32 }
 0x3bb   :  { %v6978_v13 = vpop.f32.mrb[14].mxu0 }
 0x3bc   :  { %v6980_v14 = vpop.f32.mrb[15].mxu0  ;;  %v874_v2 = vsel %vm72_vm1, %v6978_v13, -inf }
 0x3bd   :  { %869 = vmax.xlane.f32.xlu1 %v868_v50  ;;  %v871_v23 = vsel %vm72_vm1, %v6980_v14, -inf }
 0x3be   :  { %860 = vmax.xlane.f32.xlu0 %v859_v18 }
 0x3c1   :  { %1132 = vmax.xlane.f32.xlu1 %v1131_v45 }
 0x3c2   :  { %1123 = vmax.xlane.f32.xlu0 %v1122_v15 }
 0x3c3   :  { %v6990_v47 = vpop.f32.mrb[24].mxu1 }
 0x3c4   :  { %v6992_v1 = vpop.f32.mrb[25].mxu1  ;;  %v1612_v27 = vsel %vm72_vm1, %v6990_v47, -inf }
 0x3c5   :  { %875 = vmax.xlane.f32.xlu1 %v874_v2  ;;  %v1609_v52 = vsel %vm72_vm1, %v6992_v1, -inf }
 0x3c6   :  { %866 = vmax.xlane.f32.xlu0 %v865_v21 }
 0x3c7   :  { %v6998_v7 = vpop.f32.mrb[26].mxu1 }
 0x3c8   :  { %v7000_v26 = vpop.f32.mrb[27].mxu1  ;;  %v1618_v4 = vsel %vm72_vm1, %v6998_v7, -inf }
 0x3c9   :  { %1613 = vmax.xlane.f32.xlu1 %v1612_v27  ;;  %v1615_v25 = vsel %vm72_vm1, %v7000_v26, -inf }
 0x3ca   :  { %1129 = vmax.xlane.f32.xlu0 %v1128_v28 }
 0x3cd   :  { %1619 = vmax.xlane.f32.xlu1 %v1618_v4 }
 0x3ce   :  { %872 = vmax.xlane.f32.xlu0 %v871_v23 }
 0x3cf   :  { %v7010_v29 = vpop.f32.mrb[28].mxu1 }
 0x3d0   :  { %v7012_v54 = vpop.f32.mrb[29].mxu1  ;;  %v1624_v49 = vsel %vm72_vm1, %v7010_v29, -inf }
 0x3d1   :  { %1625 = vmax.xlane.f32.xlu1 %v1624_v49  ;;  %v1621_v41 = vsel %vm72_vm1, %v7012_v54, -inf }
 0x3d2   :  { %1610 = vmax.xlane.f32.xlu0 %v1609_v52 }
 0x3d6   :  { %1616 = vmax.xlane.f32.xlu0 %v1615_v25 }
 0x3da   :  { %1622 = vmax.xlane.f32.xlu0 %v1621_v41 }
 0x3db   :  { %v7022_v10 = vpop.f32.mrb[30].mxu1 }
 0x3dc   :  { %v7024_v44 = vpop.f32.mrb[31].mxu1  ;;  %v1630_v32 = vsel %vm72_vm1, %v7022_v10, -inf }
 0x3dd   :  { %1631 = vmax.xlane.f32.xlu1 %v1630_v32  ;;  %v1627_v50 = vsel %vm72_vm1, %v7024_v44, -inf }
 0x3de   :  { %1628 = vmax.xlane.f32.xlu0 %v1627_v50 }
 0x3e3   :  { %v7030_v18 = vpop.f32.mrb[32].mxu1 }
 0x3e4   :  { %v7032_v45 = vpop.f32.mrb[33].mxu1  ;;  %v1994_v15 = vsel %vm72_vm1, %v7030_v18, -inf }
 0x3e5   :  { %1995 = vmax.xlane.f32.xlu1 %v1994_v15  ;;  %v1991_v2 = vsel %vm72_vm1, %v7032_v45, -inf }
 0x3e6   :  { %1992 = vmax.xlane.f32.xlu0 %v1991_v2  ;;  %v7062_v2 = vpop.permute.xlu0 %418 }
 0x3eb   :  { %v7038_v21 = vpop.f32.mrb[34].mxu1 }
 0x3ec   :  { %v7040_v27 = vpop.f32.mrb[35].mxu1  ;;  %v2000_v28 = vsel %vm72_vm1, %v7038_v21, -inf }
 0x3ed   :  { %2001 = vmax.xlane.f32.xlu1 %v2000_v28  ;;  %v1997_v4 = vsel %vm72_vm1, %v7040_v27, -inf  ;;  %v7064_v28 = vpop.permute.xlu0 %388 }
 0x3ee   :  { %1998 = vmax.xlane.f32.xlu0 %v1997_v4 }
 0x3f0   :  { %v7046_v23 = vpop.f32.mrb[36].mxu1 }
 0x3f1   :  { %v7048_v49 = vpop.f32.mrb[37].mxu1  ;;  %v2006_v52 = vsel %vm72_vm1, %v7046_v23, -inf }
 0x3f2   :  { %2007 = vmax.xlane.f32.xlu1 %v2006_v52  ;;  %v2003_v25 = vsel %vm72_vm1, %v7048_v49, -inf }
 0x3f3   :  { %2004 = vmax.xlane.f32.xlu0 %v2003_v25 }
 0x3f4   :  { %v7054_v41 = vpop.f32.mrb[38].mxu1 }
 0x3f5   :  { %v7056_v32 = vpop.f32.mrb[39].mxu1  ;;  %v2012_v50 = vsel %vm72_vm1, %v7054_v41, -inf }
 0x3f6   :  { %2013 = vmax.xlane.f32.xlu1 %v2012_v50  ;;  %v2009_v15 = vsel %vm72_vm1, %v7056_v32, -inf  ;;  %v7074_v50 = vpop.permute.xlu0 %393 }
 0x3f7   :  { %2010 = vmax.xlane.f32.xlu0 %v2009_v15 }
 0x3fa   :  { %v7084_v63 = vpop.permute.xlu0 %398 }
 0x3fb   :  { %8242 = vst [vmem:[#allocation22_spill] sm:$0xff] %v7084_v63 }
 0x3fe   :  { %v7100_v53 = vpop.permute.xlu0 %403 }
 0x3ff   :  { %8244 = vst [vmem:[#allocation24_spill] sm:$0xff] %v7100_v53 }
 0x404   :  { %v7066_v4 = vpop.f32.mrb[40].mxu1 }
 0x405   :  { %v7068_v52 = vpop.f32.mrb[41].mxu1  ;;  %v2368_v25 = vsel %vm72_vm1, %v7066_v4, -inf }
 0x406   :  { %2369 = vmax.xlane.f32.xlu1 %v2368_v25  ;;  %v2365_v34 = vsel %vm72_vm1, %v7068_v52, -inf }
 0x407   :  { %2366 = vmax.xlane.f32.xlu0 %v2365_v34 }
 0x408   :  { %v7076_v33 = vpop.f32.mrb[42].mxu1 }
 0x409   :  { %v7078_v15 = vpop.f32.mrb[43].mxu1  ;;  %v2374_v30 = vsel %vm72_vm1, %v7076_v33, -inf }
 0x40a   :  { %2375 = vmax.xlane.f32.xlu1 %v2374_v30  ;;  %v2371_v25 = vsel %vm72_vm1, %v7078_v15, -inf }
 0x40c   :  { %v7082_v31 = vpop.f32.mrb[44].mxu1 }
 0x40d   :  { %v7086_v35 = vpop.f32.mrb[45].mxu1  ;;  %v2380_v34 = vsel %vm72_vm1, %v7082_v31, -inf }
 0x40e   :  { %2372 = vmax.xlane.f32.xlu1 %v2371_v25  ;;  %2381 = vmax.xlane.f32.xlu0 %v2380_v34  ;;  %v2377_v11 = vsel %vm72_vm1, %v7086_v35, -inf  ;;  %v7104_v25 = vpop.permute.xlu0 %433 }
 0x40f   :  { %8245 = vst [vmem:[#allocation25_spill] sm:$0xff] %v7104_v25 }
 0x410   :  { %v7092_v8 = vpop.f32.mrb[46].mxu1 }
 0x411   :  { %8243 = vst [vmem:[#allocation23_spill] sm:$0xff] %v7092_v8  ;;  %v7094_v6 = vpop.f32.mrb[47].mxu1  ;;  %v2386_v30 = vsel %vm72_vm1, %v7092_v8, -inf }
 0x412   :  { %2387 = vmax.xlane.f32.xlu1 %v2386_v30  ;;  %2378 = vmax.xlane.f32.xlu0 %v2377_v11  ;;  %v2383_v19 = vsel %vm72_vm1, %v7094_v6, -inf  ;;  %v7106_v34 = vpop.permute.xlu0 %438 }
 0x413   :  { %8246 = vst [vmem:[#allocation26_spill] sm:$0xff] %v7106_v34 }
 0x416   :  { %2384 = vmax.xlane.f32.xlu0 %v2383_v19  ;;  %v7110_v24 = vpop.permute.xlu0 %448 }
 0x417   :  { %8248 = vst [vmem:[#allocation28_spill] sm:$0xff] %v7110_v24 }
 0x41a   :  { %v7126_v25 = vpop.permute.xlu0 %458 }
 0x41b   :  { %8250 = vst [vmem:[#allocation30_spill] sm:$0xff] %v7126_v25 }
 0x41e   :  { %v7136_v48 = vpop.permute.xlu0 %2710 }
 0x41f   :  { %8253 = vst [vmem:[#allocation33_spill] sm:$0xff] %v7136_v48 }
 0x424   :  { %v7108_v3 = vpop.f32.mrb[48].mxu1 }
 0x425   :  { %8247 = vst [vmem:[#allocation27_spill] sm:$0xff] %v7108_v3  ;;  %v7112_v9 = vpop.f32.mrb[49].mxu1  ;;  %v2625_v30 = vsel %vm72_vm1, %v7108_v3, -inf }
 0x426   :  { %2626 = vmax.xlane.f32.xlu1 %v2625_v30  ;;  %v2622_v11 = vsel %vm72_vm1, %v7112_v9, -inf }
 0x427   :  { %2623 = vmax.xlane.f32.xlu0 %v2622_v11 }
 0x428   :  { %v7118_v61 = vpop.f32.mrb[50].mxu1 }
 0x429   :  { %8249 = vst [vmem:[#allocation29_spill] sm:$0xff] %v7118_v61  ;;  %v7120_v19 = vpop.f32.mrb[51].mxu1  ;;  %v2631_v34 = vsel %vm72_vm1, %v7118_v61, -inf }
 0x42a   :  { %2632 = vmax.xlane.f32.xlu1 %v2631_v34  ;;  %v2628_v24 = vsel %vm72_vm1, %v7120_v19, -inf }
 0x42b   :  { %2629 = vmax.xlane.f32.xlu0 %v2628_v24 }
 0x42c   :  { %v7128_v62 = vpop.f32.mrb[52].mxu1 }
 0x42d   :  { %8251 = vst [vmem:[#allocation31_spill] sm:$0xff] %v7128_v62  ;;  %v7130_v30 = vpop.f32.mrb[53].mxu1  ;;  %v2637_v11 = vsel %vm72_vm1, %v7128_v62, -inf }
 0x42e   :  { %8252 = vst [vmem:[#allocation32_spill] sm:$0xff] %v7130_v30  ;;  %2638 = vmax.xlane.f32.xlu1 %v2637_v11  ;;  %v2634_v22 = vsel %vm72_vm1, %v7130_v30, -inf }
 0x42f   :  { %2635 = vmax.xlane.f32.xlu0 %v2634_v22 }
 0x430   :  { %v7138_v34 = vpop.f32.mrb[54].mxu1 }
 0x431   :  { %8254 = vst [vmem:[#allocation34_spill] sm:$0xff] %v7138_v34  ;;  %v7140_v53 = vpop.f32.mrb[55].mxu1  ;;  %v2643_v24 = vsel %vm72_vm1, %v7138_v34, -inf }
 0x432   :  { %2644 = vmax.xlane.f32.xlu1 %v2643_v24  ;;  %v1115_v25 = vpop.xlane.xlu1 %1114  ;;  %v2640_v51 = vsel %vm72_vm1, %v7140_v53, -inf }
 0x433   :  { %v1135_v11 = vsub.f32 %v6926_v42, %v1115_v25  ;;  %2641 = vmax.xlane.f32.xlu0 %v2640_v51  ;;  %v1112_v63 = vpop.xlane.xlu0 %1111 }
 0x434   :  { %v1134_v55 = vsub.f32 %v6929_v59, %v1112_v63 }
 0x435   :  { %v1144_v48 = vmul.f32 1.442695, %v1135_v11 }
 0x436   :  { %v1142_v22 = vmul.f32 1.442695, %v1134_v55 }
 0x437   :  { %5807 = vpow2.f32 %v1144_v48 }
 0x438   :  { %5809 = vpow2.f32 %v1142_v22 }
 0x43e   :  { %v858_v30 = vpop.xlane.xlu1 %857 }
 0x43f   :  { %v878_v62 = vsub.f32 %v6950_v38, %v858_v30  ;;  %v855_v61 = vpop.xlane.xlu0 %854 }
 0x440   :  { %v877_v24 = vsub.f32 %v6952_v60, %v855_v61 }
 0x441   :  { %v7150_v34 = vpop.eup %5807  ;;  %v887_v3 = vmul.f32 1.442695, %v878_v62 }
 0x442   :  { %v7152_v8 = vpop.eup %5809  ;;  %v885_v42 = vmul.f32 1.442695, %v877_v24  ;;  %v864_v51 = vpop.xlane.xlu1 %863  ;;  %v1161_v63 = vsel %vm72_vm1, %v7150_v34, 0.0 }
 0x443   :  { %8255 = vst [vmem:[#allocation35_spill] sm:$0xff] %v7152_v8  ;;  %5811 = vpow2.f32 %v887_v3  ;;  %v1121_v55 = vpop.xlane.xlu0 %1120  ;;  %1162 = vadd.xlane.f32.xlu1 %v1161_v63  ;;  %v1158_v48 = vsel %vm72_vm1, %v7152_v8, 0.0  ;;  %v880_v62 = vsub.f32 %v6958_v0, %v864_v51 }
 0x444   :  { %5813 = vpow2.f32 %v885_v42  ;;  %v1137_v59 = vsub.f32 %v6937_v39, %v1121_v55  ;;  %v7159_v61 = vpop.f32.mrb[56].mxu1  ;;  %1159 = vadd.xlane.f32.xlu0 %v1158_v48 }
 0x445   :  { %v7162_v38 = vpop.f32.mrb[57].mxu1  ;;  %v891_v22 = vmul.f32 1.442695, %v880_v62 }
 0x446   :  { %v1148_v60 = vmul.f32 1.442695, %v1137_v59  ;;  %v1127_v25 = vpop.xlane.xlu1 %1126 }
 0x447   :  { %v1118_v30 = vpop.xlane.xlu0 %1117 }
 0x448   :  { %v1136_v3 = vsub.f32 %v6940_v36, %v1118_v30  ;;  %v7165_v11 = vpop.f32.mrb[58].mxu1  ;;  %5815 = vpow2.f32 %v1148_v60 }
 0x449   :  { %v7167_v24 = vpop.f32.mrb[59].mxu1 }
 0x44a   :  { %v1146_v42 = vmul.f32 1.442695, %v1136_v3  ;;  %v870_v39 = vpop.xlane.xlu1 %869  ;;  %v1139_v3 = vsub.f32 %v6944_v16, %v1127_v25 }
 0x44b   :  { %v861_v63 = vpop.xlane.xlu0 %860 }
 0x44c   :  { %5817 = vpow2.f32 %v1146_v42  ;;  %v879_v55 = vsub.f32 %v6960_v17, %v861_v63  ;;  %v7170_v0 = vpop.f32.mrb[60].mxu1  ;;  %v3132_v63 = vsel %vm72_vm1, %v7159_v61, -inf }
 0x44d   :  { %v7172_v51 = vpop.eup %5811  ;;  %5819 = vpow2.f32 %v891_v22  ;;  %v7174_v48 = vpop.f32.mrb[61].mxu1 }
 0x44e   :  { %8256 = vst [vmem:[#allocation36_spill] sm:$0xff] %v7172_v51  ;;  %v7176_v36 = vpop.eup %5813  ;;  %v889_v59 = vmul.f32 1.442695, %v879_v55  ;;  %v904_v62 = vsel %vm72_vm1, %v7172_v51, 0.0  ;;  %v1133_v22 = vpop.xlane.xlu1 %1132 }
 0x44f   :  { %8257 = vst [vmem:[#allocation37_spill] sm:$0xff] %v7176_v36  ;;  %v1124_v60 = vpop.xlane.xlu0 %1123  ;;  %905 = vadd.xlane.f32.xlu1 %v904_v62  ;;  %v901_v30 = vsel %vm72_vm1, %v7176_v36, 0.0  ;;  %v3129_v62 = vsel %vm72_vm1, %v7162_v38, -inf }
 0x450   :  { %5821 = vpow2.f32 %v889_v59  ;;  %v1138_v17 = vsub.f32 %v6947_v37, %v1124_v60  ;;  %902 = vadd.xlane.f32.xlu0 %v901_v30  ;;  %v1152_v37 = vmul.f32 1.442695, %v1139_v3  ;;  %v882_v60 = vsub.f32 %v6966_v40, %v870_v39 }
 0x451   :  { %v1141_v40 = vsub.f32 %v6968_v12, %v1133_v22 }
 0x452   :  { %v1150_v42 = vmul.f32 1.442695, %v1138_v17  ;;  %v7186_v55 = vpop.eup %5815  ;;  %v876_v36 = vpop.xlane.xlu1 %875 }
 0x453   :  { %v867_v8 = vpop.xlane.xlu0 %866  ;;  %3133 = vmax.xlane.f32.xlu1 %v3132_v63  ;;  %v1167_v30 = vsel %vm72_vm1, %v7186_v55, 0.0  ;;  %v884_v39 = vsub.f32 %v6978_v13, %v876_v36  ;;  %v3138_v13 = vsel %vm72_vm1, %v7165_v11, -inf }
 0x454   :  { %5823 = vpow2.f32 %v1150_v42  ;;  %v881_v59 = vsub.f32 %v6970_v56, %v867_v8  ;;  %3130 = vmax.xlane.f32.xlu0 %v3129_v62  ;;  %v895_v8 = vmul.f32 1.442695, %v882_v60 }
 0x455   :  { %v899_v12 = vmul.f32 1.442695, %v884_v39 }
 0x456   :  { %v7192_v16 = vpop.eup %5817  ;;  %v893_v25 = vmul.f32 1.442695, %v881_v59 }
 0x457   :  { %v7196_v17 = vpop.eup %5819  ;;  %v1130_v63 = vpop.xlane.xlu0 %1129  ;;  %1168 = vadd.xlane.f32.xlu1 %v1167_v30  ;;  %v1164_v42 = vsel %vm72_vm1, %v7192_v16, 0.0 }
 0x458   :  { %8258 = vst [vmem:[#allocation38_spill] sm:$0xff] %v7196_v17  ;;  %5825 = vpow2.f32 %v893_v25  ;;  %1165 = vadd.xlane.f32.xlu0 %v1164_v42  ;;  %v910_v3 = vsel %vm72_vm1, %v7196_v17, 0.0  ;;  %v1156_v25 = vmul.f32 1.442695, %v1141_v40  ;;  %v1140_v22 = vsub.f32 %v6972_v20, %v1130_v63 }
 0x459   :  { %5827 = vpow2.f32 %v1152_v37  ;;  %v3135_v40 = vsel %vm72_vm1, %v7167_v24, -inf }
 0x45a   :  { %v7201_v56 = vpop.eup %5821  ;;  %5829 = vpow2.f32 %v895_v8  ;;  %v1614_v8 = vpop.xlane.xlu1 %1613 }
 0x45b   :  { %8259 = vst [vmem:[#allocation39_spill] sm:$0xff] %v7201_v56  ;;  %v873_v62 = vpop.xlane.xlu0 %872  ;;  %911 = vadd.xlane.f32.xlu1 %v910_v3  ;;  %v907_v59 = vsel %vm72_vm1, %v7201_v56, 0.0  ;;  %5831 = vpow2.f32 %v1156_v25  ;;  %v1634_v3 = vsub.f32 %v6990_v47, %v1614_v8 }
 0x45c   :  { %908 = vadd.xlane.f32.xlu0 %v907_v59  ;;  %v883_v37 = vsub.f32 %v6980_v14, %v873_v62  ;;  %5833 = vpow2.f32 %v899_v12  ;;  %v1154_v14 = vmul.f32 1.442695, %v1140_v22 }
 0x45d   :  { %v1643_v12 = vmul.f32 1.442695, %v1634_v3 }
 0x45e   :  { %v7209_v60 = vpop.eup %5823  ;;  %v897_v30 = vmul.f32 1.442695, %v883_v37  ;;  %v3144_v37 = vsel %vm72_vm1, %v7170_v0, -inf  ;;  %v1620_v22 = vpop.xlane.xlu1 %1619 }
 0x45f   :  { %8260 = vst [vmem:[#allocation40_spill] sm:$0xff] %v7209_v60  ;;  %3139 = vmax.xlane.f32.xlu1 %v3138_v13  ;;  %v1170_v36 = vsel %vm72_vm1, %v7209_v60, 0.0  ;;  %v1611_v20 = vpop.xlane.xlu0 %1610 }
 0x460   :  { %1171 = vadd.xlane.f32.xlu0 %v1170_v36  ;;  %5835 = vpow2.f32 %v897_v30  ;;  %v1633_v62 = vsub.f32 %v6992_v1, %v1611_v20  ;;  %v3141_v1 = vsel %vm72_vm1, %v7174_v48, -inf }
 0x461   :  { %5837 = vpow2.f32 %v1154_v14  ;;  %v1636_v14 = vsub.f32 %v6998_v7, %v1620_v22 }
 0x462   :  { %v7216_v42 = vpop.eup %5825  ;;  %v1641_v13 = vmul.f32 1.442695, %v1633_v62  ;;  %5839 = vpow2.f32 %v1643_v12 }
 0x463   :  { %8261 = vst [vmem:[#allocation41_spill] sm:$0xff] %v7216_v42  ;;  %v7220_v39 = vpop.eup %5827  ;;  %3136 = vmax.xlane.f32.xlu1 %v3135_v40  ;;  %v913_v63 = vsel %vm72_vm1, %v7216_v42, 0.0  ;;  %v1617_v30 = vpop.xlane.xlu0 %1616  ;;  %v1647_v7 = vmul.f32 1.442695, %v1636_v14 }
 0x464   :  { %8262 = vst [vmem:[#allocation42_spill] sm:$0xff] %v7220_v39  ;;  %914 = vadd.xlane.f32.xlu0 %v913_v63  ;;  %v1173_v59 = vsel %vm72_vm1, %v7220_v39, 0.0  ;;  %v7228_v25 = vpop.eup %5829  ;;  %5841 = vpow2.f32 %v1641_v13  ;;  %v1635_v40 = vsub.f32 %v7000_v26, %v1617_v30  ;;  %v1626_v42 = vpop.xlane.xlu1 %1625 }
 0x465   :  { %8263 = vst [vmem:[#allocation43_spill] sm:$0xff] %v7228_v25  ;;  %v916_v47 = vsel %vm72_vm1, %v7228_v25, 0.0  ;;  %v7234_v36 = vpop.eup %5831  ;;  %5843 = vpow2.f32 %v1647_v7 }
 0x466   :  { %8264 = vst [vmem:[#allocation44_spill] sm:$0xff] %v7234_v36  ;;  %v7238_v8 = vpop.eup %5833  ;;  %v1179_v63 = vsel %vm72_vm1, %v7234_v36, 0.0  ;;  %v1645_v12 = vmul.f32 1.442695, %v1635_v40 }
 0x467   :  { %1174 = vadd.xlane.f32.xlu1 %v1173_v59  ;;  %8265 = vst [vmem:[#allocation45_spill] sm:$0xff] %v7238_v8  ;;  %v922_v59 = vsel %vm72_vm1, %v7238_v8, 0.0 }
 0x468   :  { %3145 = vmax.xlane.f32.xlu0 %v3144_v37  ;;  %5845 = vpow2.f32 %v1645_v12 }
 0x46a   :  { %v7246_v3 = vpop.eup %5835  ;;  %v1632_v25 = vpop.xlane.xlu1 %1631 }
 0x46b   :  { %917 = vadd.xlane.f32.xlu1 %v916_v47  ;;  %8267 = vst [vmem:[#allocation47_spill] sm:$0xff] %v7246_v3  ;;  %v7252_v37 = vpop.eup %5837  ;;  %v919_v26 = vsel %vm72_vm1, %v7246_v3, 0.0 }
 0x46c   :  { %3142 = vmax.xlane.f32.xlu0 %v3141_v1  ;;  %8269 = vst [vmem:[#allocation49_spill] sm:$0xff] %v7252_v37  ;;  %v1176_v22 = vsel %vm72_vm1, %v7252_v37, 0.0  ;;  %v7262_v30 = vpop.eup %5839 }
 0x46d   :  { %8271 = vst [vmem:[#allocation51_spill] sm:$0xff] %v7262_v30 }
 0x46e   :  { %v7242_v20 = vpop.f32.mrb[62].mxu1  ;;  %v7268_v40 = vpop.eup %5841 }
 0x46f   :  { %8266 = vst [vmem:[#allocation46_spill] sm:$0xff] %v7242_v20  ;;  %v7248_v62 = vpop.f32.mrb[63].mxu1  ;;  %1180 = vadd.xlane.f32.xlu1 %v1179_v63  ;;  %v3150_v47 = vsel %vm72_vm1, %v7242_v20, -inf  ;;  %8273 = vst [vmem:[#allocation53_spill] sm:$0xff] %v7268_v40  ;;  %v1657_v12 = vsel %vm72_vm1, %v7268_v40, 0.0 }
 0x470   :  { %8268 = vst [vmem:[#allocation48_spill] sm:$0xff] %v7248_v62  ;;  %923 = vadd.xlane.f32.xlu0 %v922_v59  ;;  %v3147_v14 = vsel %vm72_vm1, %v7248_v62, -inf  ;;  %v1660_v59 = vsel %vm72_vm1, %v7262_v30, 0.0 }
 0x472   :  { %v7298_v56 = vpop.xlane.xlu1 %1995 }
 0x473   :  { %920 = vadd.xlane.f32.xlu1 %v919_v26 }
 0x474   :  { %1177 = vadd.xlane.f32.xlu0 %v1176_v22 }
 0x476   :  { %v7258_v13 = vpop.f32.mrb[64].mxu1 }
 0x477   :  { %8270 = vst [vmem:[#allocation50_spill] sm:$0xff] %v7258_v13  ;;  %v7264_v1 = vpop.f32.mrb[65].mxu1  ;;  %3151 = vmax.xlane.f32.xlu1 %v3150_v47  ;;  %v3518_v22 = vsel %vm72_vm1, %v7258_v13, -inf  ;;  %v7282_v47 = vpop.eup %5843 }
 0x478   :  { %8272 = vst [vmem:[#allocation52_spill] sm:$0xff] %v7264_v1  ;;  %3148 = vmax.xlane.f32.xlu0 %v3147_v14  ;;  %8274 = vst [vmem:[#allocation54_spill] sm:$0xff] %v7282_v47  ;;  %v3515_v30 = vsel %vm72_vm1, %v7264_v1, -inf  ;;  %v7288_v8 = vpop.eup %5845 }
 0x479   :  { %8275 = vst [vmem:[#allocation55_spill] sm:$0xff] %v7288_v8  ;;  %v1663_v3 = vsel %vm72_vm1, %v7288_v8, 0.0 }
 0x47a   :  { %v7270_v63 = vpop.f32.mrb[66].mxu1  ;;  %v7304_v36 = vpop.xlane.xlu1 %2001 }
 0x47b   :  { %v7274_v7 = vpop.f32.mrb[67].mxu1  ;;  %1661 = vadd.xlane.f32.xlu1 %v1660_v59 }
 0x47c   :  { %1658 = vadd.xlane.f32.xlu0 %v1657_v12  ;;  %v1666_v12 = vsel %vm72_vm1, %v7282_v47, 0.0  ;;  %v7314_v47 = vadd.f32 %v6529_v58, %v7062_v2 }
 0x47e   :  { %v7278_v26 = vpop.f32.mrb[68].mxu1  ;;  %8278 = vst [vmem:[#allocation58_spill] sm:$0xff] %v7314_v47 }
 0x47f   :  { %v7284_v14 = vpop.f32.mrb[69].mxu1  ;;  %3519 = vmax.xlane.f32.xlu1 %v3518_v22  ;;  %v1623_v22 = vpop.xlane.xlu0 %1622 }
 0x480   :  { %3516 = vmax.xlane.f32.xlu0 %v3515_v30  ;;  %v7302_v30 = vadd.f32 %v6525_v57, %v6893_v5  ;;  %v7320_v57 = vadd.f32 %v6485_v43, %v7074_v50  ;;  %v7322_v5 = vpop.xlane.xlu1 %2007  ;;  %v1637_v62 = vsub.f32 %v7012_v54, %v1623_v22 }
 0x482   :  { %v7290_v59 = vpop.f32.mrb[70].mxu1  ;;  %8276 = vst [vmem:[#allocation56_spill] sm:$0xff] %v7302_v30  ;;  %8279 = vst [vmem:[#allocation59_spill] sm:$0xff] %v7320_v57  ;;  %v1649_v60 = vmul.f32 1.442695, %v1637_v62 }
 0x483   :  { %v7294_v40 = vpop.f32.mrb[71].mxu1  ;;  %1667 = vadd.xlane.f32.xlu1 %v1666_v12  ;;  %v1629_v17 = vpop.xlane.xlu0 %1628  ;;  %v7310_v12 = vadd.f32 %v6489_v46, %v7064_v28 }
 0x484   :  { %1664 = vadd.xlane.f32.xlu0 %v1663_v3  ;;  %v7330_v28 = vpop.xlane.xlu1 %2013  ;;  %v1639_v43 = vsub.f32 %v7024_v44, %v1629_v17 }
 0x485   :  { %8277 = vst [vmem:[#allocation57_spill] sm:$0xff] %v7310_v12 }
 0x487   :  { %v1993_v1 = vpop.xlane.xlu0 %1992 }
 0x488   :  { %v2015_v13 = vsub.f32 %v7032_v45, %v1993_v1 }
 0x48a   :  { %v2023_v39 = vmul.f32 1.442695, %v2015_v13 }
 0x48b   :  { %v1999_v3 = vpop.xlane.xlu0 %1998 }
 0x48c   :  { %v2017_v44 = vsub.f32 %v7040_v27, %v1999_v3  ;;  %v3527_v27 = vsel %vm72_vm1, %v7284_v14, -inf  ;;  %v3521_v3 = vsel %vm72_vm1, %v7274_v7, -inf }
 0x48e   :  { %v2027_v45 = vmul.f32 1.442695, %v2017_v44 }
 0x48f   :  { %v7328_v46 = vpop.xlane.xlu0 %2004 }
 0x493   :  { %v2011_v58 = vpop.xlane.xlu0 %2010  ;;  %v2370_v2 = vpop.xlane.xlu1 %2369 }
 0x494   :  { %2716 = vrot.lane.b32.xlu1 %v7302_v30, %s6074_s17  ;;  %v1653_v30 = vmul.f32 1.442695, %v1639_v43  ;;  %v3530_v43 = vsel %vm72_vm1, %v7278_v26, -inf  ;;  %v2021_v54 = vsub.f32 %v7056_v32, %v2011_v58  ;;  %v3533_v58 = vsel %vm72_vm1, %v7294_v40, -inf }
 0x496   :  { %5847 = vpow2.f32 %v1653_v30 }
 0x497   :  { %v2367_v8 = vpop.xlane.xlu0 %2366 }
 0x498   :  { %2835 = vrot.lane.b32.xlu1 %v7310_v12, %s6074_s17  ;;  %v7332_v12 = vpop.xlane.xlu1 %2375 }
 0x49a   :  { %2714 = vrot.lane.b32.xlu0 %v7314_v47, %s6074_s17 }
 0x49b   :  { %v7335_v50 = vpop.xlane.xlu0 %2381 }
 0x49c   :  { %2837 = vrot.lane.b32.xlu1 %v7320_v57, %s6074_s17  ;;  %v7337_v37 = vpop.xlane.xlu1 %2372  ;;  %v1638_v57 = vsub.f32 %v7010_v29, %v1626_v42  ;;  %v1640_v29 = vsub.f32 %v7022_v10, %v1632_v25  ;;  %v2390_v10 = vsub.f32 %v7066_v4, %v2370_v2  ;;  %v2389_v4 = vsub.f32 %v7068_v52, %v2367_v8 }
 0x49d   :  { %v2391_v8 = vsub.f32 %v7078_v15, %v7337_v37 }
 0x49e   :  { %v1651_v51 = vmul.f32 1.442695, %v1638_v57  ;;  %v1655_v22 = vmul.f32 1.442695, %v1640_v29  ;;  %v2399_v30 = vmul.f32 1.442695, %v2390_v10 }
 0x49f   :  { %v7339_v47 = vpop.xlane.xlu0 %2378  ;;  %v2397_v52 = vmul.f32 1.442695, %v2389_v4  ;;  %v2401_v15 = vmul.f32 1.442695, %v2391_v8 }
 0x4a0   :  { %v7344_v20 = vpop.xlane.xlu1 %2387  ;;  %5849 = vpow2.f32 %v1651_v51  ;;  %v7359_v13 = vpop.eup %5847  ;;  %v2035_v51 = vmul.f32 1.442695, %v2021_v54  ;;  %v2020_v54 = vsub.f32 %v7046_v23, %v7322_v5 }
 0x4a1   :  { %5851 = vpow2.f32 %v2023_v39  ;;  %v3524_v39 = vsel %vm72_vm1, %v7270_v63, -inf  ;;  %v1675_v32 = vsel %vm72_vm1, %v7359_v13, 0.0 }
 0x4a2   :  { %5853 = vpow2.f32 %v1649_v60  ;;  %v2016_v60 = vsub.f32 %v7030_v18, %v7298_v56  ;;  %v2018_v18 = vsub.f32 %v7038_v21, %v7304_v36  ;;  %v2033_v23 = vmul.f32 1.442695, %v2020_v54 }
 0x4a3   :  { %v7347_v17 = vpop.xlane.xlu0 %2384  ;;  %5855 = vpow2.f32 %v2027_v45 }
 0x4a4   :  { %5857 = vpow2.f32 %v1655_v22  ;;  %v2025_v44 = vmul.f32 1.442695, %v2016_v60  ;;  %v2395_v37 = vsub.f32 %v7094_v6, %v7347_v17  ;;  %v2019_v6 = vsub.f32 %v7048_v49, %v7328_v46 }
 0x4a5   :  { %5859 = vpow2.f32 %v2035_v51  ;;  %v2022_v46 = vsub.f32 %v7054_v41, %v7330_v28  ;;  %v2392_v28 = vsub.f32 %v7076_v33, %v7332_v12  ;;  %v2394_v12 = vsub.f32 %v7082_v31, %v7335_v50 }
 0x4a6   :  { %5861 = vpow2.f32 %v2399_v30  ;;  %v2409_v17 = vmul.f32 1.442695, %v2395_v37  ;;  %v2031_v49 = vmul.f32 1.442695, %v2019_v6  ;;  %v2393_v31 = vsub.f32 %v7086_v35, %v7339_v47 }
 0x4a7   :  { %5863 = vpow2.f32 %v2025_v44  ;;  %v2037_v41 = vmul.f32 1.442695, %v2022_v46  ;;  %v2403_v33 = vmul.f32 1.442695, %v2392_v28 }
 0x4a8   :  { %5865 = vpow2.f32 %v2397_v52 }
 0x4aa   :  { %v7375_v57 = vpop.eup %5849 }
 0x4ab   :  { %v7379_v2 = vpop.eup %5851  ;;  %v1672_v29 = vsel %vm72_vm1, %v7375_v57, 0.0 }
 0x4ac   :  { %v7391_v45 = vpop.eup %5853  ;;  %v2039_v21 = vsel %vm72_vm1, %v7379_v2, 0.0 }
 0x4ad   :  { %v7397_v36 = vpop.eup %5855  ;;  %v1669_v22 = vsel %vm72_vm1, %v7391_v45, 0.0 }
 0x4ae   :  { %v7403_v51 = vpop.eup %5857  ;;  %v2045_v10 = vsel %vm72_vm1, %v7397_v36, 0.0 }
 0x4af   :  { %v1678_v30 = vsel %vm72_vm1, %v7403_v51, 0.0 }
 0x4b3   :  { %v7352_v42 = vpop.xlane.xlu1 %2626 }
 0x4b4   :  { %v7355_v1 = vpop.xlane.xlu0 %2623 }
 0x4b5   :  { %v2646_v60 = vsub.f32 %v7112_v9, %v7355_v1 }
 0x4b7   :  { %v7364_v25 = vpop.xlane.xlu1 %2632  ;;  %v2654_v9 = vmul.f32 1.442695, %v2646_v60 }
 0x4b8   :  { %v7368_v62 = vpop.xlane.xlu0 %2629 }
 0x4b9   :  { %3531 = vmax.xlane.f32.xlu0 %v3530_v43  ;;  %v2648_v1 = vsub.f32 %v7120_v19, %v7368_v62 }
 0x4bb   :  { %v7383_v56 = vpop.xlane.xlu1 %2638  ;;  %v2658_v54 = vmul.f32 1.442695, %v2648_v1  ;;  %v2405_v1 = vmul.f32 1.442695, %v2393_v31 }
 0x4bc   :  { %v7387_v43 = vpop.xlane.xlu0 %2635 }
 0x4bd   :  { %3528 = vmax.xlane.f32.xlu0 %v3527_v27  ;;  %v2029_v27 = vmul.f32 1.442695, %v2018_v18  ;;  %v3536_v18 = vsel %vm72_vm1, %v7290_v59, -inf }
 0x4bf   :  { %v7405_v5 = vpop.xlane.xlu1 %2644  ;;  %5867 = vpow2.f32 %v2029_v27 }
 0x4c0   :  { %3525 = vmax.xlane.f32.xlu1 %v3524_v39  ;;  %v7409_v39 = vpop.eup %5859  ;;  %5869 = vpow2.f32 %v2401_v15 }
 0x4c1   :  { %1676 = vadd.xlane.f32.xlu0 %v1675_v32  ;;  %v2642_v32 = vpop.xlane.xlu0 %2641  ;;  %5871 = vpow2.f32 %v2033_v23 }
 0x4c2   :  { %v2652_v19 = vsub.f32 %v7140_v53, %v2642_v32 }
 0x4c4   :  { %3522 = vmax.xlane.f32.xlu1 %v3521_v3  ;;  %v2057_v3 = vsel %vm72_vm1, %v7409_v39, 0.0 }
 0x4c5   :  { %3534 = vmax.xlane.f32.xlu0 %v3533_v58  ;;  %v7419_v58 = vpop.eup %5861 }
 0x4c6   :  { %v7427_v52 = vpop.eup %5863  ;;  %v2416_v8 = vsel %vm72_vm1, %v7419_v58, 0.0 }
 0x4c7   :  { %v2042_v62 = vsel %vm72_vm1, %v7427_v52, 0.0 }
 0x4c8   :  { %1673 = vadd.xlane.f32.xlu1 %v1672_v29  ;;  %v7431_v29 = vpop.eup %5865 }
 0x4c9   :  { %2040 = vadd.xlane.f32.xlu0 %v2039_v21  ;;  %v7438_v21 = vpop.eup %5867  ;;  %v2413_v27 = vsel %vm72_vm1, %v7431_v29, 0.0 }
 0x4ca   :  { %v7442_v15 = vpop.eup %5869  ;;  %v2048_v23 = vsel %vm72_vm1, %v7438_v21, 0.0 }
 0x4cb   :  { %v7444_v37 = vpop.eup %5871  ;;  %v2419_v6 = vsel %vm72_vm1, %v7442_v15, 0.0 }
 0x4cc   :  { %1670 = vadd.xlane.f32.xlu1 %v1669_v22  ;;  %v2666_v22 = vmul.f32 1.442695, %v2652_v19 }
 0x4cd   :  { %2046 = vadd.xlane.f32.xlu0 %v2045_v10 }
 0x4d0   :  { %v1163_v4 = vpop.xlane.xlu1 %1162  ;;  %1679 = vadd.xlane.f32.xlu1 %v1678_v30  ;;  %v8281_v30 = vld [vmem:[#allocation35_spill] sm:$0xff] }
 0x4d1   :  { %5873 = vrcp.f32 %v1163_v4  ;;  %2058 = vadd.xlane.f32.xlu0 %v2057_v3  ;;  %v1160_v44 = vpop.xlane.xlu0 %1159  ;;  %v2407_v3 = vmul.f32 1.442695, %v2394_v12 }
 0x4d2   :  { %5875 = vrcp.f32 %v1160_v44 }
 0x4d3   :  { %5877 = vpow2.f32 %v2409_v17 }
 0x4d4   :  { %3537 = vmax.xlane.f32.xlu1 %v3536_v18  ;;  %5879 = vpow2.f32 %v2031_v49 }
 0x4d5   :  { %2417 = vadd.xlane.f32.xlu0 %v2416_v8  ;;  %5881 = vpow2.f32 %v2654_v9  ;;  %v8284_v8 = vld [vmem:[#allocation23_spill] sm:$0xff] }
 0x4d6   :  { %5883 = vpow2.f32 %v2037_v41  ;;  %v2396_v41 = vsub.f32 %v8284_v8, %v7344_v20 }
 0x4d7   :  { %5885 = vpow2.f32 %v2658_v54 }
 0x4d8   :  { %2043 = vadd.xlane.f32.xlu1 %v2042_v62  ;;  %5887 = vpow2.f32 %v2403_v33 }
 0x4d9   :  { %2414 = vadd.xlane.f32.xlu0 %v2413_v27  ;;  %5889 = vpow2.f32 %v2666_v22 }
 0x4da   :  { %5891 = vpow2.f32 %v2407_v3 }
 0x4db   :  { %v5874_v53 = vpop.eup %5873  ;;  %5893 = vpow2.f32 %v2405_v1 }
 0x4dc   :  { %v5876_v10 = vpop.eup %5875  ;;  %v7450_v32 = vpop.xlane.xlu1 %905  ;;  %2049 = vadd.xlane.f32.xlu1 %v2048_v23  ;;  %v1191_v17 = vmul.f32 %v5874_v53, %v7150_v34  ;;  %v2054_v34 = vsel %vm72_vm1, %v7444_v37, 0.0  ;;  %v8285_v53 = vld [vmem:[#allocation27_spill] sm:$0xff] }
 0x4dd   :  { %v7455_v60 = vpop.eup %5877  ;;  %2420 = vadd.xlane.f32.xlu0 %v2419_v6  ;;  %v7459_v50 = vpop.xlane.xlu0 %902  ;;  %v1190_v4 = vmul.f32 %v5876_v10, %v8281_v30  ;;  %v2647_v22 = vsub.f32 %v8285_v53, %v7352_v42 }
 0x4de   :  { %8280 = vst [vmem:[#allocation60_spill] sm:$0xff] %v7455_v60  ;;  %v7470_v46 = vpop.eup %5879  ;;  %v2431_v47 = vsel %vm72_vm1, %v7455_v60, 0.0 }
 0x4df   :  { %v5257_v49 = vpack.c.bf16 %v1191_v17, %v1190_v4  ;;  %v7476_v9 = vpop.eup %5881  ;;  %v2051_v54 = vsel %vm72_vm1, %v7470_v46, 0.0  ;;  %v2656_v42 = vmul.f32 1.442695, %v2647_v22  ;;  %v8286_v4 = vld [vmem:[#allocation29_spill] sm:$0xff] }
 0x4e0   :  { %v7472_v35 = vpop.xlane.xlu1 %3133  ;;  %2055 = vadd.xlane.f32.xlu1 %v2054_v34  ;;  %v7487_v19 = vpop.eup %5883  ;;  %v2670_v33 = vsel %vm72_vm1, %v7476_v9, 0.0  ;;  %v2649_v3 = vsub.f32 %v8286_v4, %v7364_v25  ;;  %v8287_v34 = vld [vmem:[#allocation31_spill] sm:$0xff] }
 0x4e1   :  { %2432 = vadd.xlane.f32.xlu0 %v2431_v47  ;;  %5259 = vmatprep.subr.msk.bf16.mxu0 %vm7464_vm4, %v5257_v49  ;;  %v3131_v18 = vpop.xlane.xlu0 %3130  ;;  %v7491_v12 = vpop.eup %5885  ;;  %v2060_v23 = vsel %vm72_vm1, %v7487_v19, 0.0 }
 0x4e2   :  { %v3153_v28 = vsub.f32 %v7162_v38, %v3131_v18  ;;  %5262 = vmatpush3.bf16.xpose.msk.msra.mxu0 %vm7464_vm4, %v5257_v49  ;;  %v2411_v38 = vmul.f32 1.442695, %v2396_v41  ;;  %v7497_v10 = vpop.eup %5887  ;;  %v2676_v17 = vsel %vm72_vm1, %v7491_v12, 0.0  ;;  %v2651_v49 = vsub.f32 %v8287_v34, %v7383_v56 }
 0x4e3   :  { %v7503_v31 = vpop.eup %5889  ;;  %v2422_v47 = vsel %vm72_vm1, %v7497_v10, 0.0 }
 0x4e4   :  { %v3161_v62 = vmul.f32 1.442695, %v3153_v28  ;;  %v1169_v27 = vpop.xlane.xlu1 %1168  ;;  %2052 = vadd.xlane.f32.xlu1 %v2051_v54  ;;  %v7513_v1 = vpop.eup %5891  ;;  %v2688_v8 = vsel %vm72_vm1, %v7503_v31, 0.0  ;;  %v2660_v28 = vmul.f32 1.442695, %v2649_v3 }
 0x4e5   :  { %2671 = vadd.xlane.f32.xlu0 %v2670_v33  ;;  %v1166_v20 = vpop.xlane.xlu0 %1165  ;;  %v7519_v54 = vpop.eup %5893  ;;  %v2664_v25 = vmul.f32 1.442695, %v2651_v49  ;;  %v2428_v56 = vsel %vm72_vm1, %v7513_v1, 0.0  ;;  %v8290_v49 = vld [vmem:[#allocation34_spill] sm:$0xff] }
 0x4e6   :  { %5895 = vpow2.f32 %v3161_v62  ;;  %v2425_v3 = vsel %vm72_vm1, %v7519_v54, 0.0 }
 0x4e7   :  { %5897 = vrcp.f32 %v1169_v27 }
 0x4e8   :  { %5899 = vrcp.f32 %v1166_v20  ;;  %v7499_v6 = vpop.xlane.xlu1 %911  ;;  %2061 = vadd.xlane.f32.xlu1 %v2060_v23  ;;  %v8289_v23 = vld [vmem:[#allocation32_spill] sm:$0xff] }
 0x4e9   :  { %2677 = vadd.xlane.f32.xlu0 %v2676_v17  ;;  %v7505_v30 = vpop.xlane.xlu0 %908  ;;  %5901 = vpow2.f32 %v2411_v38  ;;  %v2650_v17 = vsub.f32 %v8289_v23, %v7387_v43 }
 0x4ea   :  { %5903 = vpow2.f32 %v2656_v42 }
 0x4eb   :  { %5905 = vpow2.f32 %v2660_v28 }
 0x4ec   :  { %v7515_v18 = vpop.xlane.xlu1 %3139  ;;  %2423 = vadd.xlane.f32.xlu1 %v2422_v47  ;;  %5907 = vpow2.f32 %v2664_v25  ;;  %v2653_v47 = vsub.f32 %v8290_v49, %v7405_v5 }
 0x4ed   :  { %2689 = vadd.xlane.f32.xlu0 %v2688_v8  ;;  %v1172_v41 = vpop.xlane.xlu0 %1171 }
 0x4ee   :  { %5909 = vrcp.f32 %v1172_v41  ;;  %v2668_v25 = vmul.f32 1.442695, %v2653_v47  ;;  %v3154_v41 = vsub.f32 %v7159_v61, %v7472_v35 }
 0x4f0   :  { %v7523_v62 = vpop.eup %5895  ;;  %v3137_v27 = vpop.xlane.xlu1 %3136  ;;  %2429 = vadd.xlane.f32.xlu1 %v2428_v56  ;;  %v2662_v56 = vmul.f32 1.442695, %v2650_v17 }
 0x4f1   :  { %8288 = vst [vmem:[#allocation35_spill] sm:$0xff] %v7523_v62  ;;  %v5898_v33 = vpop.eup %5897  ;;  %v3155_v20 = vsub.f32 %v7167_v24, %v3137_v27  ;;  %v7526_v38 = vpop.xlane.xlu0 %914  ;;  %v3177_v53 = vsel %vm72_vm1, %v7523_v62, 0.0 }
 0x4f2   :  { %v5900_v22 = vpop.eup %5899  ;;  %3178 = vadd.xlane.f32.xlu0 %v3177_v53  ;;  %v1193_v42 = vmul.f32 %v5898_v33, %v7186_v55 }
 0x4f3   :  { %v3165_v4 = vmul.f32 1.442695, %v3155_v20  ;;  %v1192_v24 = vmul.f32 %v5900_v22, %v7192_v16  ;;  %v7536_v34 = vpop.eup %5901 }
 0x4f4   :  { %v1175_v8 = vpop.xlane.xlu1 %1174  ;;  %2426 = vadd.xlane.f32.xlu1 %v2425_v3  ;;  %v2434_v55 = vsel %vm72_vm1, %v7536_v34, 0.0  ;;  %v7544_v16 = vpop.eup %5903 }
 0x4f5   :  { %5911 = vpow2.f32 %v3165_v4  ;;  %v5263_v43 = vpack.c.bf16 %v1193_v42, %v1192_v24  ;;  %v3146_v28 = vpop.xlane.xlu0 %3145  ;;  %v2673_v20 = vsel %vm72_vm1, %v7544_v16, 0.0  ;;  %v7555_v53 = vpop.eup %5905  ;;  %v3163_v42 = vmul.f32 1.442695, %v3154_v41 }
 0x4f6   :  { %5913 = vrcp.f32 %v1175_v8  ;;  %v7557_v17 = vpop.eup %5907  ;;  %v2679_v3 = vsel %vm72_vm1, %v7555_v53, 0.0  ;;  %v3158_v47 = vsub.f32 %v7170_v0, %v3146_v28 }
 0x4f7   :  { %5265 = vmatprep.subr.msk.bf16.mxu0 %vm7464_vm4, %v5263_v43  ;;  %5915 = vpow2.f32 %v2662_v56 }
 0x4f8   :  { %5268 = vmatpush3.bf16.xpose.msk.msra.mxu0 %vm7464_vm4, %v5263_v43  ;;  %v7548_v5 = vpop.xlane.xlu1 %917  ;;  %2435 = vadd.xlane.f32.xlu1 %v2434_v55  ;;  %5917 = vpow2.f32 %v2668_v25  ;;  %v5910_v61 = vpop.eup %5909  ;;  %v8293_v43 = vld [vmem:[#allocation42_spill] sm:$0xff]  ;;  %v2685_v55 = vsel %vm72_vm1, %v7557_v17, 0.0 }
 0x4f9   :  { %v3143_v27 = vpop.xlane.xlu0 %3142  ;;  %5919 = vrcp.f32 %v7450_v32 }
 0x4fa   :  { %v3157_v33 = vsub.f32 %v7174_v48, %v3143_v27  ;;  %v3156_v48 = vsub.f32 %v7165_v11, %v7515_v18  ;;  %v8292_v18 = vld [vmem:[#allocation40_spill] sm:$0xff] }
 0x4fb   :  { %v1194_v8 = vmul.f32 %v5910_v61, %v8292_v18 }
 0x4fc   :  { %v3169_v22 = vmul.f32 1.442695, %v3157_v33  ;;  %v1181_v23 = vpop.xlane.xlu1 %1180  ;;  %2674 = vadd.xlane.f32.xlu1 %v2673_v20  ;;  %v3167_v56 = vmul.f32 1.442695, %v3156_v48  ;;  %v3171_v33 = vmul.f32 1.442695, %v3158_v47 }
 0x4fd   :  { %v7560_v4 = vpop.xlane.xlu0 %923  ;;  %v8294_v20 = vld [vmem:[#allocation46_spill] sm:$0xff] }
 0x4fe   :  { %5921 = vpow2.f32 %v3169_v22 }
 0x4ff   :  { %v7564_v35 = vpop.eup %5911  ;;  %5923 = vrcp.f32 %v7459_v50 }
 0x500   :  { %8291 = vst [vmem:[#allocation23_spill] sm:$0xff] %v7564_v35  ;;  %v5914_v24 = vpop.eup %5913  ;;  %5925 = vrcp.f32 %v1181_v23  ;;  %v7569_v49 = vpop.xlane.xlu1 %920  ;;  %2680 = vadd.xlane.f32.xlu1 %v2679_v3  ;;  %v3183_v32 = vsel %vm72_vm1, %v7564_v35, 0.0  ;;  %v8295_v23 = vld [vmem:[#allocation48_spill] sm:$0xff] }
 0x501   :  { %5927 = vpow2.f32 %v3163_v42  ;;  %3184 = vadd.xlane.f32.xlu0 %v3183_v32  ;;  %v1178_v11 = vpop.xlane.xlu0 %1177  ;;  %v1195_v50 = vmul.f32 %v5914_v24, %v8293_v43  ;;  %v7578_v41 = vpop.eup %5915 }
 0x502   :  { %5929 = vrcp.f32 %v1178_v11  ;;  %v7582_v28 = vpop.eup %5917  ;;  %v2682_v48 = vsel %vm72_vm1, %v7578_v41, 0.0 }
 0x503   :  { %v5269_v25 = vpack.c.bf16 %v1195_v50, %v1194_v8  ;;  %5931 = vpow2.f32 %v3167_v56  ;;  %v5920_v61 = vpop.eup %5919 }
 0x504   :  { %v3152_v27 = vpop.xlane.xlu1 %3151  ;;  %2686 = vadd.xlane.f32.xlu1 %v2685_v55  ;;  %5933 = vrcp.f32 %v7499_v6  ;;  %v8297_v55 = vld [vmem:[#allocation36_spill] sm:$0xff] }
 0x505   :  { %5271 = vmatprep.subr.msk.bf16.mxu0 %vm7464_vm4, %v5269_v25  ;;  %v3149_v0 = vpop.xlane.xlu0 %3148  ;;  %v3160_v22 = vsub.f32 %v8294_v20, %v3152_v27  ;;  %5935 = vrcp.f32 %v7505_v30  ;;  %v2691_v30 = vsel %vm72_vm1, %v7582_v28, 0.0  ;;  %v8298_v27 = vld [vmem:[#allocation50_spill] sm:$0xff]  ;;  %v8299_v20 = vld [vmem:[#allocation49_spill] sm:$0xff] }
 0x506   :  { %5274 = vmatpush3.bf16.xpose.msk.msra.mxu0 %vm7464_vm4, %v5269_v25  ;;  %v3159_v42 = vsub.f32 %v8295_v23, %v3149_v0  ;;  %5937 = vpow2.f32 %v3171_v33  ;;  %v934_v25 = vmul.f32 %v5920_v61, %v8297_v55 }
 0x507   :  { %v3175_v6 = vmul.f32 1.442695, %v3160_v22  ;;  %v8301_v22 = vld [vmem:[#allocation37_spill] sm:$0xff] }
 0x508   :  { %v7591_v3 = vpop.eup %5921  ;;  %v3173_v24 = vmul.f32 1.442695, %v3159_v42  ;;  %v7594_v32 = vpop.xlane.xlu1 %1661  ;;  %2683 = vadd.xlane.f32.xlu1 %v2682_v48  ;;  %v8300_v42 = vld [vmem:[#allocation44_spill] sm:$0xff] }
 0x509   :  { %8296 = vst [vmem:[#allocation27_spill] sm:$0xff] %v7591_v3  ;;  %v5924_v47 = vpop.eup %5923  ;;  %v7596_v11 = vpop.xlane.xlu0 %1658  ;;  %v3189_v18 = vsel %vm72_vm1, %v7591_v3, 0.0 }
 0x50a   :  { %v5926_v8 = vpop.eup %5925  ;;  %5939 = vpow2.f32 %v3173_v24  ;;  %3190 = vadd.xlane.f32.xlu0 %v3189_v18  ;;  %v933_v24 = vmul.f32 %v5924_v47, %v8301_v22  ;;  %v8302_v18 = vld [vmem:[#allocation52_spill] sm:$0xff] }
 0x50b   :  { %v7600_v43 = vpop.eup %5927  ;;  %v1197_v48 = vmul.f32 %v5926_v8, %v8300_v42  ;;  %5941 = vpow2.f32 %v3175_v6  ;;  %v8307_v22 = vld [vmem:[#allocation56_spill] sm:$0xff] }
 0x50c   :  { %v5930_v50 = vpop.eup %5929  ;;  %v3520_v56 = vpop.xlane.xlu1 %3519  ;;  %2692 = vadd.xlane.f32.xlu1 %v2691_v30  ;;  %v3180_v62 = vsel %vm72_vm1, %v7600_v43, 0.0  ;;  %5943 = vrcp.f32 %v7548_v5  ;;  %v5281_v47 = vpack.c.bf16 %v934_v25, %v933_v24  ;;  %v8308_v24 = vld [vmem:[#allocation43_spill] sm:$0xff] }
 0x50d   :  { %v3540_v33 = vsub.f32 %v8298_v27, %v3520_v56  ;;  %v3517_v0 = vpop.xlane.xlu0 %3516  ;;  %v1196_v23 = vmul.f32 %v5930_v50, %v8299_v20  ;;  %v7612_v30 = vpop.eup %5931  ;;  %v8304_v50 = vld [vmem:[#allocation38_spill] sm:$0xff]  ;;  %v8305_v27 = vld [vmem:[#allocation16_spill] sm:$0xff] }
 0x50e   :  { %v3539_v3 = vsub.f32 %v8302_v18, %v3517_v0  ;;  %v5934_v56 = vpop.eup %5933  ;;  %v8306_v20 = vld [vmem:[#allocation58_spill] sm:$0xff] }
 0x50f   :  { %v3549_v35 = vmul.f32 1.442695, %v3540_v33  ;;  %v5275_v60 = vpack.c.bf16 %v1197_v48, %v1196_v23  ;;  %v5936_v8 = vpop.eup %5935  ;;  %v936_v55 = vmul.f32 %v5934_v56, %v8304_v50  ;;  %v8310_v56 = vld [vmem:[#allocation41_spill] sm:$0xff] }
 0x510   :  { %v3547_v61 = vmul.f32 1.442695, %v3539_v3  ;;  %3181 = vadd.xlane.f32.xlu1 %v3180_v62  ;;  %v7620_v6 = vpop.eup %5937  ;;  %v3186_v62 = vsel %vm72_vm1, %v7612_v30, 0.0  ;;  %v8303_v3 = vld [vmem:[#allocation39_spill] sm:$0xff] }
 0x511   :  { %5945 = vpow2.f32 %v3549_v35  ;;  %5277 = vmatprep.subr.msk.bf16.mxu0 %vm7464_vm4, %v5275_v60  ;;  %v1665_v50 = vpop.xlane.xlu0 %1664 }
 0x512   :  { %5947 = vrcp.f32 %v7526_v38  ;;  %5280 = vmatpush3.bf16.xpose.msk.msra.mxu0 %vm7464_vm4, %v5275_v60  ;;  %v935_v38 = vmul.f32 %v5936_v8, %v8303_v3  ;;  %v3192_v60 = vsel %vm72_vm1, %v7620_v6, 0.0 }
 0x513   :  { %5949 = vpow2.f32 %v3547_v61  ;;  %5283 = vmatprep.subr.msk.bf16.mxu0 %vm7464_vm4, %v5281_v47  ;;  %v8309_v61 = vld [vmem:[#allocation57_spill] sm:$0xff] }
 0x514   :  { %v7626_v5 = vpop.eup %5939  ;;  %3187 = vadd.xlane.f32.xlu1 %v3186_v62  ;;  %5951 = vrcp.f32 %v7569_v49  ;;  %v5287_v33 = vpack.c.bf16 %v936_v55, %v935_v38  ;;  %v1668_v38 = vpop.xlane.xlu1 %1667 }
 0x515   :  { %v3195_v35 = vsel %vm72_vm1, %v7626_v5, 0.0  ;;  %v7634_v25 = vpop.eup %5941  ;;  %5953 = vrcp.f32 %v7560_v4 }
 0x516   :  { %3196 = vadd.xlane.f32.xlu0 %v3195_v35  ;;  %v5944_v0 = vpop.eup %5943  ;;  %v3198_v49 = vsel %vm72_vm1, %v7634_v25, 0.0  ;;  %5955 = vrcp.f32 %v7594_v32  ;;  %v8311_v32 = vld [vmem:[#allocation47_spill] sm:$0xff] }
 0x517   :  { %v938_v18 = vmul.f32 %v5944_v0, %v8308_v24  ;;  %5957 = vrcp.f32 %v7596_v11 }
 0x518   :  { %3193 = vadd.xlane.f32.xlu1 %v3192_v60  ;;  %5959 = vrcp.f32 %v1668_v38  ;;  %v8312_v60 = vld [vmem:[#allocation45_spill] sm:$0xff]  ;;  %v8319_v38 = vld [vmem:[#allocation59_spill] sm:$0xff] }
 0x519   :  { %4838 = vmatmul.mubr.msk.f32.vlgmr.msra.gmra.mrb[16].mxu0 %vm72_vm1, %v8305_v27  ;;  %5961 = vrcp.f32 %v1665_v50 }
 0x51a   :  { %4840 = vmatprep.mubr.msk.f32.mxu0 %vm72_vm1, %v8306_v20  ;;  %5286 = vmatpush3.bf16.xpose.msk.msra.mxu0 %vm7464_vm4, %v5281_v47 }
 0x51b   :  { %v7644_v23 = vpop.eup %5945  ;;  %5289 = vmatprep.subr.msk.bf16.mxu0 %vm7464_vm4, %v5287_v33 }
 0x51c   :  { %v5948_v42 = vpop.eup %5947  ;;  %3199 = vadd.xlane.f32.xlu1 %v3198_v49  ;;  %v3566_v48 = vsel %vm72_vm1, %v7644_v23, 0.0 }
 0x51d   :  { %v7652_v4 = vpop.eup %5949  ;;  %4841 = vmatmul.mubr.msk.f32.gmra.mrb[18].mxu0 %vm72_vm1, %v8307_v22  ;;  %3567 = vadd.xlane.f32.xlu0 %v3566_v48  ;;  %v937_v47 = vmul.f32 %v5948_v42, %v8310_v56  ;;  %v8314_v42 = vld [vmem:[#allocation51_spill] sm:$0xff] }
 0x51e   :  { %4859 = vmatprep.mubr.msk.f32.mxu0 %vm72_vm1, %v8309_v61  ;;  %v3563_v8 = vsel %vm72_vm1, %v7652_v4, 0.0  ;;  %v5952_v35 = vpop.eup %5951  ;;  %v8315_v61 = vld [vmem:[#allocation55_spill] sm:$0xff] }
 0x51f   :  { %v5293_v62 = vpack.c.bf16 %v938_v18, %v937_v47  ;;  %v5954_v3 = vpop.eup %5953  ;;  %v939_v55 = vmul.f32 %v5952_v35, %v8311_v32  ;;  %v8316_v47 = vld [vmem:[#allocation54_spill] sm:$0xff]  ;;  %v8318_v35 = vld [vmem:[#allocation7_spill] sm:$0xff]  ;;  %v8320_v32 = vld [vmem:[#allocation24_spill] sm:$0xff] }
 0x520   :  { %v940_v11 = vmul.f32 %v5954_v3, %v8312_v60  ;;  %v5956_v27 = vpop.eup %5955 }
 0x521   :  { %3564 = vadd.xlane.f32.xlu0 %v3563_v8  ;;  %v5958_v20 = vpop.eup %5957  ;;  %v1690_v48 = vmul.f32 %v5956_v27, %v8314_v42  ;;  %v8323_v27 = vld [vmem:[#allocation9_spill] sm:$0xff] }
 0x522   :  { %5292 = vmatpush3.bf16.xpose.msk.msra.mxu0 %vm7464_vm4, %v5287_v33  ;;  %v5299_v0 = vpack.c.bf16 %v940_v11, %v939_v55  ;;  %v8313_v33 = vld [vmem:[#allocation53_spill] sm:$0xff]  ;;  %v5960_v22 = vpop.eup %5959  ;;  %v8321_v55 = vld [vmem:[#allocation6_spill] sm:$0xff] }
 0x523   :  { %5295 = vmatprep.subr.msk.bf16.mxu0 %vm7464_vm4, %v5293_v62  ;;  %v1689_v49 = vmul.f32 %v5958_v20, %v8313_v33  ;;  %v5962_v18 = vpop.eup %5961  ;;  %v1692_v8 = vmul.f32 %v5960_v22, %v8316_v47  ;;  %v7694_v60 = vadd.f32 %v8321_v55, %v8320_v32  ;;  %v8322_v11 = vld [vmem:[#allocation17_spill] sm:$0xff]  ;;  %v7702_v20 = vpop.permute.xlu1 %2716 }
 0x524   :  { %v1691_v56 = vmul.f32 %v5962_v18, %v8315_v61  ;;  %v7708_v33 = vpop.permute.xlu0 %2714 }
 0x525   :  { %v5329_v24 = vpack.c.bf16 %v1690_v48, %v1689_v49 }
 0x526   :  { %v5335_v50 = vpack.c.bf16 %v1692_v8, %v1691_v56 }
 0x527   :  { %v7712_v49 = vpop.permute.xlu1 %2835 }
 0x52a   :  { %5298 = vmatpush3.bf16.xpose.msk.msra.mxu0 %vm7464_vm4, %v5293_v62  ;;  %v8317_v62 = vld [vmem:[#allocation22_spill] sm:$0xff] }
 0x52b   :  { %5301 = vmatprep.subr.msk.bf16.mxu0 %vm7464_vm4, %v5299_v0  ;;  %v7684_v3 = vadd.f32 %v8318_v35, %v8317_v62  ;;  %v7714_v48 = vpop.permute.xlu1 %2837 }
 0x532   :  { %5304 = vmatpush3.bf16.xpose.msk.msra.mxu0 %vm7464_vm4, %v5299_v0  ;;  %v7700_v0 = vadd.f32 %v8323_v27, %v8322_v11 }
 0x533   :  { %5331 = vmatprep.subr.msk.bf16.mxu0 %vm7464_vm4, %v5329_v24 }
 0x539   :  { %4860 = vmatmul.mubr.msk.f32.vlgmr.msra.gmra.mrb[16].mxu0 %vm72_vm1, %v8319_v38 }
 0x53a   :  { %4862 = vmatprep.mubr.msk.f32.mxu0 %vm72_vm1, %v7684_v3  ;;  %5334 = vmatpush3.bf16.xpose.msk.msra.mxu0 %vm7464_vm4, %v5329_v24 }
 0x53b   :  { %5337 = vmatprep.subr.msk.bf16.mxu0 %vm7464_vm4, %v5335_v50 }
 0x53d   :  { %4863 = vmatmul.mubr.msk.f32.gmra.mrb[18].mxu0 %vm72_vm1, %v7694_v60 }
 0x53e   :  { %4909 = vmatprep.mubr.msk.f32.mxu0 %vm72_vm1, %v7700_v0 }
 0x542   :  { %5340 = vmatpush3.bf16.xpose.msk.msra.mxu0 %vm7464_vm4, %v5335_v50 }
 0x546   :  { %v3532_v42 = vpop.xlane.xlu0 %3531 }
 0x547   :  { %v3544_v24 = vsub.f32 %v7278_v26, %v3532_v42 }
 0x549   :  { %v3557_v8 = vmul.f32 1.442695, %v3544_v24 }
 0x54a   :  { %v3529_v22 = vpop.xlane.xlu0 %3528 }
 0x54b   :  { %v3543_v47 = vsub.f32 %v7284_v14, %v3529_v22 }
 0x54d   :  { %v3526_v18 = vpop.xlane.xlu1 %3525  ;;  %v3555_v50 = vmul.f32 1.442695, %v3543_v47 }
 0x54e   :  { %v3542_v61 = vsub.f32 %v7270_v63, %v3526_v18  ;;  %v1677_v56 = vpop.xlane.xlu0 %1676 }
 0x550   :  { %v3553_v62 = vmul.f32 1.442695, %v3542_v61 }
 0x551   :  { %v3523_v35 = vpop.xlane.xlu1 %3522 }
 0x552   :  { %5963 = vpow2.f32 %v3553_v62  ;;  %v3541_v38 = vsub.f32 %v7274_v7, %v3523_v35  ;;  %v7720_v32 = vpop.xlane.xlu0 %3534 }
 0x553   :  { %5965 = vpow2.f32 %v3557_v8 }
 0x554   :  { %v3551_v55 = vmul.f32 1.442695, %v3541_v38 }
 0x555   :  { %v1674_v11 = vpop.xlane.xlu1 %1673 }
 0x556   :  { %5967 = vpow2.f32 %v3551_v55  ;;  %v2041_v26 = vpop.xlane.xlu0 %2040 }
 0x557   :  { %5969 = vpow2.f32 %v3555_v50 }
 0x558   :  { %5971 = vrcp.f32 %v1674_v11 }
 0x559   :  { %v1671_v63 = vpop.xlane.xlu1 %1670 }
 0x55a   :  { %5973 = vrcp.f32 %v1671_v63  ;;  %v2047_v22 = vpop.xlane.xlu0 %2046 }
 0x55b   :  { %5975 = vrcp.f32 %v1677_v56 }
 0x55c   :  { %v7722_v27 = vpop.eup %5963 }
 0x55d   :  { %v1680_v14 = vpop.xlane.xlu1 %1679  ;;  %v3572_v42 = vsel %vm72_vm1, %v7722_v27, 0.0  ;;  %v7726_v7 = vpop.eup %5965 }
 0x55e   :  { %8324 = vst [vmem:[#allocation29_spill] sm:$0xff] %v7726_v7  ;;  %5977 = vrcp.f32 %v1680_v14  ;;  %3573 = vadd.xlane.f32.xlu1 %v3572_v42  ;;  %v3578_v56 = vsel %vm72_vm1, %v7726_v7, 0.0  ;;  %v2059_v35 = vpop.xlane.xlu0 %2058 }
 0x55f   :  { %5979 = vrcp.f32 %v2041_v26 }
 0x560   :  { %v7728_v24 = vpop.eup %5967 }
 0x561   :  { %v7730_v18 = vpop.eup %5969  ;;  %v7732_v61 = vpop.xlane.xlu1 %3537  ;;  %v3569_v47 = vsel %vm72_vm1, %v7728_v24, 0.0 }
 0x562   :  { %v5972_v8 = vpop.eup %5971  ;;  %3570 = vadd.xlane.f32.xlu0 %v3569_v47  ;;  %3579 = vadd.xlane.f32.xlu1 %v3578_v56  ;;  %v3575_v50 = vsel %vm72_vm1, %v7730_v18, 0.0 }
 0x563   :  { %v1694_v11 = vmul.f32 %v5972_v8, %v7375_v57 }
 0x564   :  { %v5974_v62 = vpop.eup %5973 }
 0x565   :  { %v2044_v38 = vpop.xlane.xlu1 %2043  ;;  %v1693_v55 = vmul.f32 %v5974_v62, %v7391_v45  ;;  %v5976_v63 = vpop.eup %5975 }
 0x566   :  { %3576 = vadd.xlane.f32.xlu0 %v3575_v50  ;;  %5981 = vrcp.f32 %v2044_v38  ;;  %v1695_v26 = vmul.f32 %v5976_v63, %v7359_v13  ;;  %v7748_v45 = vpop.xlane.xlu0 %2417 }
 0x567   :  { %v5341_v14 = vpack.c.bf16 %v1694_v11, %v1693_v55  ;;  %5983 = vrcp.f32 %v2047_v22 }
 0x568   :  { %v5978_v42 = vpop.eup %5977 }
 0x569   :  { %v2050_v7 = vpop.xlane.xlu1 %2049  ;;  %5343 = vmatprep.subr.msk.bf16.mxu0 %vm7464_vm4, %v5341_v14  ;;  %v1696_v47 = vmul.f32 %v5978_v42, %v7403_v51  ;;  %v5980_v22 = vpop.eup %5979  ;;  %v8326_v42 = vld [vmem:[#allocation8_spill] sm:$0xff] }
 0x56a   :  { %5985 = vrcp.f32 %v2050_v7  ;;  %5346 = vmatpush3.bf16.xpose.msk.msra.mxu0 %vm7464_vm4, %v5341_v14  ;;  %v7752_v62 = vpop.xlane.xlu0 %2414  ;;  %v2071_v13 = vmul.f32 %v5980_v22, %v7379_v2  ;;  %v8325_v14 = vld [vmem:[#allocation25_spill] sm:$0xff] }
 0x56b   :  { %v5347_v57 = vpack.c.bf16 %v1696_v47, %v1695_v26  ;;  %v7765_v26 = vadd.f32 %v8326_v42, %v8325_v14  ;;  %v3546_v14 = vsub.f32 %v7290_v59, %v7732_v61 }
 0x56d   :  { %v2056_v56 = vpop.xlane.xlu1 %2055  ;;  %5349 = vmatprep.subr.msk.bf16.mxu0 %vm7464_vm4, %v5347_v57 }
 0x56e   :  { %5987 = vrcp.f32 %v2056_v56  ;;  %v7767_v47 = vpop.xlane.xlu0 %2420 }
 0x570   :  { %v5982_v8 = vpop.eup %5981 }
 0x571   :  { %v2053_v38 = vpop.xlane.xlu1 %2052  ;;  %v2072_v51 = vmul.f32 %v5982_v8, %v7427_v52  ;;  %v5984_v7 = vpop.eup %5983  ;;  %v8327_v52 = vld [vmem:[#allocation26_spill] sm:$0xff] }
 0x572   :  { %5989 = vrcp.f32 %v2053_v38  ;;  %5352 = vmatpush3.bf16.xpose.msk.msra.mxu0 %vm7464_vm4, %v5347_v57  ;;  %v2073_v2 = vmul.f32 %v5984_v7, %v7397_v36  ;;  %v8328_v57 = vld [vmem:[#allocation11_spill] sm:$0xff]  ;;  %v8329_v36 = vld [vmem:[#allocation18_spill] sm:$0xff]  ;;  %v8332_v7 = vld [vmem:[#allocation13_spill] sm:$0xff] }
 0x573   :  { %2841 = vrot.lane.b32.xlu1 %v7694_v60, %s6074_s17  ;;  %v5377_v55 = vpack.c.bf16 %v2072_v51, %v2071_v13  ;;  %v7772_v56 = vadd.f32 %v8328_v57, %v8327_v52  ;;  %v8330_v8 = vld [vmem:[#allocation10_spill] sm:$0xff]  ;;  %v8331_v51 = vld [vmem:[#allocation28_spill] sm:$0xff]  ;;  %v3545_v57 = vsub.f32 %v7294_v40, %v7720_v32 }
 0x574   :  { %v5986_v50 = vpop.eup %5985  ;;  %v7784_v38 = vadd.f32 %v8330_v8, %v8329_v36  ;;  %v3561_v36 = vmul.f32 1.442695, %v3546_v14 }
 0x575   :  { %v2062_v11 = vpop.xlane.xlu1 %2061  ;;  %v2074_v63 = vmul.f32 %v5986_v50, %v7438_v21  ;;  %5379 = vmatprep.subr.msk.bf16.mxu0 %vm7464_vm4, %v5377_v55  ;;  %v7790_v50 = vadd.f32 %v8332_v7, %v8331_v51 }
 0x576   :  { %5991 = vrcp.f32 %v2062_v11 }
 0x577   :  { %v5383_v21 = vpack.c.bf16 %v2074_v63, %v2073_v2  ;;  %5993 = vrcp.f32 %v2059_v35  ;;  %v7794_v35 = vpop.xlane.xlu0 %2432 }
 0x578   :  { %v5988_v22 = vpop.eup %5987 }
 0x579   :  { %v7774_v60 = vpop.xlane.xlu1 %2423  ;;  %4910 = vmatmul.mubr.msk.f32.vlgmr.msra.gmra.mrb[16].mxu0 %vm72_vm1, %v7765_v26  ;;  %v2076_v63 = vmul.f32 %v5988_v22, %v7444_v37  ;;  %v3559_v22 = vmul.f32 1.442695, %v3545_v57  ;;  %v8334_v57 = vld [vmem:[#allocation12_spill] sm:$0xff] }
 0x57a   :  { %4912 = vmatprep.mubr.msk.f32.mxu0 %vm72_vm1, %v7772_v56  ;;  %5382 = vmatpush3.bf16.xpose.msk.msra.mxu0 %vm7464_vm4, %v5377_v55 }
 0x57b   :  { %5385 = vmatprep.subr.msk.bf16.mxu0 %vm7464_vm4, %v5383_v21  ;;  %v2672_v52 = vpop.xlane.xlu0 %2671 }
 0x57c   :  { %v5990_v13 = vpop.eup %5989  ;;  %2839 = vrot.lane.b32.xlu0 %v7684_v3, %s6074_s17  ;;  %5995 = vrcp.f32 %v2672_v52 }
 0x57d   :  { %v7796_v11 = vpop.xlane.xlu1 %2429  ;;  %4913 = vmatmul.mubr.msk.f32.gmra.mrb[18].mxu0 %vm72_vm1, %v7784_v38  ;;  %v2075_v55 = vmul.f32 %v5990_v13, %v7470_v46  ;;  %5997 = vpow2.f32 %v3561_v36 }
 0x57e   :  { %4959 = vmatprep.mubr.msk.f32.mxu0 %vm72_vm1, %v7790_v50 }
 0x57f   :  { %v5389_v3 = vpack.c.bf16 %v2076_v63, %v2075_v55  ;;  %v2678_v8 = vpop.xlane.xlu0 %2677 }
 0x580   :  { %v5992_v2 = vpop.eup %5991 }
 0x581   :  { %v7806_v42 = vpop.xlane.xlu1 %2426  ;;  %v5994_v46 = vpop.eup %5993  ;;  %v2078_v59 = vmul.f32 %v5992_v2, %v7487_v19 }
 0x582   :  { %5388 = vmatpush3.bf16.xpose.msk.msra.mxu0 %vm7464_vm4, %v5383_v21  ;;  %v2077_v61 = vmul.f32 %v5994_v46, %v7409_v39  ;;  %v8333_v46 = vld [vmem:[#allocation19_spill] sm:$0xff] }
 0x583   :  { %5391 = vmatprep.subr.msk.bf16.mxu0 %vm7464_vm4, %v5389_v3  ;;  %v2690_v7 = vpop.xlane.xlu0 %2689  ;;  %v646_v36 = vadd.f32 %v8334_v57, %v8333_v46 }
 0x584   :  { %v5395_v13 = vpack.c.bf16 %v2078_v59, %v2077_v61 }
 0x585   :  { %v7814_v37 = vpop.xlane.xlu1 %2435 }
 0x586   :  { %v5996_v32 = vpop.eup %5995 }
 0x587   :  { %v7824_v39 = vpop.eup %5997  ;;  %v2702_v63 = vmul.f32 %v5996_v32, %v7476_v9  ;;  %v8337_v32 = vld [vmem:[#allocation20_spill] sm:$0xff] }
 0x588   :  { %v3584_v2 = vsel %vm72_vm1, %v7824_v39, 0.0 }
 0x589   :  { %v2675_v21 = vpop.xlane.xlu1 %2674 }
 0x58a   :  { %5999 = vrcp.f32 %v2675_v21  ;;  %5394 = vmatpush3.bf16.xpose.msk.msra.mxu0 %vm7464_vm4, %v5389_v3 }
 0x58b   :  { %5397 = vmatprep.subr.msk.bf16.mxu0 %vm7464_vm4, %v5395_v13  ;;  %6001 = vrcp.f32 %v2678_v8  ;;  %v8336_v8 = vld [vmem:[#allocation15_spill] sm:$0xff] }
 0x58c   :  { %6003 = vpow2.f32 %v3559_v22  ;;  %v8335_v22 = vld [vmem:[#allocation30_spill] sm:$0xff] }
 0x58d   :  { %v2681_v40 = vpop.xlane.xlu1 %2680  ;;  %v651_v21 = vadd.f32 %v8336_v8, %v8335_v22 }
 0x58e   :  { %6005 = vrcp.f32 %v2681_v40  ;;  %v7841_v40 = vpop.xlane.xlu0 %3178 }
 0x591   :  { %v2687_v19 = vpop.xlane.xlu1 %2686 }
 0x592   :  { %5400 = vmatpush3.bf16.xpose.msk.msra.mxu0 %vm7464_vm4, %v5395_v13  ;;  %6007 = vrcp.f32 %v2687_v19 }
 0x594   :  { %v6000_v51 = vpop.eup %5999 }
 0x595   :  { %v2684_v55 = vpop.xlane.xlu1 %2683  ;;  %v2703_v14 = vmul.f32 %v6000_v51, %v7544_v16  ;;  %v6002_v3 = vpop.eup %6001  ;;  %v8338_v51 = vld [vmem:[#allocation14_spill] sm:$0xff] }
 0x596   :  { %6009 = vrcp.f32 %v2684_v55  ;;  %v7830_v52 = vpop.eup %6003  ;;  %v2704_v16 = vmul.f32 %v6002_v3, %v7491_v12 }
 0x597   :  { %3585 = vadd.xlane.f32.xlu1 %v3584_v2  ;;  %v5449_v59 = vpack.c.bf16 %v2703_v14, %v2702_v63  ;;  %6011 = vrcp.f32 %v2690_v7  ;;  %v3581_v19 = vsel %vm72_vm1, %v7830_v52, 0.0  ;;  %v656_v7 = vadd.f32 %v8338_v51, %v8337_v32  ;;  %v8339_v63 = vld [vmem:[#allocation33_spill] sm:$0xff]  ;;  %v8341_v32 = vld [vmem:[#allocation60_spill] sm:$0xff] }
 0x598   :  { %v6006_v61 = vpop.eup %6005 }
 0x599   :  { %v2693_v9 = vpop.xlane.xlu1 %2692  ;;  %4960 = vmatmul.mubr.msk.f32.vlgmr.msra.gmra.mrb[16].mxu0 %vm72_vm1, %v646_v36  ;;  %5451 = vmatprep.subr.msk.bf16.mxu0 %vm7464_vm4, %v5449_v59  ;;  %v2705_v13 = vmul.f32 %v6006_v61, %v7555_v53  ;;  %v7853_v53 = vpop.xlane.xlu0 %3184 }
 0x59a   :  { %6013 = vrcp.f32 %v2693_v9  ;;  %4962 = vmatprep.mubr.msk.f32.mxu0 %vm72_vm1, %v651_v21  ;;  %5454 = vmatpush3.bf16.xpose.msk.msra.mxu0 %vm7464_vm4, %v5449_v59 }
 0x59b   :  { %3582 = vadd.xlane.f32.xlu0 %v3581_v19  ;;  %v5455_v55 = vpack.c.bf16 %v2705_v13, %v2704_v16  ;;  %6015 = vrcp.f32 %v7752_v62  ;;  %v3755_v16 = vld [vmem:[%s8171_s7 + $0x18] sm:$0xff] }
 0x59c   :  { %v6008_v12 = vpop.eup %6007  ;;  %6017 = vrcp.f32 %v7748_v45 }
 0x59d   :  { %4963 = vmatmul.mubr.msk.f32.gmra.mrb[18].mxu0 %vm72_vm1, %v656_v7  ;;  %5457 = vmatprep.subr.msk.bf16.mxu0 %vm7464_vm4, %v5455_v55  ;;  %v2707_v2 = vmul.f32 %v6008_v12, %v7557_v17  ;;  %v7861_v46 = vpop.xlane.xlu0 %3190  ;;  %6019 = vrcp.f32 %v7774_v60  ;;  %v3182_v19 = vpop.xlane.xlu1 %3181 }
 0x59e   :  { %5037 = vmatprep.mubr.msk.f32.mxu0 %vm72_vm1, %v8339_v63  ;;  %6021 = vrcp.f32 %v7767_v47 }
 0x5a0   :  { %v6010_v14 = vpop.eup %6009 }
 0x5a1   :  { %v2706_v3 = vmul.f32 %v6010_v14, %v7578_v41  ;;  %v6012_v57 = vpop.eup %6011  ;;  %v8342_v14 = vld [vmem:[#allocation35_spill] sm:$0xff] }
 0x5a2   :  { %5460 = vmatpush3.bf16.xpose.msk.msra.mxu0 %vm7464_vm4, %v5455_v55  ;;  %v2708_v41 = vmul.f32 %v6012_v57, %v7503_v31 }
 0x5a3   :  { %v5461_v59 = vpack.c.bf16 %v2707_v2, %v2706_v3  ;;  %v7868_v62 = vpop.xlane.xlu0 %3196 }
 0x5a4   :  { %v6014_v61 = vpop.eup %6013 }
 0x5a5   :  { %5463 = vmatprep.subr.msk.bf16.mxu0 %vm7464_vm4, %v5461_v59  ;;  %v2709_v22 = vmul.f32 %v6014_v61, %v7582_v28  ;;  %v6016_v45 = vpop.eup %6015  ;;  %v8343_v61 = vld [vmem:[#allocation23_spill] sm:$0xff] }
 0x5a6   :  { %v6018_v28 = vpop.eup %6017  ;;  %v2445_v31 = vmul.f32 %v6016_v45, %v7431_v29 }
 0x5a7   :  { %v5467_v17 = vpack.c.bf16 %v2709_v22, %v2708_v41  ;;  %v6020_v9 = vpop.eup %6019 }
 0x5a8   :  { %3603 = vrot.lane.b32.xlu1 %v7790_v50, %s6074_s17  ;;  %v2446_v50 = vmul.f32 %v6018_v28, %v7419_v58  ;;  %v6022_v29 = vpop.eup %6021  ;;  %v3753_v58 = vld [vmem:[%s8171_s7 + $0x8] sm:$0xff] }
 0x5aa   :  { %5466 = vmatpush3.bf16.xpose.msk.msra.mxu0 %vm7464_vm4, %v5461_v59  ;;  %v3568_v8 = vpop.xlane.xlu0 %3567  ;;  %v5473_v47 = vpack.c.bf16 %v2446_v50, %v2445_v31 }
 0x5ab   :  { %5469 = vmatprep.subr.msk.bf16.mxu0 %vm7464_vm4, %v5467_v17  ;;  %6023 = vrcp.f32 %v3568_v8 }
 0x5ac   :  { %3605 = vrot.lane.b32.xlu1 %v646_v36, %s6074_s17 }
 0x5ae   :  { %v3565_v60 = vpop.xlane.xlu0 %3564 }
 0x5af   :  { %6025 = vrcp.f32 %v3565_v60 }
 0x5b0   :  { %6027 = vrcp.f32 %v7806_v42  ;;  %3607 = vrot.lane.b32.xlu1 %v651_v21, %s6074_s17  ;;  %v8340_v21 = vld [vmem:[#allocation21_spill] sm:$0xff] }
 0x5b1   :  { %3217 = vrot.lane.b32.xlu0 %v7700_v0, %s6074_s17  ;;  %6029 = vrcp.f32 %v7796_v11  ;;  %v2448_v0 = vmul.f32 %v6020_v9, %v7497_v10  ;;  %v2447_v11 = vmul.f32 %v6022_v29, %v7442_v15 }
 0x5b2   :  { %5472 = vmatpush3.bf16.xpose.msk.msra.mxu0 %vm7464_vm4, %v5467_v17  ;;  %6031 = vrcp.f32 %v7814_v37 }
 0x5b3   :  { %5475 = vmatprep.subr.msk.bf16.mxu0 %vm7464_vm4, %v5473_v47  ;;  %6033 = vrcp.f32 %v7794_v35  ;;  %v3188_v35 = vpop.xlane.xlu1 %3187 }
 0x5b4   :  { %3609 = vrot.lane.b32.xlu1 %v656_v7, %s6074_s17  ;;  %6035 = vrcp.f32 %v3182_v19 }
 0x5b5   :  { %3219 = vrot.lane.b32.xlu0 %v7765_v26, %s6074_s17  ;;  %v6024_v42 = vpop.eup %6023  ;;  %v5479_v26 = vpack.c.bf16 %v2448_v0, %v2447_v11  ;;  %6037 = vrcp.f32 %v7841_v40 }
 0x5b6   :  { %v3596_v10 = vmul.f32 %v6024_v42, %v7644_v23  ;;  %v3752_v23 = vld [vmem:[%s8171_s7] sm:$0xff]  ;;  %6039 = vrcp.f32 %v3188_v35 }
 0x5b7   :  { %6041 = vrcp.f32 %v7853_v53  ;;  %v3194_v12 = vpop.xlane.xlu1 %3193 }
 0x5b8   :  { %3763 = vperm.xlu1 %5644, %v3753_v58   ;;  %6043 = vrcp.f32 %v3194_v12 }
 0x5b9   :  { %v6026_v36 = vpop.eup %6025  ;;  %3221 = vrot.lane.b32.xlu0 %v7772_v56, %s6074_s17  ;;  %5038 = vmatmul.mubr.msk.f32.vlgmr.msra.gmra.mrb[20].mxu0 %vm72_vm1, %v8340_v21  ;;  %6045 = vrcp.f32 %v7861_v46 }
 0x5ba   :  { %v6028_v13 = vpop.eup %6027  ;;  %5040 = vmatprep.mubr.msk.f32.mxu0 %vm72_vm1, %v7708_v33  ;;  %5478 = vmatpush3.bf16.xpose.msk.msra.mxu0 %vm7464_vm4, %v5473_v47  ;;  %v3595_v15 = vmul.f32 %v6026_v36, %v7652_v4 }
 0x5bb   :  { %5481 = vmatprep.subr.msk.bf16.mxu0 %vm7464_vm4, %v5479_v26  ;;  %v6030_v56 = vpop.eup %6029  ;;  %v2449_v33 = vmul.f32 %v6028_v13, %v7519_v54  ;;  %v3754_v54 = vld [vmem:[%s8171_s7 + $0x10] sm:$0xff]  ;;  %v3200_v57 = vpop.xlane.xlu1 %3199 }
 0x5bc   :  { %3773 = vperm.xlu1 %5644, %v3755_v16   ;;  %v5569_v37 = vpack.c.bf16 %v3596_v10, %v3595_v15  ;;  %v2450_v4 = vmul.f32 %v6030_v56, %v7513_v1  ;;  %6047 = vrcp.f32 %v3200_v57  ;;  %v8345_v16 = vld [vmem:[#allocation29_spill] sm:$0xff]  ;;  %v3819_v57 = vld [vmem:[%s8172_s8 + $0x8] sm:$0xff] }
 0x5bd   :  { %3223 = vrot.lane.b32.xlu0 %v7784_v38, %s6074_s17  ;;  %5041 = vmatmul.mubr.msk.f32.gmra.mrb[22].mxu0 %vm72_vm1, %v7702_v20  ;;  %v6032_v38 = vpop.eup %6031  ;;  %6049 = vrcp.f32 %v7868_v62 }
 0x5be   :  { %5059 = vmatprep.mubr.msk.f32.mxu0 %vm72_vm1, %v7712_v49  ;;  %5571 = vmatprep.subr.msk.bf16.mxu1 %vm7464_vm4, %v5569_v37  ;;  %v5485_v20 = vpack.c.bf16 %v2450_v4, %v2449_v33  ;;  %v6034_v49 = vpop.eup %6033  ;;  %v2452_v1 = vmul.f32 %v6032_v38, %v7536_v34 }
 0x5bf   :  { %5574 = vmatpush3.bf16.xpose.msk.msra.mxu1 %vm7464_vm4, %v5569_v37  ;;  %v2451_v51 = vmul.f32 %v6034_v49, %v8341_v32  ;;  %v6036_v40 = vpop.eup %6035 }
 0x5c0   :  { %v6038_v55 = vpop.eup %6037  ;;  %v3210_v63 = vmul.f32 %v6036_v40, %v7600_v43 }
 0x5c1   :  { %3758 = vperm.xlu0 %5643, %v3752_v23   ;;  %v5491_v7 = vpack.c.bf16 %v2452_v1, %v2451_v51  ;;  %v3209_v3 = vmul.f32 %v6038_v55, %v8342_v14  ;;  %v6040_v2 = vpop.eup %6039 }
 0x5c2   :  { %5484 = vmatpush3.bf16.xpose.msk.msra.mxu0 %vm7464_vm4, %v5479_v26  ;;  %v6042_v53 = vpop.eup %6041  ;;  %v3212_v59 = vmul.f32 %v6040_v2, %v7612_v30  ;;  %v8344_v30 = vld [vmem:[#allocation27_spill] sm:$0xff] }
 0x5c3   :  { %5487 = vmatprep.subr.msk.bf16.mxu0 %vm7464_vm4, %v5485_v20  ;;  %v5521_v34 = vpack.c.bf16 %v3210_v63, %v3209_v3  ;;  %v3211_v22 = vmul.f32 %v6042_v53, %v8343_v61  ;;  %v6044_v41 = vpop.eup %6043  ;;  %v3847_v61 = vld [vmem:[%s8173_s9 + $0x8] sm:$0xff] }
 0x5c4   :  { %v6046_v46 = vpop.eup %6045  ;;  %v3214_v17 = vmul.f32 %v6044_v41, %v7620_v6  ;;  %v3820_v41 = vld [vmem:[%s8172_s8 + $0x10] sm:$0xff] }
 0x5c5   :  { %3768 = vperm.xlu0 %5643, %v3754_v54   ;;  %v5527_v43 = vpack.c.bf16 %v3212_v59, %v3211_v22  ;;  %v3213_v45 = vmul.f32 %v6046_v46, %v8344_v30  ;;  %v3818_v59 = vld [vmem:[%s8172_s8] sm:$0xff]  ;;  %v3849_v46 = vld [vmem:[%s8173_s9 + $0x18] sm:$0xff]  ;;  %v3879_v30 = vld [vmem:[%s8174_s11 + $0x8] sm:$0xff] }
 0x5c6   :  { %v6048_v28 = vpop.eup %6047  ;;  %v3846_v22 = vld [vmem:[%s8173_s9] sm:$0xff] }
 0x5c7   :  { %v5533_v8 = vpack.c.bf16 %v3214_v17, %v3213_v45  ;;  %v3216_v62 = vmul.f32 %v6048_v28, %v7634_v25  ;;  %v3848_v17 = vld [vmem:[%s8173_s9 + $0x10] sm:$0xff]  ;;  %v3878_v45 = vld [vmem:[%s8174_s11] sm:$0xff] }
 0x5c8   :  { %v3880_v28 = vld [vmem:[%s8174_s11 + $0x10] sm:$0xff] }
 0x5ca   :  { %5490 = vmatpush3.bf16.xpose.msk.msra.mxu0 %vm7464_vm4, %v5485_v20 }
 0x5cb   :  { %5493 = vmatprep.subr.msk.bf16.mxu0 %vm7464_vm4, %v5491_v7 }
 0x5d2   :  { %5496 = vmatpush3.bf16.xpose.msk.msra.mxu0 %vm7464_vm4, %v5491_v7 }
 0x5d3   :  { %5523 = vmatprep.subr.msk.bf16.mxu0 %vm7464_vm4, %v5521_v34 }
 0x5d9   :  { %5060 = vmatmul.mubr.msk.f32.vlgmr.msra.gmra.mrb[20].mxu0 %vm72_vm1, %v7714_v48  ;;  %v6050_v48 = vpop.eup %6049 }
 0x5da   :  { %5526 = vmatpush3.bf16.xpose.msk.msra.mxu0 %vm7464_vm4, %v5521_v34  ;;  %v3215_v31 = vmul.f32 %v6050_v48, %v7626_v5  ;;  %v4024_v48 = vld [vmem:[%s8175_s13 + $0x8] sm:$0xff] }
 0x5db   :  { %5529 = vmatprep.subr.msk.bf16.mxu0 %vm7464_vm4, %v5527_v43 }
 0x5dc   :  { %v5539_v60 = vpack.c.bf16 %v3216_v62, %v3215_v31  ;;  %v4023_v62 = vld [vmem:[%s8175_s13] sm:$0xff]  ;;  %v4026_v31 = vld [vmem:[%s8175_s13 + $0x18] sm:$0xff] }
 0x5e2   :  { %5532 = vmatpush3.bf16.xpose.msk.msra.mxu0 %vm7464_vm4, %v5527_v43  ;;  %v3821_v43 = vld [vmem:[%s8172_s8 + $0x18] sm:$0xff] }
 0x5e3   :  { %5535 = vmatprep.subr.msk.bf16.mxu0 %vm7464_vm4, %v5533_v8 }
 0x5ea   :  { %5538 = vmatpush3.bf16.xpose.msk.msra.mxu0 %vm7464_vm4, %v5533_v8  ;;  %v3881_v8 = vld [vmem:[%s8174_s11 + $0x18] sm:$0xff] }
 0x5eb   :  { %v3574_v6 = vpop.xlane.xlu1 %3573  ;;  %5541 = vmatprep.subr.msk.bf16.mxu0 %vm7464_vm4, %v5539_v60 }
 0x5ec   :  { %6051 = vrcp.f32 %v3574_v6  ;;  %v3874_v6 = vld [vmem:[%s8176_s10] sm:$0xff] }
 0x5ef   :  { %v3580_v50 = vpop.xlane.xlu1 %3579  ;;  %v3571_v47 = vpop.xlane.xlu0 %3570 }
 0x5f0   :  { %6053 = vrcp.f32 %v3571_v47 }
 0x5f1   :  { %6055 = vrcp.f32 %v3580_v50 }
 0x5f2   :  { %5544 = vmatpush3.bf16.xpose.msk.msra.mxu0 %vm7464_vm4, %v5539_v60  ;;  %v4025_v60 = vld [vmem:[%s8175_s13 + $0x10] sm:$0xff] }
 0x5f3   :  { %v3577_v9 = vpop.xlane.xlu0 %3576  ;;  %v2842_v5 = vpop.permute.xlu1 %2841 }
 0x5f4   :  { %6057 = vrcp.f32 %v3577_v9 }
 0x5f6   :  { %v6052_v29 = vpop.eup %6051 }
 0x5f7   :  { %v2840_v25 = vpop.permute.xlu0 %2839  ;;  %v3598_v11 = vmul.f32 %v6052_v29, %v7722_v27 }
 0x5f8   :  { %5062 = vmatprep.mubr.msk.f32.mxu0 %vm72_vm1, %v2840_v25 }
 0x5f9   :  { %5063 = vmatmul.mubr.msk.f32.gmra.mrb[22].mxu0 %vm72_vm1, %v2842_v5 }
 0x5fa   :  { %v6054_v58 = vpop.eup %6053 }
 0x5fb   :  { %v6056_v0 = vpop.eup %6055  ;;  %v3597_v42 = vmul.f32 %v6054_v58, %v7728_v24 }
 0x5fc   :  { %v3600_v13 = vmul.f32 %v6056_v0, %v8345_v16  ;;  %v8347_v16 = vld [vmem:[#allocation2_spill] sm:$0xff] }
 0x5fd   :  { %v5575_v21 = vpack.c.bf16 %v3598_v11, %v3597_v42 }
 0x5fe   :  { %v6058_v36 = vpop.eup %6057 }
 0x5ff   :  { %v3599_v26 = vmul.f32 %v6058_v36, %v7730_v18  ;;  %5577 = vmatprep.subr.msk.bf16.mxu1 %vm7464_vm4, %v5575_v21 }
 0x600   :  { %5580 = vmatpush3.bf16.xpose.msk.msra.mxu1 %vm7464_vm4, %v5575_v21  ;;  %v8346_v21 = vld [vmem:[#allocation3_spill] sm:$0xff] }
 0x601   :  { %v5581_v15 = vpack.c.bf16 %v3600_v13, %v3599_v26 }
 0x603   :  { %5583 = vmatprep.subr.msk.bf16.mxu1 %vm7464_vm4, %v5581_v15 }
 0x608   :  { %5586 = vmatpush3.bf16.xpose.msk.msra.mxu1 %vm7464_vm4, %v5581_v15 }
 0x624   :  { %v3586_v27 = vpop.xlane.xlu1 %3585 }
 0x625   :  { %6059 = vrcp.f32 %v3586_v27 }
 0x628   :  { %v3604_v24 = vpop.permute.xlu1 %3603  ;;  %v3583_v10 = vpop.xlane.xlu0 %3582 }
 0x629   :  { %6061 = vrcp.f32 %v3583_v10  ;;  %5159 = vmatprep.mubr.msk.f32.mxu1 %vm72_vm1, %v3604_v24 }
 0x62c   :  { %v3218_v18 = vpop.permute.xlu0 %3217  ;;  %v3606_v38 = vpop.permute.xlu1 %3605 }
 0x62d   :  { %5109 = vmatprep.mubr.msk.f32.mxu0 %vm72_vm1, %v3218_v18 }
 0x62f   :  { %v6060_v37 = vpop.eup %6059 }
 0x630   :  { %v3220_v56 = vpop.permute.xlu0 %3219  ;;  %v3602_v4 = vmul.f32 %v6060_v37, %v7824_v39  ;;  %v3608_v49 = vpop.permute.xlu1 %3607  ;;  %v8348_v37 = vld [vmem:[#allocation4_spill] sm:$0xff] }
 0x631   :  { %5110 = vmatmul.mubr.msk.f32.vlgmr.msra.gmra.mrb[20].mxu0 %vm72_vm1, %v3220_v56 }
 0x633   :  { %v6062_v19 = vpop.eup %6061 }
 0x634   :  { %v3222_v33 = vpop.permute.xlu0 %3221  ;;  %v3601_v23 = vmul.f32 %v6062_v19, %v7830_v52  ;;  %v3610_v52 = vpop.permute.xlu1 %3609 }
 0x635   :  { %5112 = vmatprep.mubr.msk.f32.mxu0 %vm72_vm1, %v3222_v33  ;;  %v8349_v33 = vld [vmem:[#allocation5_spill] sm:$0xff] }
 0x636   :  { %v5587_v20 = vpack.c.bf16 %v3602_v4, %v3601_v23 }
 0x638   :  { %5589 = vmatprep.subr.msk.bf16.mxu1 %vm7464_vm4, %v5587_v20  ;;  %v3224_v54 = vpop.permute.xlu0 %3223  ;;  %v3764_v50 = vpop.permute.xlu1 %3763 }
 0x639   :  { %5113 = vmatmul.mubr.msk.f32.gmra.mrb[22].mxu0 %vm72_vm1, %v3224_v54  ;;  %5592 = vmatpush3.bf16.xpose.msk.msra.mxu1 %vm7464_vm4, %v5587_v20 }
 0x63a   :  { %5173 = vmatprep.mubr.msk.f32.mxu0 %vm224_vm0, %v3874_v6 }
 0x63c   :  { %v3774_v9 = vpop.permute.xlu1 %3773 }
 0x640   :  { %5160 = vmatmul.mubr.msk.f32.vlgmr.msra.gmra.mrb[72].mxu1 %vm72_vm1, %v3606_v38  ;;  %v3759_v47 = vpop.permute.xlu0 %3758 }
 0x641   :  { %5162 = vmatprep.mubr.msk.f32.mxu1 %vm72_vm1, %v3608_v49 }
 0x644   :  { %5163 = vmatmul.mubr.msk.f32.gmra.mrb[74].mxu1 %vm72_vm1, %v3610_v52  ;;  %v3769_v25 = vpop.permute.xlu0 %3768 }
 0x66c   :  { %v8004_v39 = vpop.f32.mrb[16].mxu0 }
 0x66d   :  { %v8006_v35 = vpop.f32.mrb[17].mxu0 }
 0x670   :  { %v8008_v1 = vpop.f32.mrb[18].mxu0 }
 0x671   :  { %v8010_v32 = vpop.f32.mrb[19].mxu0 }
 0x704   :  { %v5111_v51 = vpop.f32.mrb[20].mxu0 }
 0x705   :  { %v3323_v7 = vpop.f32.mrb[21].mxu0 }
 0x70c   :  { %v5114_v44 = vpop.f32.mrb[22].mxu0 }
 0x70d   :  { %v3333_v40 = vpop.f32.mrb[23].mxu0 }
 0x713   :  { %v5161_v55 = vpop.f32.mrb[72].mxu1 }
 0x714   :  { %v5609_v12 = vadd.f32 %v5161_v55, %v5111_v51  ;;  %v3709_v63 = vpop.f32.mrb[73].mxu1 }
 0x715   :  { %v5610_v14 = vadd.f32 %v3709_v63, %v3323_v7 }
 0x716   :  { %3738 = vrot.lane.b32.xlu1 %v5609_v12, %s6074_s17 }
 0x717   :  { %v5164_v3 = vpop.f32.mrb[74].mxu1  ;;  %3736 = vrot.lane.b32.xlu0 %v5610_v14, %s6074_s17 }
 0x718   :  { %v5611_v34 = vadd.f32 %v5164_v3, %v5114_v44  ;;  %v3719_v2 = vpop.f32.mrb[75].mxu1 }
 0x719   :  { %v5612_v53 = vadd.f32 %v3719_v2, %v3333_v40 }
 0x71a   :  { %3742 = vrot.lane.b32.xlu1 %v5611_v34, %s6074_s17 }
 0x71b   :  { %3740 = vrot.lane.b32.xlu0 %v5612_v53, %s6074_s17 }
 0x71e   :  { %3829 = vperm.xlu1 %5644, %v3819_v57  }
 0x71f   :  { %3824 = vperm.xlu0 %5643, %v3818_v59  }
 0x722   :  { %3857 = vperm.xlu1 %5644, %v3847_v61  }
 0x723   :  { %3852 = vperm.xlu0 %5643, %v3846_v22  }
 0x726   :  { %3839 = vperm.xlu1 %5644, %v3821_v43  }
 0x727   :  { %3834 = vperm.xlu0 %5643, %v3820_v41  }
 0x72a   :  { %3867 = vperm.xlu1 %5644, %v3849_v46  }
 0x72b   :  { %3862 = vperm.xlu0 %5643, %v3848_v17  }
 0x72e   :  { %3889 = vperm.xlu1 %5644, %v3879_v30  }
 0x72f   :  { %3884 = vperm.xlu0 %5643, %v3878_v45  }
 0x732   :  { %3899 = vperm.xlu1 %5644, %v3881_v8  }
 0x733   :  { %3894 = vperm.xlu0 %5643, %v3880_v28  }
 0x736   :  { %4034 = vperm.xlu1 %5644, %v4024_v48  }
 0x737   :  { %4029 = vperm.xlu0 %5643, %v4023_v62  }
 0x73a   :  { %4044 = vperm.xlu1 %5644, %v4026_v31  }
 0x73b   :  { %4039 = vperm.xlu0 %5643, %v4025_v60  }
 0x788   :  { %v3739_v5 = vpop.permute.xlu1 %3738 }
 0x789   :  { %v3749_v29 = vsel %vm72_vm1, %v8004_v39, %v3739_v5  ;;  %v3737_v58 = vpop.permute.xlu0 %3736 }
 0x78a   :  { %v3777_v0 = vadd.f32 %v3764_v50, %v3749_v29  ;;  %v3748_v42 = vsel %vm72_vm1, %v8006_v35, %v3737_v58 }
 0x78b   :  { %v3776_v11 = vadd.f32 %v3759_v47, %v3748_v42 }
 0x78c   :  { %v3743_v36 = vpop.permute.xlu1 %3742  ;;  %v8073_v26 = vadd.f32 %v3777_v0, %v8346_v21 }
 0x78d   :  { %v8076_v13 = vadd.f32 %v3776_v11, %v8347_v16  ;;  %v3751_v15 = vsel %vm72_vm1, %v8008_v1, %v3743_v36  ;;  %v3741_v27 = vpop.permute.xlu0 %3740  ;;  %v3875_v16 = vld [vmem:[%s8176_s10 + $0x8] sm:$0xff] }
 0x78e   :  { %v3750_v24 = vsel %vm72_vm1, %v8010_v32, %v3741_v27  ;;  %v3779_v10 = vadd.f32 %v3774_v9, %v3751_v15  ;;  %v3876_v15 = vld [vmem:[%s8176_s10 + $0x10] sm:$0xff]  ;;  %v3877_v27 = vld [vmem:[%s8176_s10 + $0x18] sm:$0xff] }
 0x78f   :  { %v3778_v18 = vadd.f32 %v3769_v25, %v3750_v24  ;;  %v3784_v56 = vadd.f32 %v8073_v26, %v8076_v13  ;;  %v4019_v24 = vld [vmem:[%s8177_s12] sm:$0xff] }
 0x790   :  { %v8088_v23 = vadd.f32 %v3779_v10, %v8349_v33  ;;  %5187 = vmatprep.mubr.msk.f32.mxu1 %vm224_vm0, %v4019_v24 }
 0x791   :  { %v8085_v19 = vadd.f32 %v3778_v18, %v8348_v37 }
 0x793   :  { %v3785_v4 = vadd.f32 %v3784_v56, %v8085_v19 }
 0x795   :  { %v3786_v20 = vadd.f32 %v3785_v4, %v8088_v23 }
 0x797   :  { %v3787_v38 = vrot.slane %v3786_v20, 4 }
 0x799   :  { %v3788_v54 = vadd.f32 %v3787_v38, %v3786_v20 }
 0x79b   :  { %v3789_v49 = vrot.slane %v3788_v54, 2 }
 0x79d   :  { %v3790_v52 = vadd.f32 %v3789_v49, %v3788_v54  ;;  %v3830_v43 = vpop.permute.xlu1 %3829 }
 0x79e   :  { %v3825_v46 = vpop.permute.xlu0 %3824 }
 0x79f   :  { %v3791_v39 = vrot.slane %v3790_v52, 1 }
 0x7a1   :  { %v3792_v35 = vadd.f32 %v3791_v39, %v3790_v52  ;;  %v3858_v30 = vpop.permute.xlu1 %3857 }
 0x7a2   :  { %v3853_v45 = vpop.permute.xlu0 %3852 }
 0x7a3   :  { %v3793_v1 = vmul.f32 0.03125, %v3792_v35 }
 0x7a5   :  { %v3796_v32 = vsub.f32 %v8085_v19, %v3793_v1  ;;  %v3794_v51 = vsub.f32 %v8076_v13, %v3793_v1  ;;  %v3795_v7 = vsub.f32 %v8073_v26, %v3793_v1  ;;  %v3797_v44 = vsub.f32 %v8088_v23, %v3793_v1  ;;  %v3840_v8 = vpop.permute.xlu1 %3839 }
 0x7a6   :  { %v3835_v28 = vpop.permute.xlu0 %3834 }
 0x7a7   :  { %v3798_v40 = vmul.f32 %v3794_v51, %v3794_v51  ;;  %v3799_v55 = vmul.f32 %v3795_v7, %v3795_v7  ;;  %v3800_v12 = vmul.f32 %v3796_v32, %v3796_v32  ;;  %v3801_v14 = vmul.f32 %v3797_v44, %v3797_v44 }
 0x7a9   :  { %v3802_v63 = vadd.f32 %v3799_v55, %v3798_v40  ;;  %v3868_v5 = vpop.permute.xlu1 %3867 }
 0x7aa   :  { %v3863_v29 = vpop.permute.xlu0 %3862 }
 0x7ab   :  { %v3803_v3 = vadd.f32 %v3802_v63, %v3800_v12 }
 0x7ad   :  { %v3804_v34 = vadd.f32 %v3803_v3, %v3801_v14  ;;  %v3890_v10 = vpop.permute.xlu1 %3889 }
 0x7ae   :  { %v3885_v18 = vpop.permute.xlu0 %3884 }
 0x7af   :  { %v3805_v2 = vrot.slane %v3804_v34, 4 }
 0x7b1   :  { %v3806_v53 = vadd.f32 %v3805_v2, %v3804_v34  ;;  %v3900_v38 = vpop.permute.xlu1 %3899 }
 0x7b2   :  { %v3895_v52 = vpop.permute.xlu0 %3894 }
 0x7b3   :  { %v3807_v57 = vrot.slane %v3806_v53, 2 }
 0x7b5   :  { %v3808_v59 = vadd.f32 %v3807_v57, %v3806_v53 }
 0x7b7   :  { %v3809_v61 = vrot.slane %v3808_v59, 1 }
 0x7b9   :  { %v3810_v22 = vadd.f32 %v3809_v61, %v3808_v59 }
 0x7bb   :  { %v3811_v41 = vmul.f32 0.03125, %v3810_v22 }
 0x7bd   :  { %v3812_v17 = vadd.f32 1e-05, %v3811_v41 }
 0x7bf   :  { %6063 = vrsqrt.f32 %v3812_v17  ;;  %v4020_v17 = vld [vmem:[%s8177_s12 + $0x8] sm:$0xff] }
 0x7c9   :  { %v6064_v48 = vpop.eup %6063 }
 0x7ca   :  { %v3815_v62 = vmul.f32 %v6064_v48, %v3795_v7  ;;  %v3814_v31 = vmul.f32 %v6064_v48, %v3794_v51  ;;  %v3817_v60 = vmul.f32 %v6064_v48, %v3797_v44  ;;  %v3816_v6 = vmul.f32 %v6064_v48, %v3796_v32 }
 0x7cc   :  { %v3843_v50 = vmul.f32 %v3830_v43, %v3815_v62  ;;  %v3842_v47 = vmul.f32 %v3825_v46, %v3814_v31  ;;  %v3845_v9 = vmul.f32 %v3840_v8, %v3817_v60  ;;  %v3844_v25 = vmul.f32 %v3835_v28, %v3816_v6  ;;  %v4035_v8 = vpop.permute.xlu1 %4034  ;;  %v4030_v28 = vpop.permute.xlu0 %4029 }
 0x7ce   :  { %v3871_v58 = vadd.f32 %v3858_v30, %v3843_v50  ;;  %v3870_v0 = vadd.f32 %v3853_v45, %v3842_v47  ;;  %v3873_v42 = vadd.f32 %v3868_v5, %v3845_v9  ;;  %v3872_v11 = vadd.f32 %v3863_v29, %v3844_v25  ;;  %v4021_v30 = vld [vmem:[%s8177_s12 + $0x10] sm:$0xff]  ;;  %v4022_v45 = vld [vmem:[%s8177_s12 + $0x18] sm:$0xff] }
 0x7d0   :  { %v5593_v36 = vpack.c.bf16 %v3871_v58, %v3870_v0  ;;  %v5597_v21 = vpack.c.bf16 %v3873_v42, %v3872_v11  ;;  %v4045_v50 = vpop.permute.xlu1 %4044  ;;  %v4040_v25 = vpop.permute.xlu0 %4039 }
 0x7d2   :  { %5594 = vmatprep.subr.bf16.mxu0 %v5593_v36 }
 0x7d3   :  { %5596 = vmatpush3.bf16.msra.mxu0 %v5593_v36 }
 0x7d4   :  { %5598 = vmatprep.subr.bf16.mxu0 %v5597_v21 }
 0x7d7   :  { %5600 = vmatpush3.bf16.msra.mxu0 %v5597_v21 }
 0x7da   :  { %5174 = vmatmul.mubr.msk.f32.vlgmr.msra.gmra.mrb[24].mxu0 %vm224_vm0, %v3875_v16 }
 0x7db   :  { %5176 = vmatprep.mubr.msk.f32.mxu0 %vm224_vm0, %v3876_v15 }
 0x7de   :  { %5177 = vmatmul.mubr.msk.f32.gmra.mrb[26].mxu0 %vm224_vm0, %v3877_v27 }
 0x8ad   :  { %v5175_v56 = vpop.f32.mrb[24].mxu0 }
 0x8ae   :  { %v3986_v37 = vadd.f32 %v5175_v56, %v3890_v10  ;;  %v3980_v33 = vpop.f32.mrb[25].mxu0 }
 0x8af   :  { %v3981_v4 = vadd.f32 %v3980_v33, %v3885_v18 }
 0x8b0   :  { %v4004_v20 = vmul.f32 0.70710677, %v3986_v37  ;;  %v4000_v40 = vmul.f32 0.5, %v3986_v37 }
 0x8b1   :  { %v4003_v54 = vmul.f32 0.70710677, %v3981_v4  ;;  %v5178_v49 = vpop.f32.mrb[26].mxu0  ;;  %v3999_v12 = vmul.f32 0.5, %v3981_v4 }
 0x8b2   :  { %6065 = verf.f32 %v4004_v20  ;;  %v3996_v39 = vadd.f32 %v5178_v49, %v3900_v38  ;;  %v3990_v35 = vpop.f32.mrb[27].mxu0 }
 0x8b3   :  { %6067 = verf.f32 %v4003_v54  ;;  %v3991_v1 = vadd.f32 %v3990_v35, %v3895_v52 }
 0x8b4   :  { %v4006_v32 = vmul.f32 0.70710677, %v3996_v39  ;;  %v4002_v53 = vmul.f32 0.5, %v3996_v39 }
 0x8b5   :  { %v4005_v51 = vmul.f32 0.70710677, %v3991_v1  ;;  %v4001_v59 = vmul.f32 0.5, %v3991_v1 }
 0x8b6   :  { %6069 = verf.f32 %v4006_v32 }
 0x8b7   :  { %6071 = verf.f32 %v4005_v51 }
 0x8bc   :  { %v6066_v7 = vpop.eup %6065 }
 0x8bd   :  { %v6068_v44 = vpop.eup %6067  ;;  %v4012_v55 = vadd.f32 1.0, %v6066_v7 }
 0x8be   :  { %v4011_v63 = vadd.f32 1.0, %v6068_v44 }
 0x8bf   :  { %v4016_v14 = vmul.f32 %v4012_v55, %v4000_v40 }
 0x8c0   :  { %v6070_v3 = vpop.eup %6069  ;;  %v4015_v34 = vmul.f32 %v4011_v63, %v3999_v12 }
 0x8c1   :  { %v6072_v2 = vpop.eup %6071  ;;  %v4014_v57 = vadd.f32 1.0, %v6070_v3 }
 0x8c2   :  { %v4013_v61 = vadd.f32 1.0, %v6072_v2  ;;  %v5601_v22 = vpack.c.bf16 %v4016_v14, %v4015_v34 }
 0x8c3   :  { %v4018_v43 = vmul.f32 %v4014_v57, %v4002_v53 }
 0x8c4   :  { %v4017_v41 = vmul.f32 %v4013_v61, %v4001_v59  ;;  %5602 = vmatprep.subr.bf16.mxu1 %v5601_v22 }
 0x8c5   :  { %5604 = vmatpush3.bf16.msra.mxu1 %v5601_v22 }
 0x8c6   :  { %v5605_v46 = vpack.c.bf16 %v4018_v43, %v4017_v41 }
 0x8c8   :  { %5606 = vmatprep.subr.bf16.mxu1 %v5605_v46 }
 0x8c9   :  { %5608 = vmatpush3.bf16.msra.mxu1 %v5605_v46 }
 0x8cc   :  { %5188 = vmatmul.mubr.msk.f32.vlgmr.msra.gmra.mrb[76].mxu1 %vm224_vm0, %v4020_v17 }
 0x8cd   :  { %5190 = vmatprep.mubr.msk.f32.mxu1 %vm224_vm0, %v4021_v30 }
 0x8d0   :  { %5191 = vmatmul.mubr.msk.f32.gmra.mrb[78].mxu1 %vm224_vm0, %v4022_v45 }
 0x99f   :  { %v5189_v48 = vpop.f32.mrb[76].mxu1 }
 0x9a0   :  { %v4131_v62 = vadd.f32 %v5189_v48, %v4035_v8  ;;  %v4125_v31 = vpop.f32.mrb[77].mxu1 }
 0x9a1   :  { %v4126_v60 = vadd.f32 %v4125_v31, %v4030_v28 }
 0x9a2   :  { %v4145_v6 = vadd.f32 %v4131_v62, %v8073_v26 }
 0x9a3   :  { %v4144_v47 = vadd.f32 %v4126_v60, %v8076_v13  ;;  %v5192_v9 = vpop.f32.mrb[78].mxu1 }
 0x9a4   :  { %4149 = vst.msk [vmem:[%s8178_s14 + $0x8] sm:$0xff] %vm72_vm1, %v4145_v6  ;;  %v4141_v5 = vadd.f32 %v5192_v9, %v4045_v50  ;;  %4158 = vrot.lane.b32.xlu1 %v4145_v6, %s6074_s17  ;;  %v4135_v29 = vpop.f32.mrb[79].mxu1 }
 0x9a5   :  { %4148 = vst.msk [vmem:[%s8178_s14] sm:$0xff] %vm72_vm1, %v4144_v47  ;;  %v4136_v26 = vadd.f32 %v4135_v29, %v4040_v25  ;;  %4156 = vrot.lane.b32.xlu0 %v4144_v47, %s6074_s17 }
 0x9a6   :  { %v4147_v13 = vadd.f32 %v4141_v5, %v8088_v23 }
 0x9a7   :  { %v4146_v58 = vadd.f32 %v4136_v26, %v8085_v19 }
 0x9a8   :  { %4151 = vst.msk [vmem:[%s8178_s14 + $0x18] sm:$0xff] %vm72_vm1, %v4147_v13  ;;  %4162 = vrot.lane.b32.xlu1 %v4147_v13, %s6074_s17 }
 0x9a9   :  { %4150 = vst.msk [vmem:[%s8178_s14 + $0x10] sm:$0xff] %vm72_vm1, %v4146_v58  ;;  %4160 = vrot.lane.b32.xlu0 %v4146_v58, %s6074_s17 }
 0xa16   :  { %v4159_v0 = vpop.permute.xlu1 %4158 }
 0xa17   :  { %4438 = vst.msk [vmem:[%s8178_s14 + $0x28] sm:$0xff] %vm72_vm1, %v4159_v0  ;;  %v4157_v19 = vpop.permute.xlu0 %4156 }
 0xa18   :  { %4437 = vst.msk [vmem:[%s8178_s14 + $0x20] sm:$0xff] %vm72_vm1, %v4157_v19 }
 0xa1a   :  { %v4163_v23 = vpop.permute.xlu1 %4162 }
 0xa1b   :  { %4440 = vst.msk [vmem:[%s8178_s14 + $0x38] sm:$0xff] %vm72_vm1, %v4163_v23  ;;  %v4161_v42 = vpop.permute.xlu0 %4160 }
 0xa1c   :  { %4439 = vst.msk [vmem:[%s8178_s14 + $0x30] sm:$0xff] %vm72_vm1, %v4161_v42 }

</bundles_post_ra>
